<compile_context>
chip_gen: v6e
topology: v6e:2x2x1
jax: 0.10.0
libtpu: 0.0.40
codegen_flags: <defaults>
</compile_context>

<pallas_src>
import math
from functools import partial

import jax
import jax.numpy as jnp
from jax.experimental import pallas as pl
from jax.experimental.pallas import tpu as pltpu

_EPS = 1e-8
_PI = math.pi
_TWO_PI = 2.0 * math.pi
_SUB = 8  # pair-rows carried per Kronecker-lifted matmul (one sublane tile)


def _gelu(h, approximate):
    if approximate:
        # tanh approximation -> EUP transcendental slot (recommended default).
        return jax.nn.gelu(h, approximate=True)
    # PyTorch nn.GELU() exact erf formulation (VALU polynomial; slower).
    return 0.5 * h * (1.0 + jax.lax.erf(h * (1.0 / math.sqrt(2.0))))


def _pair_embed_kernel(xi_ref, xj_ref, w1_ref, w2_ref, w3_ref, o_ref, *,
                       approximate_gelu, eps):
    xi = xi_ref[0]            # (TI, 7) channels-last : [px, py, pz, E, pt, rap, phi]
    xj = xj_ref[0]            # (7, TJ) channels-first: same features, "j" particles
    ti = xi.shape[0]
    d3 = o_ref.shape[1]
    tj = o_ref.shape[3]

    # Per-particle columns / rows for outer-product broadcasting.
    pxi, pyi, pzi, ei, pti, rapi, phii = [xi[:, c:c + 1] for c in range(7)]  # (TI, 1)
    pxj, pyj, pzj, ej, ptj, rapj, phij = [xj[c:c + 1, :] for c in range(7)]  # (1, TJ)

    # Pairwise Lorentz-vector features, all dense (TI, TJ) blocks (f32).
    d = phii - phij
    # torch-style floor-mod: (a - b + pi) % (2*pi) - pi
    dphi = d - _TWO_PI * jnp.floor((d + _PI) / _TWO_PI)
    drap = rapi - rapj
    delta = jnp.sqrt(drap * drap + dphi * dphi)
    ptmin = jnp.minimum(pti, ptj)
    kt = ptmin * delta
    z = ptmin / jnp.maximum(pti + ptj, eps)
    pxs = pxi + pxj
    pys = pyi + pyj
    pzs = pzi + pzj
    es = ei + ej
    m2 = es * es - (pxs * pxs + pys * pys + pzs * pzs)

    lnkt = jnp.log(jnp.maximum(kt, eps))
    lnz = jnp.log(jnp.maximum(z, eps))
    lndelta = jnp.log(jnp.maximum(delta, eps))
    lnm2 = jnp.log(jnp.maximum(m2, eps))

    w1 = w1_ref[...]          # (D1*8, 4*8)   Kronecker-lifted, BN folded
    w2 = w2_ref[...]          # (D2*8, D1*8)
    w3 = w3_ref[...]          # (D3*8, D2*8)
    cdt = w1.dtype            # compute dtype for the MXU (f32 or bf16)

    # 1x1 conv stack, 8 pair-rows per pass. kron(W, I_8) keeps the channel
    # contraction on the MXU without any lane<->sublane relayout.
    for r in range(ti // _SUB):
        sl = slice(r * _SUB, (r + 1) * _SUB)
        feats = jnp.concatenate(
            [lnkt[sl], lnz[sl], lndelta[sl], lnm2[sl]], axis=0)       # (4*8, TJ)
        h = jnp.dot(w1, feats.astype(cdt), preferred_element_type=jnp.float32)
        h = _gelu(h, approximate_gelu)
        h = jnp.dot(w2, h.astype(cdt), preferred_element_type=jnp.float32)
        h = _gelu(h, approximate_gelu)
        h = jnp.dot(w3, h.astype(cdt), preferred_element_type=jnp.float32)  # (D3*8, TJ)
        # (D3*8, TJ) -> (D3, 8, TJ): leading-dim split only (lane dim untouched).
        o_ref[0, :, sl, :] = h.reshape(d3, _SUB, tj).astype(o_ref.dtype)


def _round_up(x, m):
    return (x + m - 1) // m * m


def _choose_tiling(seq_len, max_pair_lanes=8192):
    """Returns (padded i extent, padded j extent, i-tile size)."""
    s_j = _round_up(seq_len, 128)              # lane-dense, unmasked output stores
    ti = min(64,
             _round_up(seq_len, _SUB),
             max(_SUB, (max_pair_lanes // s_j) // _SUB * _SUB))
    s_i = _round_up(seq_len, ti)
    return s_i, s_j, ti


def init_pair_embed_params(key, pairwise_lv_dim=4, dims=(32, 32, 32)):
    """Deterministic synthetic weights; BN (affine=False, running mean=0, var=1,
    eps=1e-5) folded into the bias-free 1x1 conv weights."""
    bn_eps = 1e-5
    d0 = pairwise_lv_dim
    d1, d2, d3 = dims
    k1, k2, k3 = jax.random.split(key, 3)
    # torch Conv1d(in, out, 1, bias=False) weight -> squeezed (out, in)
    w1 = jax.random.normal(k1, (d1, d0), jnp.float32) * (1.0 / math.sqrt(d0))
    w2 = jax.random.normal(k2, (d2, d1), jnp.float32) * (1.0 / math.sqrt(d1))
    w3 = jax.random.normal(k3, (d3, d2), jnp.float32) * (1.0 / math.sqrt(d2))
    s0 = 1.0 / jnp.sqrt(jnp.ones((d0,), jnp.float32) + bn_eps)  # input BN
    s1 = 1.0 / jnp.sqrt(jnp.ones((d1,), jnp.float32) + bn_eps)
    s2 = 1.0 / jnp.sqrt(jnp.ones((d2,), jnp.float32) + bn_eps)
    s3 = 1.0 / jnp.sqrt(jnp.ones((d3,), jnp.float32) + bn_eps)
    w1_eff = s1[:, None] * w1 * s0[None, :]
    w2_eff = s2[:, None] * w2
    w3_eff = s3[:, None] * w3
    return w1_eff, w2_eff, w3_eff


def pair_embed_forward(x, params, *, approximate_gelu=True,
                       compute_dtype=jnp.float32, out_dtype=jnp.float32,
                       max_pair_lanes=8192):
    """x: (B, 4, S) four-momenta (px, py, pz, E), same layout as the PyTorch module.
    Returns y: (B, out_dim, S, S).

    On v6e/v7x pass compute_dtype=jnp.bfloat16 (and optionally out_dtype=jnp.bfloat16)
    to use the native bf16 MXU path and halve the dominant output HBM traffic; keep
    float32 on v5e (no bf16 VPU/EUP)."""
    B, C, S = x.shape
    assert C == 4
    w1, w2, w3 = params
    d3 = w3.shape[0]

    # O(S) per-particle kinematics (cheap glue, fuses under jit).
    px, py, pz, e = x[:, 0], x[:, 1], x[:, 2], x[:, 3]
    pt = jnp.sqrt(px * px + py * py)
    rap = 0.5 * jnp.log(1.0 + 2.0 * pz / jnp.maximum(e - pz, 1e-20))
    phi = jnp.arctan2(py, px)
    feat = jnp.stack([px, py, pz, e, pt, rap, phi], axis=1).astype(jnp.float32)  # (B,7,S)

    s_i, s_j, tile_i = _choose_tiling(S, max_pair_lanes)
    # Only O(B*7*S) bytes cross HBM as inputs; the O(S^2) pair grid never does.
    feat_j = jnp.pad(feat, ((0, 0), (0, 0), (0, s_j - S)))                      # (B,7,s_j)
    feat_i = jnp.pad(feat, ((0, 0), (0, 0), (0, s_i - S))).transpose(0, 2, 1)   # (B,s_i,7)

    # Kronecker-lift the folded 1x1 conv weights: kron(W, I_8) lets one matmul apply
    # the channel mixing to 8 pair-rows at once (no in-kernel lane/sublane reshape).
    eye = jnp.eye(_SUB, dtype=jnp.float32)
    w1k = jnp.kron(w1, eye).astype(compute_dtype)   # (D1*8, 4*8)
    w2k = jnp.kron(w2, eye).astype(compute_dtype)   # (D2*8, D1*8)
    w3k = jnp.kron(w3, eye).astype(compute_dtype)   # (D3*8, D2*8)

    kernel = partial(_pair_embed_kernel, approximate_gelu=approximate_gelu, eps=_EPS)
    grid = (B, s_i // tile_i)
    out = pl.pallas_call(
        kernel,
        out_shape=jax.ShapeDtypeStruct((B, d3, s_i, s_j), out_dtype),
        grid=grid,
        in_specs=[
            pl.BlockSpec((1, tile_i, 7), lambda b, it: (b, it, 0)),   # i-particles
            pl.BlockSpec((1, 7, s_j), lambda b, it: (b, 0, 0)),       # j-particles
            pl.BlockSpec(w1k.shape, lambda b, it: (0, 0)),
            pl.BlockSpec(w2k.shape, lambda b, it: (0, 0)),
            pl.BlockSpec(w3k.shape, lambda b, it: (0, 0)),
        ],
        out_specs=pl.BlockSpec((1, d3, tile_i, s_j), lambda b, it: (b, 0, it, 0)),
        compiler_params=pltpu.CompilerParams(
            dimension_semantics=("parallel", "parallel")),
    )(feat_i, feat_j, w1k, w2k, w3k)

    # Drop padded rows/cols (no-op when S is already a multiple of 128).
    return out[:, :, :S, :S]


# Jitted entry point: per-particle glue fuses with dispatch, no host syncs inside.
pair_embed = jax.jit(
    pair_embed_forward,
    static_argnames=("approximate_gelu", "compute_dtype", "out_dtype",
                     "max_pair_lanes"))


if __name__ == "__main__":
    key = jax.random.PRNGKey(0)
    kx, km, kp = jax.random.split(key, 3)

    B, S = 2, 16
    dims = (32, 32, 32)

    # Physical four-momenta: E = sqrt(|p|^2 + m^2) keeps rapidity / mass logs finite,
    # matching the regime the PyTorch module is used in.
    p3 = jax.random.normal(kx, (B, 3, S), jnp.float32)
    m = 0.1 + jax.random.uniform(km, (B, 1, S), jnp.float32)
    e = jnp.sqrt(jnp.sum(p3 * p3, axis=1, keepdims=True) + m * m)
    x = jnp.concatenate([p3, e], axis=1)  # (B, 4, S)

    params = init_pair_embed_params(kp, pairwise_lv_dim=4, dims=dims)
    y = pair_embed(x, params)
    y = jax.block_until_ready(y)

    assert y.shape == (B, dims[-1], S, S), y.shape
    assert bool(jnp.all(jnp.isfinite(y)))
    print("KERNEL_OK")
</pallas_src>

<mosaic_0001>
module attributes {stable_mosaic.version = 11 : i64} {
  func.func @_pair_embed_kernel(%arg0: i32, %arg1: i32, %arg2: memref<1x16x7xf32, #tpu.memory_space<vmem>>, %arg3: memref<1x7x128xf32, #tpu.memory_space<vmem>>, %arg4: memref<256x32xf32, #tpu.memory_space<vmem>>, %arg5: memref<256x256xf32, #tpu.memory_space<vmem>>, %arg6: memref<256x256xf32, #tpu.memory_space<vmem>>, %arg7: memref<1x32x16x128xf32, #tpu.memory_space<vmem>>) attributes {dimension_semantics = [#tpu.dimension_semantics<parallel>, #tpu.dimension_semantics<parallel>], iteration_bounds = array<i64: 2, 1>, scalar_prefetch = 0 : i64, scratch_operands = 0 : i64, tpu.core_type = #tpu.core_type<tc>, window_params = [{transform_indices = @transform_0, window_bounds = array<i64: 1, 16, 7>}, {transform_indices = @transform_1, window_bounds = array<i64: 1, 7, 128>}, {pipeline_mode = #tpu.pipeline_mode<synchronous>, transform_indices = @transform_2, window_bounds = array<i64: 256, 32>}, {pipeline_mode = #tpu.pipeline_mode<synchronous>, transform_indices = @transform_3, window_bounds = array<i64: 256, 256>}, {pipeline_mode = #tpu.pipeline_mode<synchronous>, transform_indices = @transform_4, window_bounds = array<i64: 256, 256>}, {transform_indices = @transform_5, window_bounds = array<i64: 1, 32, 16, 128>}]} {
    %c0 = arith.constant 0 : index
    %c0_0 = arith.constant 0 : index
    %c0_1 = arith.constant 0 : index
    %0 = vector.load %arg2[%c0, %c0_0, %c0_1] : memref<1x16x7xf32, #tpu.memory_space<vmem>>, vector<1x16x7xf32>
    %1 = vector.shape_cast %0 : vector<1x16x7xf32> to vector<16x7xf32>
    %c0_2 = arith.constant 0 : index
    %c0_3 = arith.constant 0 : index
    %c0_4 = arith.constant 0 : index
    %2 = vector.load %arg3[%c0_2, %c0_3, %c0_4] : memref<1x7x128xf32, #tpu.memory_space<vmem>>, vector<1x7x128xf32>
    %3 = vector.shape_cast %2 : vector<1x7x128xf32> to vector<7x128xf32>
    %4 = vector.extract_strided_slice %1 {offsets = [0, 0], sizes = [16, 1], strides = [1, 1]} : vector<16x7xf32> to vector<16x1xf32>
    %5 = vector.extract_strided_slice %1 {offsets = [0, 1], sizes = [16, 1], strides = [1, 1]} : vector<16x7xf32> to vector<16x1xf32>
    %6 = vector.extract_strided_slice %1 {offsets = [0, 2], sizes = [16, 1], strides = [1, 1]} : vector<16x7xf32> to vector<16x1xf32>
    %7 = vector.extract_strided_slice %1 {offsets = [0, 3], sizes = [16, 1], strides = [1, 1]} : vector<16x7xf32> to vector<16x1xf32>
    %8 = vector.extract_strided_slice %1 {offsets = [0, 4], sizes = [16, 1], strides = [1, 1]} : vector<16x7xf32> to vector<16x1xf32>
    %9 = vector.extract_strided_slice %1 {offsets = [0, 5], sizes = [16, 1], strides = [1, 1]} : vector<16x7xf32> to vector<16x1xf32>
    %10 = vector.extract_strided_slice %1 {offsets = [0, 6], sizes = [16, 1], strides = [1, 1]} : vector<16x7xf32> to vector<16x1xf32>
    %11 = vector.extract_strided_slice %3 {offsets = [0, 0], sizes = [1, 128], strides = [1, 1]} : vector<7x128xf32> to vector<1x128xf32>
    %12 = vector.extract_strided_slice %3 {offsets = [1, 0], sizes = [1, 128], strides = [1, 1]} : vector<7x128xf32> to vector<1x128xf32>
    %13 = vector.extract_strided_slice %3 {offsets = [2, 0], sizes = [1, 128], strides = [1, 1]} : vector<7x128xf32> to vector<1x128xf32>
    %14 = vector.extract_strided_slice %3 {offsets = [3, 0], sizes = [1, 128], strides = [1, 1]} : vector<7x128xf32> to vector<1x128xf32>
    %15 = vector.extract_strided_slice %3 {offsets = [4, 0], sizes = [1, 128], strides = [1, 1]} : vector<7x128xf32> to vector<1x128xf32>
    %16 = vector.extract_strided_slice %3 {offsets = [5, 0], sizes = [1, 128], strides = [1, 1]} : vector<7x128xf32> to vector<1x128xf32>
    %17 = vector.extract_strided_slice %3 {offsets = [6, 0], sizes = [1, 128], strides = [1, 1]} : vector<7x128xf32> to vector<1x128xf32>
    %18 = vector.broadcast %10 : vector<16x1xf32> to vector<16x128xf32>
    %19 = vector.broadcast %17 : vector<1x128xf32> to vector<16x128xf32>
    %20 = arith.subf %18, %19 : vector<16x128xf32>
    %cst = arith.constant 3.14159274 : f32
    %21 = vector.broadcast %cst : f32 to vector<16x128xf32>
    %22 = arith.addf %20, %21 : vector<16x128xf32>
    %cst_5 = arith.constant 6.28318548 : f32
    %23 = vector.broadcast %cst_5 : f32 to vector<16x128xf32>
    %24 = arith.divf %22, %23 : vector<16x128xf32>
    %25 = math.floor %24 : vector<16x128xf32>
    %cst_6 = arith.constant 6.28318548 : f32
    %26 = vector.broadcast %cst_6 : f32 to vector<16x128xf32>
    %27 = arith.mulf %26, %25 : vector<16x128xf32>
    %28 = arith.subf %20, %27 : vector<16x128xf32>
    %29 = vector.broadcast %9 : vector<16x1xf32> to vector<16x128xf32>
    %30 = vector.broadcast %16 : vector<1x128xf32> to vector<16x128xf32>
    %31 = arith.subf %29, %30 : vector<16x128xf32>
    %32 = arith.mulf %31, %31 : vector<16x128xf32>
    %33 = arith.mulf %28, %28 : vector<16x128xf32>
    %34 = arith.addf %32, %33 : vector<16x128xf32>
    %35 = math.sqrt %34 : vector<16x128xf32>
    %36 = vector.broadcast %8 : vector<16x1xf32> to vector<16x128xf32>
    %37 = vector.broadcast %15 : vector<1x128xf32> to vector<16x128xf32>
    %38 = arith.minimumf %36, %37 : vector<16x128xf32>
    %39 = arith.mulf %38, %35 : vector<16x128xf32>
    %40 = vector.broadcast %8 : vector<16x1xf32> to vector<16x128xf32>
    %41 = vector.broadcast %15 : vector<1x128xf32> to vector<16x128xf32>
    %42 = arith.addf %40, %41 : vector<16x128xf32>
    %cst_7 = arith.constant 9.99999993E-9 : f32
    %43 = vector.broadcast %cst_7 : f32 to vector<16x128xf32>
    %44 = arith.maximumf %42, %43 : vector<16x128xf32>
    %45 = arith.divf %38, %44 : vector<16x128xf32>
    %46 = vector.broadcast %4 : vector<16x1xf32> to vector<16x128xf32>
    %47 = vector.broadcast %11 : vector<1x128xf32> to vector<16x128xf32>
    %48 = arith.addf %46, %47 : vector<16x128xf32>
    %49 = vector.broadcast %5 : vector<16x1xf32> to vector<16x128xf32>
    %50 = vector.broadcast %12 : vector<1x128xf32> to vector<16x128xf32>
    %51 = arith.addf %49, %50 : vector<16x128xf32>
    %52 = vector.broadcast %6 : vector<16x1xf32> to vector<16x128xf32>
    %53 = vector.broadcast %13 : vector<1x128xf32> to vector<16x128xf32>
    %54 = arith.addf %52, %53 : vector<16x128xf32>
    %55 = vector.broadcast %7 : vector<16x1xf32> to vector<16x128xf32>
    %56 = vector.broadcast %14 : vector<1x128xf32> to vector<16x128xf32>
    %57 = arith.addf %55, %56 : vector<16x128xf32>
    %58 = arith.mulf %57, %57 : vector<16x128xf32>
    %59 = arith.mulf %48, %48 : vector<16x128xf32>
    %60 = arith.mulf %51, %51 : vector<16x128xf32>
    %61 = arith.addf %59, %60 : vector<16x128xf32>
    %62 = arith.mulf %54, %54 : vector<16x128xf32>
    %63 = arith.addf %61, %62 : vector<16x128xf32>
    %64 = arith.subf %58, %63 : vector<16x128xf32>
    %cst_8 = arith.constant 9.99999993E-9 : f32
    %65 = vector.broadcast %cst_8 : f32 to vector<16x128xf32>
    %66 = arith.maximumf %39, %65 : vector<16x128xf32>
    %67 = math.log %66 : vector<16x128xf32>
    %cst_9 = arith.constant 9.99999993E-9 : f32
    %68 = vector.broadcast %cst_9 : f32 to vector<16x128xf32>
    %69 = arith.maximumf %45, %68 : vector<16x128xf32>
    %70 = math.log %69 : vector<16x128xf32>
    %cst_10 = arith.constant 9.99999993E-9 : f32
    %71 = vector.broadcast %cst_10 : f32 to vector<16x128xf32>
    %72 = arith.maximumf %35, %71 : vector<16x128xf32>
    %73 = math.log %72 : vector<16x128xf32>
    %cst_11 = arith.constant 9.99999993E-9 : f32
    %74 = vector.broadcast %cst_11 : f32 to vector<16x128xf32>
    %75 = arith.maximumf %64, %74 : vector<16x128xf32>
    %76 = math.log %75 : vector<16x128xf32>
    %c0_12 = arith.constant 0 : index
    %c0_13 = arith.constant 0 : index
    %77 = vector.load %arg4[%c0_12, %c0_13] : memref<256x32xf32, #tpu.memory_space<vmem>>, vector<256x32xf32>
    %c0_14 = arith.constant 0 : index
    %c0_15 = arith.constant 0 : index
    %78 = vector.load %arg5[%c0_14, %c0_15] : memref<256x256xf32, #tpu.memory_space<vmem>>, vector<256x256xf32>
    %c0_16 = arith.constant 0 : index
    %c0_17 = arith.constant 0 : index
    %79 = vector.load %arg6[%c0_16, %c0_17] : memref<256x256xf32, #tpu.memory_space<vmem>>, vector<256x256xf32>
    %80 = vector.extract_strided_slice %67 {offsets = [0, 0], sizes = [8, 128], strides = [1, 1]} : vector<16x128xf32> to vector<8x128xf32>
    %81 = vector.extract_strided_slice %70 {offsets = [0, 0], sizes = [8, 128], strides = [1, 1]} : vector<16x128xf32> to vector<8x128xf32>
    %82 = vector.extract_strided_slice %73 {offsets = [0, 0], sizes = [8, 128], strides = [1, 1]} : vector<16x128xf32> to vector<8x128xf32>
    %83 = vector.extract_strided_slice %76 {offsets = [0, 0], sizes = [8, 128], strides = [1, 1]} : vector<16x128xf32> to vector<8x128xf32>
    %84 = tpu.concatenate %80, %81, %82, %83 in 0 : vector<8x128xf32>, vector<8x128xf32>, vector<8x128xf32>, vector<8x128xf32> -> vector<32x128xf32>
    %cst_18 = arith.constant dense<0.000000e+00> : vector<256x128xf32>
    %85 = tpu.matmul %77, %84, %cst_18 {dimension_numbers = #tpu.dot_dimension_numbers<[1], [0], [0], [1], [0, 0, 1, 1], [], []>} : vector<256x32xf32>, vector<32x128xf32>, vector<256x128xf32> -> vector<256x128xf32>
    %86 = arith.mulf %85, %85 : vector<256x128xf32>
    %87 = arith.mulf %85, %86 : vector<256x128xf32>
    %cst_19 = arith.constant 4.471500e-02 : f32
    %88 = vector.broadcast %cst_19 : f32 to vector<256x128xf32>
    %89 = arith.mulf %88, %87 : vector<256x128xf32>
    %90 = arith.addf %85, %89 : vector<256x128xf32>
    %cst_20 = arith.constant 0.797884583 : f32
    %91 = vector.broadcast %cst_20 : f32 to vector<256x128xf32>
    %92 = arith.mulf %91, %90 : vector<256x128xf32>
    %93 = math.tanh %92 : vector<256x128xf32>
    %cst_21 = arith.constant 1.000000e+00 : f32
    %94 = vector.broadcast %cst_21 : f32 to vector<256x128xf32>
    %95 = arith.addf %94, %93 : vector<256x128xf32>
    %cst_22 = arith.constant 5.000000e-01 : f32
    %96 = vector.broadcast %cst_22 : f32 to vector<256x128xf32>
    %97 = arith.mulf %96, %95 : vector<256x128xf32>
    %98 = arith.mulf %85, %97 : vector<256x128xf32>
    %cst_23 = arith.constant dense<0.000000e+00> : vector<256x128xf32>
    %99 = tpu.matmul %78, %98, %cst_23 {dimension_numbers = #tpu.dot_dimension_numbers<[1], [0], [0], [1], [0, 0, 1, 1], [], []>} : vector<256x256xf32>, vector<256x128xf32>, vector<256x128xf32> -> vector<256x128xf32>
    %100 = arith.mulf %99, %99 : vector<256x128xf32>
    %101 = arith.mulf %99, %100 : vector<256x128xf32>
    %cst_24 = arith.constant 4.471500e-02 : f32
    %102 = vector.broadcast %cst_24 : f32 to vector<256x128xf32>
    %103 = arith.mulf %102, %101 : vector<256x128xf32>
    %104 = arith.addf %99, %103 : vector<256x128xf32>
    %cst_25 = arith.constant 0.797884583 : f32
    %105 = vector.broadcast %cst_25 : f32 to vector<256x128xf32>
    %106 = arith.mulf %105, %104 : vector<256x128xf32>
    %107 = math.tanh %106 : vector<256x128xf32>
    %cst_26 = arith.constant 1.000000e+00 : f32
    %108 = vector.broadcast %cst_26 : f32 to vector<256x128xf32>
    %109 = arith.addf %108, %107 : vector<256x128xf32>
    %cst_27 = arith.constant 5.000000e-01 : f32
    %110 = vector.broadcast %cst_27 : f32 to vector<256x128xf32>
    %111 = arith.mulf %110, %109 : vector<256x128xf32>
    %112 = arith.mulf %99, %111 : vector<256x128xf32>
    %cst_28 = arith.constant dense<0.000000e+00> : vector<256x128xf32>
    %113 = tpu.matmul %79, %112, %cst_28 {dimension_numbers = #tpu.dot_dimension_numbers<[1], [0], [0], [1], [0, 0, 1, 1], [], []>} : vector<256x256xf32>, vector<256x128xf32>, vector<256x128xf32> -> vector<256x128xf32>
    %114 = vector.shape_cast %113 : vector<256x128xf32> to vector<32x8x128xf32>
    %c0_29 = arith.constant 0 : index
    %c0_30 = arith.constant 0 : index
    %c0_31 = arith.constant 0 : index
    %c0_32 = arith.constant 0 : index
    %115 = vector.load %arg7[%c0_29, %c0_30, %c0_31, %c0_32] : memref<1x32x16x128xf32, #tpu.memory_space<vmem>>, vector<1x32x8x128xf32>
    %116 = vector.shape_cast %115 : vector<1x32x8x128xf32> to vector<32x8x128xf32>
    %117 = vector.shape_cast %114 : vector<32x8x128xf32> to vector<1x32x8x128xf32>
    tpu.vector_store %arg7[%c0_29, %c0_30, %c0_31, %c0_32], %117 {strides = array<i32>} : memref<1x32x16x128xf32, #tpu.memory_space<vmem>>, vector<1x32x8x128xf32>,
    %118 = vector.extract_strided_slice %67 {offsets = [8, 0], sizes = [8, 128], strides = [1, 1]} : vector<16x128xf32> to vector<8x128xf32>
    %119 = vector.extract_strided_slice %70 {offsets = [8, 0], sizes = [8, 128], strides = [1, 1]} : vector<16x128xf32> to vector<8x128xf32>
    %120 = vector.extract_strided_slice %73 {offsets = [8, 0], sizes = [8, 128], strides = [1, 1]} : vector<16x128xf32> to vector<8x128xf32>
    %121 = vector.extract_strided_slice %76 {offsets = [8, 0], sizes = [8, 128], strides = [1, 1]} : vector<16x128xf32> to vector<8x128xf32>
    %122 = tpu.concatenate %118, %119, %120, %121 in 0 : vector<8x128xf32>, vector<8x128xf32>, vector<8x128xf32>, vector<8x128xf32> -> vector<32x128xf32>
    %cst_33 = arith.constant dense<0.000000e+00> : vector<256x128xf32>
    %123 = tpu.matmul %77, %122, %cst_33 {dimension_numbers = #tpu.dot_dimension_numbers<[1], [0], [0], [1], [0, 0, 1, 1], [], []>} : vector<256x32xf32>, vector<32x128xf32>, vector<256x128xf32> -> vector<256x128xf32>
    %124 = arith.mulf %123, %123 : vector<256x128xf32>
    %125 = arith.mulf %123, %124 : vector<256x128xf32>
    %cst_34 = arith.constant 4.471500e-02 : f32
    %126 = vector.broadcast %cst_34 : f32 to vector<256x128xf32>
    %127 = arith.mulf %126, %125 : vector<256x128xf32>
    %128 = arith.addf %123, %127 : vector<256x128xf32>
    %cst_35 = arith.constant 0.797884583 : f32
    %129 = vector.broadcast %cst_35 : f32 to vector<256x128xf32>
    %130 = arith.mulf %129, %128 : vector<256x128xf32>
    %131 = math.tanh %130 : vector<256x128xf32>
    %cst_36 = arith.constant 1.000000e+00 : f32
    %132 = vector.broadcast %cst_36 : f32 to vector<256x128xf32>
    %133 = arith.addf %132, %131 : vector<256x128xf32>
    %cst_37 = arith.constant 5.000000e-01 : f32
    %134 = vector.broadcast %cst_37 : f32 to vector<256x128xf32>
    %135 = arith.mulf %134, %133 : vector<256x128xf32>
    %136 = arith.mulf %123, %135 : vector<256x128xf32>
    %cst_38 = arith.constant dense<0.000000e+00> : vector<256x128xf32>
    %137 = tpu.matmul %78, %136, %cst_38 {dimension_numbers = #tpu.dot_dimension_numbers<[1], [0], [0], [1], [0, 0, 1, 1], [], []>} : vector<256x256xf32>, vector<256x128xf32>, vector<256x128xf32> -> vector<256x128xf32>
    %138 = arith.mulf %137, %137 : vector<256x128xf32>
    %139 = arith.mulf %137, %138 : vector<256x128xf32>
    %cst_39 = arith.constant 4.471500e-02 : f32
    %140 = vector.broadcast %cst_39 : f32 to vector<256x128xf32>
    %141 = arith.mulf %140, %139 : vector<256x128xf32>
    %142 = arith.addf %137, %141 : vector<256x128xf32>
    %cst_40 = arith.constant 0.797884583 : f32
    %143 = vector.broadcast %cst_40 : f32 to vector<256x128xf32>
    %144 = arith.mulf %143, %142 : vector<256x128xf32>
    %145 = math.tanh %144 : vector<256x128xf32>
    %cst_41 = arith.constant 1.000000e+00 : f32
    %146 = vector.broadcast %cst_41 : f32 to vector<256x128xf32>
    %147 = arith.addf %146, %145 : vector<256x128xf32>
    %cst_42 = arith.constant 5.000000e-01 : f32
    %148 = vector.broadcast %cst_42 : f32 to vector<256x128xf32>
    %149 = arith.mulf %148, %147 : vector<256x128xf32>
    %150 = arith.mulf %137, %149 : vector<256x128xf32>
    %cst_43 = arith.constant dense<0.000000e+00> : vector<256x128xf32>
    %151 = tpu.matmul %79, %150, %cst_43 {dimension_numbers = #tpu.dot_dimension_numbers<[1], [0], [0], [1], [0, 0, 1, 1], [], []>} : vector<256x256xf32>, vector<256x128xf32>, vector<256x128xf32> -> vector<256x128xf32>
    %152 = vector.shape_cast %151 : vector<256x128xf32> to vector<32x8x128xf32>
    %c0_44 = arith.constant 0 : index
    %c0_45 = arith.constant 0 : index
    %c8 = arith.constant 8 : index
    %c0_46 = arith.constant 0 : index
    %153 = vector.load %arg7[%c0_44, %c0_45, %c8, %c0_46] : memref<1x32x16x128xf32, #tpu.memory_space<vmem>>, vector<1x32x8x128xf32>
    %154 = vector.shape_cast %153 : vector<1x32x8x128xf32> to vector<32x8x128xf32>
    %155 = vector.shape_cast %152 : vector<32x8x128xf32> to vector<1x32x8x128xf32>
    tpu.vector_store %arg7[%c0_44, %c0_45, %c8, %c0_46], %155 {strides = array<i32>} : memref<1x32x16x128xf32, #tpu.memory_space<vmem>>, vector<1x32x8x128xf32>,
    return
  }
  func.func @transform_0(%arg0: i32, %arg1: i32) -> (i32, i32, i32) {
    %c0_i32 = arith.constant 0 : i32
    %c0_i32_0 = arith.constant 0 : i32
    return %arg0, %arg1, %c0_i32 : i32, i32, i32
  }
  func.func @transform_1(%arg0: i32, %arg1: i32) -> (i32, i32, i32) {
    %c0_i32 = arith.constant 0 : i32
    %c0_i32_0 = arith.constant 0 : i32
    %c0_i32_1 = arith.constant 0 : i32
    return %arg0, %c0_i32, %c0_i32_0 : i32, i32, i32
  }
  func.func @transform_2(%arg0: i32, %arg1: i32) -> (i32, i32) {
    %c0_i32 = arith.constant 0 : i32
    %c0_i32_0 = arith.constant 0 : i32
    %c0_i32_1 = arith.constant 0 : i32
    return %c0_i32, %c0_i32_0 : i32, i32
  }
  func.func @transform_3(%arg0: i32, %arg1: i32) -> (i32, i32) {
    %c0_i32 = arith.constant 0 : i32
    %c0_i32_0 = arith.constant 0 : i32
    %c0_i32_1 = arith.constant 0 : i32
    return %c0_i32, %c0_i32_0 : i32, i32
  }
  func.func @transform_4(%arg0: i32, %arg1: i32) -> (i32, i32) {
    %c0_i32 = arith.constant 0 : i32
    %c0_i32_0 = arith.constant 0 : i32
    %c0_i32_1 = arith.constant 0 : i32
    return %c0_i32, %c0_i32_0 : i32, i32
  }
  func.func @transform_5(%arg0: i32, %arg1: i32) -> (i32, i32, i32, i32) {
    %c0_i32 = arith.constant 0 : i32
    %c0_i32_0 = arith.constant 0 : i32
    %c0_i32_1 = arith.constant 0 : i32
    return %arg0, %c0_i32, %arg1, %c0_i32_0 : i32, i32, i32, i32
  }
}

</mosaic_0001>

<bundles_post_ra>
// kernel: pair_embed_forward.1
= control target key start
LH: loop header
LB: loop body
LE: loop exit
PB: predicated region body
PF: predicated region fallthrough
CT: control target
= control target key end

     0   :  { %s4260_s18 = smov 0   ;;  %s4262_s19 = smov 0   ;;  %s6610_s0 = inlined_call_operand.vmem [shape: f32[2,16,7], index: 0, kind: input, shape index: {}]   ;;  %s6611_s1 = inlined_call_operand.vmem [shape: f32[2,7,128], index: 1, kind: input, shape index: {}]   ;;  %s6612_s2 = inlined_call_operand.vmem [shape: f32[256,32], index: 2, kind: input, shape index: {}]   ;;  %s6613_s3 = inlined_call_operand.vmem [shape: f32[256,256], index: 3, kind: input, shape index: {}]   ;;  %s6614_s4 = inlined_call_operand.vmem [shape: f32[256,256], index: 4, kind: input, shape index: {}]   ;;  %s6615_s5 = inlined_call_operand.vmem [shape: f32[2,32,16,128], index: 5, kind: output, shape index: {}]  }
   0x1   :  { %s4264_s20 = smov 0  }
   0x2 LB: > { %s27_s21 = sadd.s32 1, %s4216_s19  ;;  %p3389_p0 = scmp.ge.s32.totalorder %s4220_s20, 1  ;;  %s4220_s20 = sphi %s4264_s20, %s15_s20   ;;  %s4216_s19 = sphi %s4262_s19, %s6666_s19   ;;  %s4212_s18 = sphi %s4260_s18, %s6665_s18  }
   0x3   : > { %p29_p1 = scmp.ge.s32.totalorder %s27_s21, 2  ;;  %p217_p2 = scmp.lt.s32.totalorder %s4220_s20, 3 }
   0x5   : > { %s6668_s21 = smov (%p29_p1, %s27_s21), 0  ;;  %p218_p3 = pnand %p3389_p0, %p217_p2 }
   0x7   : > { %221 = sbr.rel (%p218_p3) target bundleno = 1689 (0x699), region = 40 }
   0xc   : > { %p258_p4 = scmp.lt.s32.totalorder %s4212_s18, 1  ;;  %v4222_v0 = vmov 4   ;;  %v4223_v1 = vmov 6   ;;  %v4224_v3 = vmov 0   ;;  %v4225_v4 = vmov 5   ;;  %v463_v8 = vld [vmem:[%s6612_s2] sm:$0xff] }
   0xd   : > { %3745 = vset.pattern.permute.xlu1 %v4222_v0  ;;  %3743 = vset.pattern.permute.xlu0 %v4223_v1  ;;  %v4226_v5 = vmov 1   ;;  %v4227_v6 = vmov 2   ;;  %v4228_v7 = vmov 3   ;;  %vm623_vm0 = vcmask 261120  }
   0xe   : > { %s6670_s18 = smov (!%p258_p4, %s4212_s18), 1  ;;  %3543 = vmatprep.mubr.msk.f32.mxu0 %vm623_vm0, %v463_v8  ;;  %v294_v9 = vlaneseq }
   0xf   : > { %s3461_s22 = sshll.u32 %s6670_s18, 4  ;;  %s3392_s28 = sshll.u32 %s6670_s18, 3 }
  0x10   : > { %s265_s25 = scalar_lea.vmem %s6610_s0, %s3461_s22  ;;  %v295_v10 = vshrl.u32 %v294_v9, 7  ;;  %s270_s6 = scalar_lea.vmem %s6611_s1, %s3392_s28 }
  0x11   : > { %v281_v2 = vld [vmem:[%s265_s25] sm:$0xff]  ;;  %v282_v11 = vld [vmem:[%s265_s25 + $0x8] sm:$0xff]  ;;  %s3462_s12 = sshll.u32 %s6670_s18, 9 }
  0x12   : > { %346 = vperm.xlu1 %3745, %v281_v2   ;;  %286 = vperm.xlu0 %3743, %v281_v2   ;;  %v296_v12 = vsub.s32 6, %v295_v10  ;;  %v283_v13 = vld [vmem:[%s270_s6] sm:$0x7f]  ;;  %v355_v14 = vsub.s32 4, %v295_v10  ;;  %v321_v16 = vsub.s32 5, %v295_v10  ;;  %v379_v17 = vsub.s32 0, %v295_v10  ;;  %s5967_s23 = scalar_lea.vmem %s6615_s5, %s3462_s12 }
  0x13   : > { %v393_v25 = vsub.s32 1, %v295_v10  ;;  %v407_v26 = vsub.s32 2, %v295_v10  ;;  %v421_v37 = vsub.s32 3, %v295_v10 }
  0x14   : > { %v4292_v15 = vrot.slane %v283_v13, %v296_v12  ;;  %v4294_v18 = vrot.slane %v283_v13, %v355_v14  ;;  %v4297_v22 = vrot.slane %v283_v13, %v321_v16  ;;  %v4299_v24 = vrot.slane %v283_v13, %v379_v17  ;;  %v464_v14 = vld [vmem:[%s6612_s2 + $0x8] sm:$0xff]  ;;  %v465_v16 = vld [vmem:[%s6612_s2 + $0x10] sm:$0xff]  ;;  %v466_v17 = vld [vmem:[%s6612_s2 + $0x18] sm:$0xff] }
  0x15   : > { %v4304_v34 = vrot.slane %v283_v13, %v393_v25  ;;  %v4306_v35 = vrot.slane %v283_v13, %v407_v26  ;;  %v4310_v46 = vrot.slane %v283_v13, %v421_v37  ;;  %v471_v25 = vld [vmem:[%s6612_s2 + $0x40] sm:$0xff]  ;;  %v472_v26 = vld [vmem:[%s6612_s2 + $0x48] sm:$0xff]  ;;  %v481_v37 = vld [vmem:[%s6612_s2 + $0x90] sm:$0xff] }
  0x16   : > { %3746 = vset.pattern.permute.xlu1 %v4224_v3  ;;  %3744 = vset.pattern.permute.xlu0 %v4225_v4  ;;  %6631 = vst [vmem:[#allocation2_spill] sm:$0xff] %v4294_v18 }
  0x17   : > { %370 = vperm.xlu1 %3746, %v281_v2   ;;  %312 = vperm.xlu0 %3744, %v281_v2   ;;  %6632 = vst [vmem:[#allocation3_spill] sm:$0xff] %v4306_v35  ;;  %6633 = vst [vmem:[#allocation4_spill] sm:$0xff] %v4310_v46 }
  0x1b   : > { %3747 = vset.pattern.permute.xlu1 %v4226_v5  ;;  %3748 = vset.pattern.permute.xlu0 %v4227_v6 }
  0x1c   : > { %384 = vperm.xlu1 %3747, %v281_v2   ;;  %398 = vperm.xlu0 %3748, %v281_v2  }
  0x20   : > { %3749 = vset.pattern.permute.xlu1 %v4228_v7  ;;  %3751 = vset.pattern.permute.xlu0 %v4225_v4 }
  0x21   : > { %412 = vperm.xlu1 %3749, %v281_v2   ;;  %316 = vperm.xlu0 %3751, %v282_v11  }
  0x25   : > { %3750 = vset.pattern.permute.xlu1 %v4223_v1  ;;  %3754 = vset.pattern.permute.xlu0 %v4226_v5 }
  0x26   : > { %291 = vperm.xlu1 %3750, %v282_v11   ;;  %388 = vperm.xlu0 %3754, %v282_v11  }
  0x2a   : > { %3752 = vset.pattern.permute.xlu1 %v4222_v0  ;;  %3757 = vset.pattern.permute.xlu0 %v4228_v7 }
  0x2b   : > { %350 = vperm.xlu1 %3752, %v282_v11  }
  0x2f   : > { %3753 = vset.pattern.permute.xlu1 %v4224_v3 }
  0x30   : > { %374 = vperm.xlu1 %3753, %v282_v11  }
  0x34   : > { %3755 = vset.pattern.permute.xlu1 %v4227_v6 }
  0x35   : > { %402 = vperm.xlu1 %3755, %v282_v11  }
  0x39   : > { %3756 = vset.pattern.permute.xlu1 %v4228_v7 }
  0x3a   : > { %416 = vperm.xlu1 %3756, %v282_v11  }
  0x8d   : > { %v287_v19 = vpop.permute.xlu0 %286  ;;  %v347_v20 = vpop.permute.xlu1 %346 }
  0x8e   : > { %v298_v21 = vsub.f32 %v287_v19, %v4292_v15  ;;  %v361_v27 = vadd.f32 %v4294_v18, %v347_v20  ;;  %v357_v59 = vmin.f32 %v347_v20, %v4294_v18  ;;  %v467_v19 = vld [vmem:[%s6612_s2 + $0x20] sm:$0xff]  ;;  %v468_v20 = vld [vmem:[%s6612_s2 + $0x28] sm:$0xff] }
  0x90   : > { %v300_v23 = vadd.f32 3.1415927, %v298_v21  ;;  %v363_v36 = vmax.f32 %v361_v27, 1e-08  ;;  %v473_v27 = vld [vmem:[%s6612_s2 + $0x50] sm:$0xff] }
  0x92   : > { %v303_v28 = vmul.f32 0.15915494, %v300_v23  ;;  %v313_v29 = vpop.permute.xlu0 %312  ;;  %v371_v30 = vpop.permute.xlu1 %370  ;;  %3758 = vrcp.f32 %v363_v36  ;;  %v470_v23 = vld [vmem:[%s6612_s2 + $0x38] sm:$0xff]  ;;  %v480_v36 = vld [vmem:[%s6612_s2 + $0x88] sm:$0xff] }
  0x93   : > { %v323_v31 = vsub.f32 %v313_v29, %v4297_v22  ;;  %v381_v33 = vadd.f32 %v4299_v24, %v371_v30  ;;  %v475_v29 = vld [vmem:[%s6612_s2 + $0x60] sm:$0xff]  ;;  %v476_v30 = vld [vmem:[%s6612_s2 + $0x68] sm:$0xff] }
  0x94   : > { %v305_v32 = vfloor.f32 %v303_v28  ;;  %v474_v28 = vld [vmem:[%s6612_s2 + $0x58] sm:$0xff] }
  0x95   : > { %v325_v39 = vmul.f32 %v323_v31, %v323_v31  ;;  %v427_v43 = vmul.f32 %v381_v33, %v381_v33  ;;  %v477_v31 = vld [vmem:[%s6612_s2 + $0x70] sm:$0xff]  ;;  %v479_v33 = vld [vmem:[%s6612_s2 + $0x80] sm:$0xff] }
  0x96   : > { %v307_v38 = vmul.f32 6.2831855, %v305_v32  ;;  %v478_v32 = vld [vmem:[%s6612_s2 + $0x78] sm:$0xff] }
  0x97   : > { %v385_v40 = vpop.permute.xlu1 %384  ;;  %v399_v41 = vpop.permute.xlu0 %398 }
  0x98   : > { %v309_v42 = vsub.f32 %v298_v21, %v307_v38  ;;  %v395_v44 = vadd.f32 %v4304_v34, %v385_v40  ;;  %v409_v45 = vadd.f32 %v4306_v35, %v399_v41  ;;  %v469_v21 = vld [vmem:[%s6612_s2 + $0x30] sm:$0xff]  ;;  %v482_v38 = vld [vmem:[%s6612_s2 + $0x98] sm:$0xff]  ;;  %v484_v40 = vld [vmem:[%s6612_s2 + $0xa8] sm:$0xff] }
  0x99   : > { %v485_v41 = vld [vmem:[%s6612_s2 + $0xb0] sm:$0xff] }
  0x9a   : > { %v327_v47 = vmul.f32 %v309_v42, %v309_v42  ;;  %v429_v48 = vmul.f32 %v395_v44, %v395_v44  ;;  %v433_v49 = vmul.f32 %v409_v45, %v409_v45  ;;  %v486_v42 = vld [vmem:[%s6612_s2 + $0xb8] sm:$0xff]  ;;  %v488_v44 = vld [vmem:[%s6612_s2 + $0xc8] sm:$0xff]  ;;  %v489_v45 = vld [vmem:[%s6612_s2 + $0xd0] sm:$0xff] }
  0x9c   : > { %v329_v50 = vadd.f32 %v327_v47, %v325_v39  ;;  %v431_v51 = vadd.f32 %v429_v48, %v427_v43  ;;  %v413_v52 = vpop.permute.xlu1 %412  ;;  %v483_v39 = vld [vmem:[%s6612_s2 + $0xa0] sm:$0xff]  ;;  %v490_v47 = vld [vmem:[%s6612_s2 + $0xd8] sm:$0xff] }
  0x9d   : > { %v423_v53 = vadd.f32 %v4310_v46, %v413_v52  ;;  %v487_v43 = vld [vmem:[%s6612_s2 + $0xc0] sm:$0xff]  ;;  %v6616_v52 = vmov 0.0  }
  0x9e   : > { %3760 = vrsqrt.f32 %v329_v50  ;;  %v435_v54 = vadd.f32 %v433_v49, %v431_v51  ;;  %vm333_vm1 = vcmp.eq.f32.partialorder %v329_v50, inf  ;;  %v336_v0 = vand.u32 2147483648, %v329_v50  ;;  %v491_v48 = vld [vmem:[%s6612_s2 + $0xe0] sm:$0xff]  ;;  %v492_v49 = vld [vmem:[%s6612_s2 + $0xe8] sm:$0xff]  ;;  %v494_v51 = vld [vmem:[%s6612_s2 + $0xf8] sm:$0xff]  ;;  %1233 = vmatprep.subr.mxu1 %v6616_v52 }
  0x9f   : > { %v425_v55 = vmul.f32 %v423_v53, %v423_v53  ;;  %v3759_v58 = vpop.eup %3758  ;;  %vm335_vm2 = vcmp.eq.f32.partialorder %v329_v50, 0.0  ;;  %v496_v53 = vld [vmem:[%s6613_s3 + $0x8] sm:$0xff] }
  0xa0   : > { %v366_v60 = vmul.f32 %v3759_v58, %v357_v59  ;;  %1297 = vmatprep.mubr.f32.mxu1 %v496_v53 }
  0xa1   : > { %v437_v56 = vsub.f32 %v425_v55, %v435_v54 }
  0xa2   : > { %v445_v63 = vmax.f32 %v366_v60, 1e-08 }
  0xa3   : > { %v457_v57 = vmax.f32 %v437_v56, 1e-08 }
  0xa5   : > { %3762 = vlog2.f32 %v457_v57 }
  0xa6   : > { %3764 = vlog2.f32 %v445_v63 }
  0xab   : > { %v3761_v61 = vpop.eup %3760 }
  0xac   : > { %v332_v62 = vmul.f32 %v3761_v61, %v329_v50 }
  0xae   : > { %v334_v1 = vsel %vm333_vm1, %v329_v50, %v332_v62  ;;  %v493_v50 = vld [vmem:[%s6612_s2 + $0xf0] sm:$0xff] }
  0xaf   : > { %v337_v2 = vsel %vm335_vm2, %v336_v0, %v334_v1  ;;  %v292_v0 = vpop.permute.xlu1 %291 }
  0xb0   : > { %v451_v3 = vmax.f32 %v337_v2, 1e-08  ;;  %v359_v4 = vmul.f32 %v357_v59, %v337_v2 }
  0xb2   : > { %v3763_v5 = vpop.eup %3762  ;;  %3766 = vlog2.f32 %v451_v3  ;;  %v439_v6 = vmax.f32 %v359_v4, 1e-08 }
  0xb3   : > { %v460_v7 = vmul.f32 0.6931472, %v3763_v5  ;;  %v3765_v8 = vpop.eup %3764 }
  0xb4   : > { %3768 = vlog2.f32 %v439_v6  ;;  %v448_v12 = vmul.f32 0.6931472, %v3765_v8 }
  0xb5   : > { %3535 = vmatprep.subr.mxu0 %v460_v7 }
  0xb6   : > { %3536 = vmatpush3.msra.mxu0 %v460_v7  ;;  %v4471_v7 = vsub.f32 %v292_v0, %v4292_v15 }
  0xbf   : > { %v3767_v9 = vpop.eup %3766 }
  0xc0   : > { %v454_v10 = vmul.f32 0.6931472, %v3767_v9 }
  0xc1   : > { %v3769_v11 = vpop.eup %3768 }
  0xc2   : > { %3537 = vmatprep.subr.mxu0 %v454_v10  ;;  %v442_v13 = vmul.f32 0.6931472, %v3769_v11 }
  0xc3   : > { %3538 = vmatpush3.msra.mxu0 %v454_v10 }
  0xc4   : > { %3539 = vmatprep.subr.mxu0 %v448_v12 }
  0xc5   : > { %3540 = vmatpush3.msra.mxu0 %v448_v12 }
  0xc6   : > { %3541 = vmatprep.subr.mxu0 %v442_v13 }
  0xc7   : > { %3542 = vmatpush3.msra.mxu0 %v442_v13 }
  0xc8   : > { %3544 = vmatmul.mubr.msk.f32.vlgmr.msra.gmra.mxu0 %vm623_vm0, %v464_v14  ;;  %1746 = vmatprep.subr.mxu0 %v6616_v52 }
  0xc9   : > { %3546 = vmatprep.mubr.msk.f32.mxu0 %vm623_vm0, %v465_v16 }
  0xcc   : > { %3547 = vmatmul.mubr.msk.f32.gmra.mxu0 %vm623_vm0, %v466_v17 }
  0xcd   : > { %3549 = vmatprep.mubr.msk.f32.mxu0 %vm623_vm0, %v467_v19  ;;  %v301_v19 = vadd.f32 3.1415927, %v4471_v7 }
  0xd0   : > { %3550 = vmatmul.mubr.msk.f32.gmra.mxu0 %vm623_vm0, %v468_v20 }
  0xd1   : > { %3552 = vmatprep.mubr.msk.f32.mxu0 %vm623_vm0, %v469_v21 }
  0xd4   : > { %3553 = vmatmul.mubr.msk.f32.gmra.mxu0 %vm623_vm0, %v470_v23 }
  0xd5   : > { %3555 = vmatprep.mubr.msk.f32.mxu0 %vm623_vm0, %v471_v25 }
  0xd8   : > { %3556 = vmatmul.mubr.msk.f32.gmra.mxu0 %vm623_vm0, %v472_v26 }
  0xd9   : > { %3558 = vmatprep.mubr.msk.f32.mxu0 %vm623_vm0, %v473_v27 }
  0xdc   : > { %3559 = vmatmul.mubr.msk.f32.gmra.mxu0 %vm623_vm0, %v474_v28 }
  0xdd   : > { %3561 = vmatprep.mubr.msk.f32.mxu0 %vm623_vm0, %v475_v29 }
  0xe0   : > { %3562 = vmatmul.mubr.msk.f32.gmra.mxu0 %vm623_vm0, %v476_v30 }
  0xe1   : > { %3564 = vmatprep.mubr.msk.f32.mxu0 %vm623_vm0, %v477_v31 }
  0xe4   : > { %3565 = vmatmul.mubr.msk.f32.gmra.mxu0 %vm623_vm0, %v478_v32 }
  0xe5   : > { %3567 = vmatprep.mubr.msk.f32.mxu0 %vm623_vm0, %v479_v33  ;;  %v304_v33 = vmul.f32 0.15915494, %v301_v19 }
  0xe8   : > { %3568 = vmatmul.mubr.msk.f32.gmra.mxu0 %vm623_vm0, %v480_v36 }
  0xe9   : > { %3570 = vmatprep.mubr.msk.f32.mxu0 %vm623_vm0, %v481_v37 }
  0xec   : > { %3571 = vmatmul.mubr.msk.f32.gmra.mxu0 %vm623_vm0, %v482_v38 }
  0xed   : > { %3573 = vmatprep.mubr.msk.f32.mxu0 %vm623_vm0, %v483_v39 }
  0xf0   : > { %3574 = vmatmul.mubr.msk.f32.gmra.mxu0 %vm623_vm0, %v484_v40 }
  0xf1   : > { %3576 = vmatprep.mubr.msk.f32.mxu0 %vm623_vm0, %v485_v41 }
  0xf4   : > { %3577 = vmatmul.mubr.msk.f32.gmra.mxu0 %vm623_vm0, %v486_v42 }
  0xf5   : > { %3579 = vmatprep.mubr.msk.f32.mxu0 %vm623_vm0, %v487_v43 }
  0xf8   : > { %3580 = vmatmul.mubr.msk.f32.gmra.mxu0 %vm623_vm0, %v488_v44 }
  0xf9   : > { %3582 = vmatprep.mubr.msk.f32.mxu0 %vm623_vm0, %v489_v45 }
  0xfc   : > { %3583 = vmatmul.mubr.msk.f32.gmra.mxu0 %vm623_vm0, %v490_v47 }
  0xfd   : > { %3585 = vmatprep.mubr.msk.f32.mxu0 %vm623_vm0, %v491_v48 }
 0x100   : > { %3586 = vmatmul.mubr.msk.f32.gmra.mxu0 %vm623_vm0, %v492_v49 }
 0x101   : > { %3588 = vmatprep.mubr.msk.f32.mxu0 %vm623_vm0, %v493_v50  ;;  %v306_v50 = vfloor.f32 %v304_v33 }
 0x104   : > { %3589 = vmatmul.mubr.msk.f32.gmra.mxu0 %vm623_vm0, %v494_v51 }
 0x188   : > { %v4443_v54 = vpop.f32.mrf.mxu0 }
 0x189   : > { %6634 = vst [vmem:[#allocation5_spill] sm:$0xff] %v4443_v54 }
 0x18a   : > { %v4445_v55 = vpop.f32.mrf.mxu0 }
 0x18b   : > { %6635 = vst [vmem:[#allocation6_spill] sm:$0xff] %v4445_v55 }
 0x18c   : > { %v4447_v56 = vpop.f32.mrf.mxu0 }
 0x18d   : > { %6636 = vst [vmem:[#allocation7_spill] sm:$0xff] %v4447_v56  ;;  %v948_v57 = vmul.f32 %v4447_v56, %v4447_v56 }
 0x18e   : > { %v4451_v58 = vpop.f32.mrf.mxu0 }
 0x18f   : > { %6637 = vst [vmem:[#allocation8_spill] sm:$0xff] %v4451_v58  ;;  %v947_v59 = vmul.f32 %v4451_v58, %v4451_v58  ;;  %v980_v61 = vmul.f32 %v4447_v56, %v948_v57 }
 0x190   : > { %v4455_v60 = vpop.f32.mrf.mxu0 }
 0x191   : > { %v950_v62 = vmul.f32 %v4455_v60, %v4455_v60  ;;  %v979_v1 = vmul.f32 %v947_v59, %v4451_v58  ;;  %v1012_v5 = vmul.f32 0.044715, %v980_v61 }
 0x192   : > { %v4460_v63 = vpop.f32.mrf.mxu0 }
 0x193   : > { %6638 = vst [vmem:[#allocation9_spill] sm:$0xff] %v4460_v63  ;;  %v982_v2 = vmul.f32 %v4455_v60, %v950_v62  ;;  %v949_v3 = vmul.f32 %v4460_v63, %v4460_v63  ;;  %v1011_v10 = vmul.f32 0.044715, %v979_v1  ;;  %v1044_v16 = vadd.f32 %v4447_v56, %v1012_v5 }
 0x194   : > { %v4466_v4 = vpop.f32.mrf.mxu0  ;;  %v946_v62 = vmul.f32 %v4443_v54, %v4443_v54 }
 0x195   : > { %v952_v6 = vmul.f32 %v4466_v4, %v4466_v4  ;;  %v981_v8 = vmul.f32 %v949_v3, %v4460_v63  ;;  %v1014_v11 = vmul.f32 0.044715, %v982_v2  ;;  %v1043_v23 = vadd.f32 %v1011_v10, %v4451_v58 }
 0x196   : > { %v4474_v9 = vpop.f32.mrf.mxu0  ;;  %v1076_v30 = vmul.f32 0.7978846, %v1044_v16  ;;  %v945_v2 = vmul.f32 %v4445_v55, %v4445_v55 }
 0x197   : > { %v951_v12 = vmul.f32 %v4474_v9, %v4474_v9  ;;  %v984_v13 = vmul.f32 %v4466_v4, %v952_v6  ;;  %v1013_v17 = vmul.f32 0.044715, %v981_v8  ;;  %v1046_v25 = vadd.f32 %v4455_v60, %v1014_v11 }
 0x198   : > { %v4479_v14 = vpop.f32.mrf.mxu0  ;;  %v1075_v40 = vmul.f32 0.7978846, %v1043_v23  ;;  %3770 = vtanh.f32 %v1076_v30 }
 0x199   : > { %v954_v15 = vmul.f32 %v4479_v14, %v4479_v14  ;;  %v983_v20 = vmul.f32 %v951_v12, %v4474_v9  ;;  %v1016_v28 = vmul.f32 0.044715, %v984_v13  ;;  %v1045_v31 = vadd.f32 %v1013_v17, %v4460_v63 }
 0x19a   : > { %v4486_v21 = vpop.f32.mrf.mxu0  ;;  %v1078_v41 = vmul.f32 0.7978846, %v1046_v25  ;;  %3772 = vtanh.f32 %v1075_v40 }
 0x19b   : > { %v986_v26 = vmul.f32 %v4479_v14, %v954_v15  ;;  %v953_v27 = vmul.f32 %v4486_v21, %v4486_v21  ;;  %v1015_v36 = vmul.f32 0.044715, %v983_v20  ;;  %v1048_v42 = vadd.f32 %v4466_v4, %v1016_v28 }
 0x19c   : > { %v4493_v29 = vpop.f32.mrf.mxu0  ;;  %v1077_v48 = vmul.f32 0.7978846, %v1045_v31  ;;  %3774 = vtanh.f32 %v1078_v41  ;;  %v308_v28 = vmul.f32 6.2831855, %v306_v50  ;;  %v317_v41 = vpop.permute.xlu0 %316 }
 0x19d   : > { %v985_v32 = vmul.f32 %v953_v27, %v4486_v21  ;;  %v1018_v37 = vmul.f32 0.044715, %v986_v26  ;;  %v956_v38 = vmul.f32 %v4493_v29, %v4493_v29  ;;  %v1047_v51 = vadd.f32 %v1015_v36, %v4474_v9 }
 0x19e   : > { %v4499_v39 = vpop.f32.mrf.mxu0  ;;  %v1080_v3 = vmul.f32 0.7978846, %v1048_v42  ;;  %3776 = vtanh.f32 %v1077_v48  ;;  %v978_v36 = vmul.f32 %v4443_v54, %v946_v62 }
 0x19f   : > { %v1017_v43 = vmul.f32 0.044715, %v985_v32  ;;  %v988_v44 = vmul.f32 %v4493_v29, %v956_v38  ;;  %v955_v45 = vmul.f32 %v4499_v39, %v4499_v39  ;;  %v1050_v53 = vadd.f32 %v4479_v14, %v1018_v37 }
 0x1a0   : > { %v4505_v47 = vpop.f32.mrf.mxu0  ;;  %v1079_v12 = vmul.f32 0.7978846, %v1047_v51  ;;  %3778 = vtanh.f32 %v1080_v3  ;;  %v977_v37 = vmul.f32 %v945_v2, %v4445_v55 }
 0x1a1   : > { %v958_v49 = vmul.f32 %v4505_v47, %v4505_v47  ;;  %v1020_v57 = vmul.f32 0.044715, %v988_v44  ;;  %v987_v59 = vmul.f32 %v955_v45, %v4499_v39  ;;  %v1049_v5 = vadd.f32 %v1017_v43, %v4486_v21 }
 0x1a2   : > { %v4512_v61 = vpop.f32.mrf.mxu0  ;;  %v1082_v13 = vmul.f32 0.7978846, %v1050_v53  ;;  %3780 = vtanh.f32 %v1079_v12  ;;  %v324_v53 = vsub.f32 %v317_v41, %v4297_v22 }
 0x1a3   : > { %v990_v0 = vmul.f32 %v4505_v47, %v958_v49  ;;  %v957_v1 = vmul.f32 %v4512_v61, %v4512_v61  ;;  %v1052_v16 = vadd.f32 %v4493_v29, %v1020_v57  ;;  %v1019_v17 = vmul.f32 0.044715, %v987_v59 }
 0x1a4   : > { %v4522_v6 = vpop.f32.mrf.mxu0  ;;  %v1081_v26 = vmul.f32 0.7978846, %v1049_v5  ;;  %3782 = vtanh.f32 %v1082_v13  ;;  %v310_v49 = vsub.f32 %v4471_v7, %v308_v28  ;;  %v1010_v59 = vmul.f32 0.044715, %v978_v36 }
 0x1a5   : > { %v1022_v8 = vmul.f32 0.044715, %v990_v0  ;;  %v989_v10 = vmul.f32 %v957_v1, %v4512_v61  ;;  %v960_v11 = vmul.f32 %v4522_v6, %v4522_v6  ;;  %v1084_v38 = vmul.f32 0.7978846, %v1052_v16  ;;  %v3771_v57 = vpop.eup %3770 }
 0x1a6   : > { %v4528_v15 = vpop.f32.mrf.mxu0  ;;  %v1051_v42 = vadd.f32 %v1019_v17, %v4499_v39  ;;  %3784 = vtanh.f32 %v1081_v26  ;;  %v1009_v0 = vmul.f32 0.044715, %v977_v37  ;;  %v1042_v22 = vadd.f32 %v4443_v54, %v1010_v59  ;;  %v4559_v17 = vpop.permute.xlu1 %350 }
 0x1a7   : > { %v1054_v19 = vadd.f32 %v4505_v47, %v1022_v8  ;;  %v1021_v20 = vmul.f32 0.044715, %v989_v10  ;;  %v992_v23 = vmul.f32 %v4522_v6, %v960_v11  ;;  %v959_v25 = vmul.f32 %v4528_v15, %v4528_v15  ;;  %v3773_v3 = vpop.eup %3772  ;;  %6639 = vst [vmem:[#allocation10_spill] sm:$0xff] %v4559_v17 }
 0x1a8   : > { %v4534_v27 = vpop.f32.mrf.mxu0  ;;  %v1083_v1 = vmul.f32 0.7978846, %v1051_v42  ;;  %v328_v8 = vmul.f32 %v310_v49, %v310_v49  ;;  %v326_v10 = vmul.f32 %v324_v53, %v324_v53  ;;  %v1041_v13 = vadd.f32 %v1009_v0, %v4445_v55 }
 0x1a9   : > { %v1086_v30 = vmul.f32 0.7978846, %v1054_v19  ;;  %v1053_v31 = vadd.f32 %v1021_v20, %v4512_v61  ;;  %v1024_v32 = vmul.f32 0.044715, %v992_v23  ;;  %v991_v33 = vmul.f32 %v959_v25, %v4528_v15  ;;  %v3775_v7 = vpop.eup %3774 }
 0x1aa   : > { %v4540_v40 = vpop.f32.mrf.mxu0  ;;  %v4561_v20 = vadd.f32 %v328_v8, %v326_v10  ;;  %v1074_v23 = vmul.f32 0.7978846, %v1042_v22  ;;  %v4567_v26 = vadd.f32 %v4294_v18, %v4559_v17  ;;  %v4585_v53 = vmul.f32 %v4534_v27, %v4534_v27 }
 0x1ab   : > { %v1056_v43 = vadd.f32 %v4522_v6, %v1024_v32  ;;  %v1023_v44 = vmul.f32 0.044715, %v991_v33  ;;  %v1085_v45 = vmul.f32 0.7978846, %v1053_v31  ;;  %3786 = vtanh.f32 %v1086_v30  ;;  %v3777_v11 = vpop.eup %3776  ;;  %v389_v33 = vpop.permute.xlu0 %388 }
 0x1ac   : > { %v4544_v48 = vpop.f32.mrf.mxu0  ;;  %3788 = vtanh.f32 %v1084_v38  ;;  %6640 = vst [vmem:[#allocation11_spill] sm:$0xff] %v4561_v20  ;;  %6641 = vst [vmem:[#allocation12_spill] sm:$0xff] %v4567_v26  ;;  %v1073_v30 = vmul.f32 0.7978846, %v1041_v13  ;;  %v4599_v22 = vadd.f32 1.0, %v3777_v11 }
 0x1ad   : > { %v1088_v50 = vmul.f32 0.7978846, %v1056_v43  ;;  %v1055_v51 = vadd.f32 %v1023_v44, %v4528_v15  ;;  %v3779_v19 = vpop.eup %3778  ;;  %v375_v43 = vpop.permute.xlu1 %374 }
 0x1ae   : > { %v4549_v62 = vpop.f32.mrf.mxu0  ;;  %v1144_v41 = vadd.f32 1.0, %v3779_v19  ;;  %v4578_v49 = vadd.f32 %v4299_v24, %v375_v43  ;;  %v4595_v24 = vmul.f32 %v4544_v48, %v4544_v48 }
 0x1af   : > { %3790 = vtanh.f32 %v1088_v50  ;;  %v1087_v2 = vmul.f32 0.7978846, %v1055_v51  ;;  %v3781_v28 = vpop.eup %3780  ;;  %v4581_v50 = vadd.f32 %v4304_v34, %v389_v33  ;;  %v4597_v34 = vadd.f32 1.0, %v3775_v7 }
 0x1b0   : > { %3792 = vtanh.f32 %v1085_v45  ;;  %v4551_v5 = vpop.f32.mrf.mxu0  ;;  %6642 = vst [vmem:[#allocation13_spill] sm:$0xff] %v4578_v49  ;;  %v4603_v19 = vmul.f32 %v4549_v62, %v4549_v62  ;;  %v4620_v33 = vadd.f32 1.0, %v3781_v28 }
 0x1b1   : > { %3794 = vtanh.f32 %v1087_v2  ;;  %v3783_v31 = vpop.eup %3782  ;;  %v966_v45 = vmul.f32 %v4551_v5, %v4551_v5  ;;  %6643 = vst [vmem:[#allocation14_spill] sm:$0xff] %v4581_v50  ;;  %v4591_v2 = vadd.f32 1.0, %v3773_v3 }
 0x1b2   : > { %v4554_v12 = vpop.f32.mrf.mxu0  ;;  %3796 = vtanh.f32 %v1083_v1  ;;  %v1146_v0 = vadd.f32 1.0, %v3783_v31  ;;  %v4589_v1 = vadd.f32 1.0, %v3771_v57 }
 0x1b3   : > { %v3785_v36 = vpop.eup %3784  ;;  %3798 = vrsqrt.f32 %v4561_v20  ;;  %6644 = vst [vmem:[#allocation15_spill] sm:$0xff] %v4591_v2  ;;  %v4612_v31 = vmul.f32 %v4551_v5, %v966_v45  ;;  %v4616_v7 = vmul.f32 %v4554_v12, %v4554_v12 }
 0x1b4   : > { %v4557_v16 = vpop.f32.mrf.mxu0  ;;  %3800 = vtanh.f32 %v1074_v23  ;;  %v1145_v20 = vadd.f32 1.0, %v3785_v36 }
 0x1b5   : > { %3802 = vtanh.f32 %v1073_v30  ;;  %v4609_v30 = vmul.f32 0.5, %v1144_v41  ;;  %v4624_v41 = vmul.f32 0.5, %v1146_v0  ;;  %v968_v0 = vmul.f32 %v4557_v16, %v4557_v16 }
 0x1b6   : > { %v4563_v25 = vpop.f32.mrf.mxu0 }
 0x1b8   : > { %v4569_v32 = vpop.f32.mrf.mxu0  ;;  %v3787_v37 = vpop.eup %3786 }
 0x1b9   : > { %v3789_v44 = vpop.eup %3788  ;;  %v1150_v10 = vadd.f32 1.0, %v3787_v37  ;;  %v970_v45 = vmul.f32 %v4569_v32, %v4569_v32 }
 0x1ba   : > { %v4572_v38 = vpop.f32.mrf.mxu0  ;;  %v1148_v18 = vadd.f32 1.0, %v3789_v44 }
 0x1bb   : > { %v1182_v17 = vmul.f32 0.5, %v1150_v10  ;;  %v1002_v58 = vmul.f32 %v4569_v32, %v970_v45 }
 0x1bc   : > { %v3791_v51 = vpop.eup %3790  ;;  %v4587_v59 = vpop.f32.mrf.mxu0 }
 0x1bd   : > { %v3793_v8 = vpop.eup %3792  ;;  %v972_v57 = vmul.f32 %v4587_v59, %v4587_v59  ;;  %v1152_v23 = vadd.f32 1.0, %v3791_v51 }
 0x1be   : > { %v3795_v13 = vpop.eup %3794  ;;  %v4607_v3 = vpop.f32.mrf.mxu0  ;;  %v1149_v51 = vadd.f32 1.0, %v3793_v8  ;;  %v969_v8 = vmul.f32 %v4572_v38, %v4572_v38 }
 0x1bf   : > { %v971_v11 = vmul.f32 %v4607_v3, %v4607_v3  ;;  %v3797_v37 = vpop.eup %3796  ;;  %v1184_v42 = vmul.f32 0.5, %v1152_v23  ;;  %v1151_v52 = vadd.f32 1.0, %v3795_v13  ;;  %v1004_v55 = vmul.f32 %v4587_v59, %v972_v57 }
 0x1c0   : > { %v4622_v43 = vpop.f32.mrf.mxu0  ;;  %v1147_v44 = vadd.f32 1.0, %v3797_v37  ;;  %v6645_v37 = vmov 0.0   ;;  %v4651_v50 = vpop.eup %3798  ;;  %v1001_v45 = vmul.f32 %v969_v8, %v4572_v38 }
 0x1c1   : > { %v974_v28 = vmul.f32 %v4622_v43, %v4622_v43  ;;  %v1216_v54 = vmul.f32 %v4522_v6, %v1184_v42  ;;  %v1183_v23 = vmul.f32 0.5, %v1151_v52  ;;  %v1003_v10 = vmul.f32 %v971_v11, %v4607_v3  ;;  %6646 = vst [vmem:[#allocation16_spill] sm:$0xff] %v4651_v50 }
 0x1c2   : > { %v4631_v46 = vpop.f32.mrf.mxu0  ;;  %v1181_v52 = vmul.f32 0.5, %v1149_v51  ;;  %v967_v42 = vmul.f32 %v4563_v25, %v4563_v25  ;;  %v1036_v49 = vmul.f32 0.044715, %v1004_v55  ;;  %v1214_v51 = vmul.f32 %v4505_v47, %v1182_v17 }
 0x1c3   : > { %v1006_v36 = vmul.f32 %v4622_v43, %v974_v28  ;;  %v973_v13 = vmul.f32 %v4631_v46, %v4631_v46  ;;  %1234 = vmatpush1.msra.mxu1 %v1216_v54  ;;  %v1215_v6 = vmul.f32 %v1183_v23, %v4528_v15  ;;  %v1180_v28 = vmul.f32 0.5, %v1148_v18  ;;  %v4657_v23 = vpop.eup %3800 }
 0x1c4   : > { %v4642_v57 = vpop.f32.mrf.mxu0  ;;  %1235 = vmatprep.subr.mxu1 %v6645_v37  ;;  %v1035_v26 = vmul.f32 0.044715, %v1003_v10  ;;  %v4664_v55 = vpop.eup %3802  ;;  %v1213_v47 = vmul.f32 %v1181_v52, %v4512_v61  ;;  %v1179_v17 = vmul.f32 0.5, %v1147_v44  ;;  %v1034_v50 = vmul.f32 0.044715, %v1002_v58 }
 0x1c5   : > { %v976_v11 = vmul.f32 %v4642_v57, %v4642_v57  ;;  %v1038_v54 = vmul.f32 0.044715, %v1006_v36  ;;  %v1005_v35 = vmul.f32 %v973_v13, %v4631_v46  ;;  %1236 = vmatpush1.msra.mxu1 %v1215_v6  ;;  %v1000_v6 = vmul.f32 %v4557_v16, %v968_v0 }
 0x1c6   : > { %v4654_v15 = vpop.f32.mrf.mxu0  ;;  %1237 = vmatprep.subr.mxu1 %v6645_v37  ;;  %v1068_v2 = vadd.f32 %v4587_v59, %v1036_v49  ;;  %v1033_v61 = vmul.f32 0.044715, %v1001_v45  ;;  %v1211_v58 = vmul.f32 %v1179_v17, %v4499_v39  ;;  %v997_v49 = vmul.f32 %v4616_v7, %v4554_v12 }
 0x1c7   : > { %v1008_v56 = vmul.f32 %v4642_v57, %v976_v11  ;;  %v975_v18 = vmul.f32 %v4654_v15, %v4654_v15  ;;  %v1070_v36 = vadd.f32 %v4622_v43, %v1038_v54  ;;  %v1037_v13 = vmul.f32 0.044715, %v1005_v35  ;;  %1238 = vmatpush1.msra.mxu1 %v1214_v51 }
 0x1c8   : > { %1239 = vmatprep.subr.mxu1 %v6645_v37  ;;  %v1212_v11 = vmul.f32 %v4493_v29, %v1180_v28  ;;  %v999_v35 = vmul.f32 %v967_v42, %v4563_v25  ;;  %v1177_v29 = vmul.f32 0.5, %v1145_v20  ;;  %v1210_v42 = vmul.f32 %v4479_v14, %v4624_v41 }
 0x1c9   : > { %v1040_v8 = vmul.f32 0.044715, %v1008_v56  ;;  %v1007_v10 = vmul.f32 %v975_v18, %v4654_v15  ;;  %v1102_v63 = vmul.f32 0.7978846, %v1070_v36  ;;  %v1069_v54 = vadd.f32 %v1037_v13, %v4631_v46  ;;  %1240 = vmatpush1.msra.mxu1 %v1213_v47 }
 0x1ca   : > { %1241 = vmatprep.subr.mxu1 %v6645_v37  ;;  %v1067_v56 = vadd.f32 %v1035_v26, %v4607_v3  ;;  %v1032_v45 = vmul.f32 0.044715, %v1000_v6  ;;  %v1066_v18 = vadd.f32 %v4569_v32, %v1034_v50  ;;  %v1100_v26 = vmul.f32 0.7978846, %v1068_v2 }
 0x1cb   : > { %v1072_v44 = vadd.f32 %v4642_v57, %v1040_v8  ;;  %v1039_v0 = vmul.f32 0.044715, %v1007_v10  ;;  %v1101_v52 = vmul.f32 0.7978846, %v1069_v54  ;;  %1242 = vmatpush1.msra.mxu1 %v1212_v11  ;;  %3804 = vtanh.f32 %v1102_v63 }
 0x1cc   : > { %1243 = vmatprep.subr.mxu1 %v6645_v37  ;;  %v1031_v36 = vmul.f32 0.044715, %v999_v35  ;;  %v1065_v39 = vadd.f32 %v1033_v61, %v4572_v38  ;;  %v1099_v7 = vmul.f32 0.7978846, %v1067_v56  ;;  %v1209_v13 = vmul.f32 %v1177_v29, %v4486_v21 }
 0x1cd   : > { %v1104_v28 = vmul.f32 0.7978846, %v1072_v44  ;;  %v1071_v51 = vadd.f32 %v1039_v0, %v4654_v15  ;;  %1244 = vmatpush1.msra.mxu1 %v1211_v58  ;;  %v1175_v14 = vmul.f32 0.5, %v4620_v33  ;;  %v996_v50 = vmul.f32 %v4544_v48, %v4595_v24  ;;  %v6648_v0 = vld [vmem:[#allocation15_spill] sm:$0xff] }
 0x1ce   : > { %1245 = vmatprep.subr.mxu1 %v6645_v37  ;;  %v1208_v63 = vmul.f32 %v4466_v4, %v4609_v30  ;;  %v1174_v2 = vmul.f32 0.5, %v4597_v34  ;;  %v1030_v41 = vmul.f32 0.044715, %v4612_v31  ;;  %v1064_v47 = vadd.f32 %v4557_v16, %v1032_v45  ;;  %v403_v31 = vpop.permute.xlu1 %402 }
 0x1cf   : > { %3806 = vtanh.f32 %v1104_v28  ;;  %v1103_v20 = vmul.f32 0.7978846, %v1071_v51  ;;  %1246 = vmatpush1.msra.mxu1 %v1210_v42  ;;  %v1098_v17 = vmul.f32 0.7978846, %v1066_v18  ;;  %v961_v21 = vmul.f32 %v4540_v40, %v4540_v40  ;;  %v6652_v51 = vld [vmem:[#allocation3_spill] sm:$0xff] }
 0x1d0   : > { %3808 = vtanh.f32 %v1101_v52  ;;  %1247 = vmatprep.subr.mxu1 %v6645_v37  ;;  %v995_v24 = vmul.f32 %v4603_v19, %v4549_v62  ;;  %v1029_v33 = vmul.f32 0.044715, %v997_v49  ;;  %v1063_v6 = vadd.f32 %v1031_v36, %v4563_v25  ;;  %v6649_v52 = vld [vmem:[#allocation7_spill] sm:$0xff]  ;;  %v6650_v49 = vld [vmem:[#allocation12_spill] sm:$0xff] }
 0x1d1   : > { %3810 = vtanh.f32 %v1103_v20  ;;  %1248 = vmatpush1.msra.mxu1 %v1209_v13  ;;  %v1097_v4 = vmul.f32 0.7978846, %v1065_v39  ;;  %v1207_v34 = vmul.f32 %v1175_v14, %v4474_v9  ;;  %v1173_v30 = vmul.f32 0.5, %v4599_v22  ;;  %v6654_v14 = vld [vmem:[#allocation14_spill] sm:$0xff] }
 0x1d2   : > { %3812 = vtanh.f32 %v1100_v26  ;;  %1249 = vmatprep.subr.mxu1 %v6645_v37  ;;  %v994_v8 = vmul.f32 %v4534_v27, %v4585_v53  ;;  %v1206_v19 = vmul.f32 %v4455_v60, %v1174_v2  ;;  %v1172_v10 = vmul.f32 0.5, %v4589_v1  ;;  %v6647_v1 = vld [vmem:[#allocation9_spill] sm:$0xff]  ;;  %v417_v26 = vpop.permute.xlu1 %416 }
 0x1d3   : > { %3814 = vtanh.f32 %v1099_v7  ;;  %1250 = vmatpush1.msra.mxu1 %v1208_v63  ;;  %v1138_v11 = vadd.f32 1.0, %v4657_v23  ;;  %v1028_v54 = vmul.f32 0.044715, %v996_v50  ;;  %v1062_v35 = vadd.f32 %v4551_v5, %v1030_v41  ;;  %v6653_v7 = vld [vmem:[#allocation13_spill] sm:$0xff]  ;;  %v6655_v41 = vld [vmem:[#allocation8_spill] sm:$0xff] }
 0x1d4   : > { %1251 = vmatprep.subr.mxu1 %v6645_v37  ;;  %v1096_v61 = vmul.f32 0.7978846, %v1064_v47  ;;  %3816 = vtanh.f32 %v1098_v17  ;;  %v993_v9 = vmul.f32 %v961_v21, %v4540_v40  ;;  %v1027_v22 = vmul.f32 0.044715, %v995_v24  ;;  %v6656_v24 = vld [vmem:[#allocation5_spill] sm:$0xff] }
 0x1d5   : > { %1252 = vmatpush1.msra.mxu1 %v1207_v34  ;;  %v1061_v44 = vadd.f32 %v1029_v33, %v4554_v12  ;;  %v1137_v53 = vadd.f32 1.0, %v4664_v55  ;;  %v1095_v60 = vmul.f32 0.7978846, %v1063_v6  ;;  %3818 = vtanh.f32 %v1097_v4  ;;  %v6657_v34 = vld [vmem:[#allocation4_spill] sm:$0xff] }
 0x1d6   : > { %1253 = vmatprep.subr.mxu1 %v6645_v37  ;;  %v1205_v23 = vmul.f32 %v1173_v30, %v6647_v1  ;;  %v1171_v56 = vmul.f32 0.5, %v6648_v0  ;;  %v1204_v58 = vmul.f32 %v6649_v52, %v1172_v10  ;;  %v1170_v29 = vmul.f32 0.5, %v1138_v11 }
 0x1d7   : > { %1254 = vmatpush1.msra.mxu1 %v1206_v19  ;;  %v6651_v28 = vmax.f32 %v6650_v49, 1e-08  ;;  %v410_v42 = vadd.f32 %v6652_v51, %v403_v31  ;;  %v1026_v45 = vmul.f32 0.044715, %v994_v8  ;;  %v1060_v55 = vadd.f32 %v4544_v48, %v1028_v54  ;;  %v6660_v51 = vld [vmem:[#allocation16_spill] sm:$0xff] }
 0x1d8   : > { %1255 = vmatprep.subr.mxu1 %v6645_v37  ;;  %v1094_v18 = vmul.f32 0.7978846, %v1062_v35  ;;  %v3805_v36 = vpop.eup %3804  ;;  %v1025_v39 = vmul.f32 0.044715, %v993_v9  ;;  %v1059_v20 = vadd.f32 %v1027_v22, %v4549_v62  ;;  %v428_v13 = vmul.f32 %v6653_v7, %v6653_v7 }
 0x1d9   : > { %3820 = vrcp.f32 %v6651_v28  ;;  %1256 = vmatpush1.msra.mxu1 %v1205_v23  ;;  %v430_v50 = vmul.f32 %v6654_v14, %v6654_v14  ;;  %v1093_v2 = vmul.f32 0.7978846, %v1061_v44  ;;  %v1203_v47 = vmul.f32 %v1171_v56, %v6655_v41  ;;  %v6658_v44 = vld [vmem:[#allocation6_spill] sm:$0xff]  ;;  %v6659_v56 = vld [vmem:[#allocation11_spill] sm:$0xff] }
 0x1da   : > { %3822 = vtanh.f32 %v1096_v61  ;;  %1257 = vmatprep.subr.mxu1 %v6645_v37  ;;  %v1169_v17 = vmul.f32 0.5, %v1137_v53  ;;  %v1202_v33 = vmul.f32 %v6656_v24, %v1170_v29  ;;  %v434_v4 = vmul.f32 %v410_v42, %v410_v42 }
 0x1db   : > { %3824 = vtanh.f32 %v1095_v60  ;;  %1258 = vmatpush1.msra.mxu1 %v1204_v58  ;;  %v424_v30 = vadd.f32 %v6657_v34, %v417_v26  ;;  %v1058_v8 = vadd.f32 %v4534_v27, %v1026_v45  ;;  %v1092_v19 = vmul.f32 0.7978846, %v1060_v55 }
 0x1dc   : > { %v3807_v63 = vpop.eup %3806  ;;  %1259 = vmatprep.subr.mxu1 %v6645_v37  ;;  %3826 = vtanh.f32 %v1094_v18  ;;  %v1166_v10 = vadd.f32 1.0, %v3805_v36  ;;  %v1057_v54 = vadd.f32 %v1025_v39, %v4540_v40  ;;  %v432_v9 = vadd.f32 %v430_v50, %v428_v13 }
 0x1dd   : > { %v3809_v21 = vpop.eup %3808  ;;  %v1168_v6 = vadd.f32 1.0, %v3807_v63  ;;  %1260 = vmatpush1.msra.mxu1 %v1203_v47  ;;  %v1091_v22 = vmul.f32 0.7978846, %v1059_v20  ;;  %3828 = vtanh.f32 %v1093_v2  ;;  %v1201_v53 = vmul.f32 %v1169_v17, %v6658_v44  ;;  %v6661_v63 = vld [vmem:[#allocation2_spill] sm:$0xff] }
 0x1de   : > { %v3811_v31 = vpop.eup %3810  ;;  %1261 = vmatprep.subr.mxu1 %v6645_v37  ;;  %v1165_v60 = vadd.f32 1.0, %v3809_v21  ;;  %vm340_vm3 = vcmp.eq.f32.partialorder %v6659_v56, inf  ;;  %v1090_v52 = vmul.f32 0.7978846, %v1058_v8  ;;  %3830 = vtanh.f32 %v1092_v19  ;;  %v6662_v2 = vld [vmem:[#allocation10_spill] sm:$0xff] }
 0x1df   : > { %v3813_v11 = vpop.eup %3812  ;;  %v1200_v35 = vmul.f32 0.5, %v1168_v6  ;;  %v1167_v61 = vadd.f32 1.0, %v3811_v31  ;;  %1262 = vmatpush1.msra.mxu1 %v1202_v33  ;;  %v1198_v58 = vmul.f32 0.5, %v1166_v10  ;;  %v339_v42 = vmul.f32 %v6660_v51, %v6659_v56 }
 0x1e0   : > { %v3815_v1 = vpop.eup %3814  ;;  %1263 = vmatprep.subr.mxu1 %v6645_v37  ;;  %v1164_v29 = vadd.f32 1.0, %v3813_v11  ;;  %v426_v45 = vmul.f32 %v424_v30, %v424_v30  ;;  %v436_v55 = vadd.f32 %v434_v4, %v432_v9  ;;  %v1089_v18 = vmul.f32 0.7978846, %v1057_v54 }
 0x1e1   : > { %v1232_v23 = vmul.f32 %v4642_v57, %v1200_v35  ;;  %v1199_v0 = vmul.f32 0.5, %v1167_v61  ;;  %1264 = vmatpush1.msra.mxu1 %v1201_v53  ;;  %v3817_v49 = vpop.eup %3816  ;;  %3832 = vtanh.f32 %v1091_v22  ;;  %v1197_v57 = vmul.f32 0.5, %v1165_v60 }
 0x1e2   : > { %1265 = vmatprep.subr.mxu1 %v6645_v37  ;;  %v1163_v26 = vadd.f32 1.0, %v3815_v1  ;;  %v3819_v36 = vpop.eup %3818  ;;  %v343_v39 = vand.u32 2147483648, %v6659_v56  ;;  %3834 = vtanh.f32 %v1090_v52  ;;  %v1196_v7 = vmul.f32 0.5, %v1164_v29 }
 0x1e3   : > { %v1231_v28 = vmul.f32 %v1199_v0, %v4654_v15  ;;  %1266 = vmatpush2.msra.mxu1 %v1232_v23  ;;  %v1230_v15 = vmul.f32 %v4622_v43, %v1198_v58  ;;  %v1162_v13 = vadd.f32 1.0, %v3817_v49  ;;  %v341_v50 = vsel %vm340_vm3, %v6659_v56, %v339_v42 }
 0x1e4   : > { %1267 = vmatprep.subr.mxu1 %v6645_v37  ;;  %vm342_vm4 = vcmp.eq.f32.partialorder %v6659_v56, 0.0  ;;  %v358_v41 = vmin.f32 %v6662_v2, %v6661_v63  ;;  %v438_v47 = vsub.f32 %v426_v45, %v436_v55  ;;  %3836 = vtanh.f32 %v1089_v18  ;;  %v499_v63 = vld [vmem:[%s6613_s3 + $0x20] sm:$0xff]  ;;  %v502_v2 = vld [vmem:[%s6613_s3 + $0x38] sm:$0xff] }
 0x1e5   : > { %1268 = vmatpush2.msra.mxu1 %v1231_v28  ;;  %v1229_v17 = vmul.f32 %v1197_v57, %v4631_v46  ;;  %v1195_v43 = vmul.f32 0.5, %v1163_v26  ;;  %v1161_v21 = vadd.f32 1.0, %v3819_v36  ;;  %v1228_v33 = vmul.f32 %v4587_v59, %v1196_v7 }
 0x1e6   : > { %v3821_v20 = vpop.eup %3820  ;;  %1269 = vmatprep.subr.mxu1 %v6645_v37  ;;  %v1194_v6 = vmul.f32 0.5, %v1162_v13  ;;  %v344_v34 = vsel %vm342_vm4, %v343_v39, %v341_v50  ;;  %v458_v8 = vmax.f32 %v438_v47, 1e-08  ;;  %v504_v47 = vld [vmem:[%s6613_s3 + $0x48] sm:$0xff] }
 0x1e7   : > { %v3823_v14 = vpop.eup %3822  ;;  %1270 = vmatpush2.msra.mxu1 %v1230_v15  ;;  %v368_v31 = vmul.f32 %v3821_v20, %v358_v41  ;;  %v1227_v19 = vmul.f32 %v1195_v43, %v4607_v3  ;;  %v1193_v46 = vmul.f32 0.5, %v1161_v21  ;;  %v360_v54 = vmul.f32 %v358_v41, %v344_v34  ;;  %v495_v15 = vld [vmem:[%s6613_s3] sm:$0xff]  ;;  %v501_v41 = vld [vmem:[%s6613_s3 + $0x30] sm:$0xff]  ;;  %v506_v43 = vld [vmem:[%s6613_s3 + $0x58] sm:$0xff] }
 0x1e8   : > { %v3825_v24 = vpop.eup %3824  ;;  %1271 = vmatprep.subr.mxu1 %v6645_v37  ;;  %v1160_v4 = vadd.f32 1.0, %v3823_v14  ;;  %v452_v35 = vmax.f32 %v344_v34, 1e-08  ;;  %v1226_v59 = vmul.f32 %v4569_v32, %v1194_v6  ;;  %3838 = vlog2.f32 %v458_v8  ;;  %v500_v14 = vld [vmem:[%s6613_s3 + $0x28] sm:$0xff]  ;;  %v505_v21 = vld [vmem:[%s6613_s3 + $0x50] sm:$0xff]  ;;  %v510_v6 = vld [vmem:[%s6613_s3 + $0x78] sm:$0xff] }
 0x1e9   : > { %1272 = vmatpush2.msra.mxu1 %v1229_v17  ;;  %v3827_v30 = vpop.eup %3826  ;;  %v1159_v10 = vadd.f32 1.0, %v3825_v24  ;;  %v446_v44 = vmax.f32 %v368_v31, 1e-08  ;;  %v1225_v3 = vmul.f32 %v1193_v46, %v4572_v38  ;;  %v440_v23 = vmax.f32 %v360_v54, 1e-08  ;;  %v503_v17 = vld [vmem:[%s6613_s3 + $0x40] sm:$0xff] }
 0x1ea   : > { %1273 = vmatprep.subr.mxu1 %v6645_v37  ;;  %v3829_v11 = vpop.eup %3828  ;;  %v1192_v61 = vmul.f32 0.5, %v1160_v4  ;;  %v1158_v9 = vadd.f32 1.0, %v3827_v30  ;;  %3840 = vlog2.f32 %v452_v35  ;;  %v508_v24 = vld [vmem:[%s6613_s3 + $0x68] sm:$0xff]  ;;  %v509_v4 = vld [vmem:[%s6613_s3 + $0x70] sm:$0xff]  ;;  %v511_v30 = vld [vmem:[%s6613_s3 + $0x80] sm:$0xff] }
 0x1eb   : > { %1274 = vmatpush2.msra.mxu1 %v1228_v33  ;;  %v3831_v22 = vpop.eup %3830  ;;  %v1191_v53 = vmul.f32 0.5, %v1159_v10  ;;  %v1157_v60 = vadd.f32 1.0, %v3829_v11  ;;  %3842 = vlog2.f32 %v446_v44  ;;  %v507_v33 = vld [vmem:[%s6613_s3 + $0x60] sm:$0xff]  ;;  %v512_v34 = vld [vmem:[%s6613_s3 + $0x88] sm:$0xff]  ;;  %v514_v31 = vld [vmem:[%s6613_s3 + $0x98] sm:$0xff] }
 0x1ec   : > { %1275 = vmatprep.subr.mxu1 %v6645_v37  ;;  %v1224_v32 = vmul.f32 %v4557_v16, %v1192_v61  ;;  %v1190_v0 = vmul.f32 0.5, %v1158_v9  ;;  %v1156_v56 = vadd.f32 1.0, %v3831_v22  ;;  %3844 = vlog2.f32 %v440_v23  ;;  %v513_v8 = vld [vmem:[%s6613_s3 + $0x90] sm:$0xff]  ;;  %v515_v46 = vld [vmem:[%s6613_s3 + $0xa0] sm:$0xff]  ;;  %v518_v10 = vld [vmem:[%s6613_s3 + $0xb8] sm:$0xff] }
 0x1ed   : > { %1276 = vmatpush2.msra.mxu1 %v1227_v19  ;;  %v1223_v58 = vmul.f32 %v1191_v53, %v4563_v25  ;;  %v1189_v38 = vmul.f32 0.5, %v1157_v60  ;;  %v516_v19 = vld [vmem:[%s6613_s3 + $0xa8] sm:$0xff]  ;;  %v517_v11 = vld [vmem:[%s6613_s3 + $0xb0] sm:$0xff]  ;;  %v519_v35 = vld [vmem:[%s6613_s3 + $0xc0] sm:$0xff] }
 0x1ee   : > { %1277 = vmatprep.subr.mxu1 %v6645_v37  ;;  %v3833_v1 = vpop.eup %3832  ;;  %v1222_v28 = vmul.f32 %v4551_v5, %v1190_v0  ;;  %v1188_v51 = vmul.f32 0.5, %v1156_v56  ;;  %v520_v54 = vld [vmem:[%s6613_s3 + $0xc8] sm:$0xff]  ;;  %v521_v61 = vld [vmem:[%s6613_s3 + $0xd0] sm:$0xff]  ;;  %v523_v22 = vld [vmem:[%s6613_s3 + $0xe0] sm:$0xff] }
 0x1ef   : > { %1278 = vmatpush2.msra.mxu1 %v1226_v59  ;;  %v3835_v52 = vpop.eup %3834  ;;  %v1155_v29 = vadd.f32 1.0, %v3833_v1  ;;  %v1221_v42 = vmul.f32 %v1189_v38, %v4554_v12  ;;  %v522_v59 = vld [vmem:[%s6613_s3 + $0xd8] sm:$0xff]  ;;  %v524_v9 = vld [vmem:[%s6613_s3 + $0xe8] sm:$0xff]  ;;  %v527_v60 = vld [vmem:[%s6613_s3 + $0x100] sm:$0xff] }
 0x1f0   : > { %1279 = vmatprep.subr.mxu1 %v6645_v37  ;;  %v1154_v16 = vadd.f32 1.0, %v3835_v52  ;;  %v1220_v25 = vmul.f32 %v4544_v48, %v1188_v51  ;;  %v526_v44 = vld [vmem:[%s6613_s3 + $0xf8] sm:$0xff]  ;;  %v528_v53 = vld [vmem:[%s6613_s3 + $0x108] sm:$0xff]  ;;  %v529_v23 = vld [vmem:[%s6613_s3 + $0x110] sm:$0xff] }
 0x1f1   : > { %1280 = vmatpush2.msra.mxu1 %v1225_v3  ;;  %v3837_v49 = vpop.eup %3836  ;;  %v1187_v45 = vmul.f32 0.5, %v1155_v29  ;;  %v525_v3 = vld [vmem:[%s6613_s3 + $0xf0] sm:$0xff]  ;;  %v530_v1 = vld [vmem:[%s6613_s3 + $0x118] sm:$0xff]  ;;  %v531_v0 = vld [vmem:[%s6613_s3 + $0x120] sm:$0xff] }
 0x1f2   : > { %1281 = vmatprep.subr.mxu1 %v6645_v37  ;;  %v1153_v55 = vadd.f32 1.0, %v3837_v49  ;;  %v1186_v18 = vmul.f32 0.5, %v1154_v16  ;;  %v534_v56 = vld [vmem:[%s6613_s3 + $0x138] sm:$0xff]  ;;  %v533_v52 = vld [vmem:[%s6613_s3 + $0x130] sm:$0xff]  ;;  %v535_v38 = vld [vmem:[%s6613_s3 + $0x140] sm:$0xff] }
 0x1f3   : > { %1282 = vmatpush2.msra.mxu1 %v1224_v32  ;;  %v1219_v5 = vmul.f32 %v1187_v45, %v4549_v62  ;;  %v498_v62 = vld [vmem:[%s6613_s3 + $0x18] sm:$0xff]  ;;  %v532_v32 = vld [vmem:[%s6613_s3 + $0x128] sm:$0xff]  ;;  %v537_v49 = vld [vmem:[%s6613_s3 + $0x150] sm:$0xff] }
 0x1f4   : > { %1283 = vmatprep.subr.mxu1 %v6645_v37  ;;  %v1185_v26 = vmul.f32 0.5, %v1153_v55  ;;  %v1218_v12 = vmul.f32 %v4534_v27, %v1186_v18  ;;  %v538_v29 = vld [vmem:[%s6613_s3 + $0x158] sm:$0xff]  ;;  %v539_v51 = vld [vmem:[%s6613_s3 + $0x160] sm:$0xff]  ;;  %v544_v45 = vld [vmem:[%s6613_s3 + $0x188] sm:$0xff] }
 0x1f5   : > { %1284 = vmatpush2.msra.mxu1 %v1223_v58  ;;  %v3839_v57 = vpop.eup %3838  ;;  %v536_v58 = vld [vmem:[%s6613_s3 + $0x148] sm:$0xff]  ;;  %v542_v16 = vld [vmem:[%s6613_s3 + $0x178] sm:$0xff]  ;;  %v543_v55 = vld [vmem:[%s6613_s3 + $0x180] sm:$0xff] }
 0x1f6   : > { %1285 = vmatprep.subr.mxu1 %v6645_v37  ;;  %v462_v39 = vmul.f32 0.6931472, %v3839_v57  ;;  %v1217_v48 = vmul.f32 %v1185_v26, %v4540_v40  ;;  %v497_v40 = vld [vmem:[%s6613_s3 + $0x10] sm:$0xff]  ;;  %v548_v57 = vld [vmem:[%s6613_s3 + $0x1a8] sm:$0xff]  ;;  %v550_v26 = vld [vmem:[%s6613_s3 + $0x1b8] sm:$0xff] }
 0x1f7   : > { %1286 = vmatpush2.msra.mxu1 %v1222_v28  ;;  %v3841_v36 = vpop.eup %3840  ;;  %v540_v28 = vld [vmem:[%s6613_s3 + $0x168] sm:$0xff]  ;;  %v545_v18 = vld [vmem:[%s6613_s3 + $0x190] sm:$0xff] }
 0x1f8   : > { %1287 = vmatprep.subr.mxu1 %v6645_v37  ;;  %v3843_v20 = vpop.eup %3842  ;;  %v456_v7 = vmul.f32 0.6931472, %v3841_v36  ;;  %v549_v36 = vld [vmem:[%s6613_s3 + $0x1b0] sm:$0xff] }
 0x1f9   : > { %1288 = vmatpush2.msra.mxu1 %v1221_v42  ;;  %v3845_v13 = vpop.eup %3844  ;;  %v450_v27 = vmul.f32 0.6931472, %v3843_v20  ;;  %v541_v42 = vld [vmem:[%s6613_s3 + $0x170] sm:$0xff]  ;;  %v554_v20 = vld [vmem:[%s6613_s3 + $0x1d8] sm:$0xff] }
 0x1fa   : > { %1289 = vmatprep.subr.mxu1 %v6645_v37  ;;  %v444_v50 = vmul.f32 0.6931472, %v3845_v13  ;;  %v557_v13 = vld [vmem:[%s6613_s3 + $0x1f0] sm:$0xff] }
 0x1fb   : > { %1290 = vmatpush2.msra.mxu1 %v1220_v25  ;;  %v546_v25 = vld [vmem:[%s6613_s3 + $0x198] sm:$0xff] }
 0x1fc   : > { %1291 = vmatprep.subr.mxu1 %v6645_v37 }
 0x1fd   : > { %1292 = vmatpush2.msra.mxu1 %v1219_v5  ;;  %v547_v5 = vld [vmem:[%s6613_s3 + $0x1a0] sm:$0xff] }
 0x1fe   : > { %1293 = vmatprep.subr.mxu1 %v6645_v37 }
 0x1ff   : > { %1294 = vmatpush2.msra.mxu1 %v1218_v12  ;;  %v552_v12 = vld [vmem:[%s6613_s3 + $0x1c8] sm:$0xff] }
 0x200   : > { %1295 = vmatprep.subr.mxu1 %v6645_v37 }
 0x201   : > { %1296 = vmatpush2.msra.mxu1 %v1217_v48  ;;  %v553_v48 = vld [vmem:[%s6613_s3 + $0x1d0] sm:$0xff] }
 0x202   : > { %1298 = vmatmul.mubr.f32.vlgmr.msra.gmra.mxu1 %v495_v15  ;;  %3591 = vmatprep.subr.mxu1 %v462_v39  ;;  %v556_v15 = vld [vmem:[%s6613_s3 + $0x1e8] sm:$0xff] }
 0x203   : > { %1302 = vmatprep.mubr.f32.mxu1 %v498_v62  ;;  %3592 = vmatpush3.msra.mxu1 %v462_v39  ;;  %v551_v39 = vld [vmem:[%s6613_s3 + $0x1c0] sm:$0xff] }
 0x204   : > { %3593 = vmatprep.subr.mxu1 %v456_v7  ;;  %v555_v62 = vld [vmem:[%s6613_s3 + $0x1e0] sm:$0xff] }
 0x205   : > { %3594 = vmatpush3.msra.mxu1 %v456_v7  ;;  %v558_v7 = vld [vmem:[%s6613_s3 + $0x1f8] sm:$0xff] }
 0x206   : > { %1303 = vmatmul.mubr.f32.gmra.mxu1 %v497_v40  ;;  %3595 = vmatprep.subr.mxu1 %v450_v27  ;;  %v4039_v40 = vld [vmem:[%s6612_s2 + $0x8] sm:$0xff] }
 0x207   : > { %1307 = vmatprep.mubr.f32.mxu1 %v500_v14  ;;  %3596 = vmatpush3.msra.mxu1 %v450_v27  ;;  %v4038_v27 = vld [vmem:[%s6612_s2] sm:$0xff]  ;;  %v4040_v14 = vld [vmem:[%s6612_s2 + $0x10] sm:$0xff] }
 0x208   : > { %3597 = vmatprep.subr.mxu1 %v444_v50 }
 0x209   : > { %3598 = vmatpush3.msra.mxu1 %v444_v50  ;;  %v4041_v50 = vld [vmem:[%s6612_s2 + $0x18] sm:$0xff] }
 0x20a   : > { %1308 = vmatmul.mubr.f32.gmra.mxu1 %v499_v63  ;;  %3647 = vmatprep.subr.mxu1 %v6645_v37  ;;  %v4042_v63 = vld [vmem:[%s6612_s2 + $0x20] sm:$0xff] }
 0x20b   : > { %1312 = vmatprep.mubr.f32.mxu1 %v502_v2  ;;  %v4043_v2 = vld [vmem:[%s6612_s2 + $0x28] sm:$0xff] }
 0x20e   : > { %1313 = vmatmul.mubr.f32.gmra.mxu1 %v501_v41  ;;  %v4044_v41 = vld [vmem:[%s6612_s2 + $0x30] sm:$0xff] }
 0x20f   : > { %1317 = vmatprep.mubr.f32.mxu1 %v504_v47  ;;  %v4045_v47 = vld [vmem:[%s6612_s2 + $0x38] sm:$0xff] }
 0x212   : > { %1318 = vmatmul.mubr.f32.gmra.mxu1 %v503_v17  ;;  %v4046_v17 = vld [vmem:[%s6612_s2 + $0x40] sm:$0xff] }
 0x213   : > { %1322 = vmatprep.mubr.f32.mxu1 %v506_v43  ;;  %v4047_v43 = vld [vmem:[%s6612_s2 + $0x48] sm:$0xff] }
 0x216   : > { %1323 = vmatmul.mubr.f32.gmra.mxu1 %v505_v21  ;;  %v4048_v21 = vld [vmem:[%s6612_s2 + $0x50] sm:$0xff] }
 0x217   : > { %1327 = vmatprep.mubr.f32.mxu1 %v508_v24  ;;  %v4049_v24 = vld [vmem:[%s6612_s2 + $0x58] sm:$0xff] }
 0x21a   : > { %1328 = vmatmul.mubr.f32.gmra.mxu1 %v507_v33  ;;  %v4050_v33 = vld [vmem:[%s6612_s2 + $0x60] sm:$0xff] }
 0x21b   : > { %1332 = vmatprep.mubr.f32.mxu1 %v510_v6  ;;  %v4051_v6 = vld [vmem:[%s6612_s2 + $0x68] sm:$0xff] }
 0x21e   : > { %1333 = vmatmul.mubr.f32.gmra.mxu1 %v509_v4  ;;  %v4052_v4 = vld [vmem:[%s6612_s2 + $0x70] sm:$0xff] }
 0x21f   : > { %1337 = vmatprep.mubr.f32.mxu1 %v512_v34  ;;  %v4053_v34 = vld [vmem:[%s6612_s2 + $0x78] sm:$0xff] }
 0x222   : > { %1338 = vmatmul.mubr.f32.gmra.mxu1 %v511_v30  ;;  %v4054_v30 = vld [vmem:[%s6612_s2 + $0x80] sm:$0xff] }
 0x223   : > { %1342 = vmatprep.mubr.f32.mxu1 %v514_v31  ;;  %v4055_v31 = vld [vmem:[%s6612_s2 + $0x88] sm:$0xff] }
 0x226   : > { %1343 = vmatmul.mubr.f32.gmra.mxu1 %v513_v8  ;;  %v4056_v8 = vld [vmem:[%s6612_s2 + $0x90] sm:$0xff] }
 0x227   : > { %1347 = vmatprep.mubr.f32.mxu1 %v516_v19  ;;  %v4057_v19 = vld [vmem:[%s6612_s2 + $0x98] sm:$0xff] }
 0x22a   : > { %1348 = vmatmul.mubr.f32.gmra.mxu1 %v515_v46  ;;  %v4058_v46 = vld [vmem:[%s6612_s2 + $0xa0] sm:$0xff] }
 0x22b   : > { %1352 = vmatprep.mubr.f32.mxu1 %v518_v10  ;;  %v4059_v10 = vld [vmem:[%s6612_s2 + $0xa8] sm:$0xff] }
 0x22e   : > { %1353 = vmatmul.mubr.f32.gmra.mxu1 %v517_v11  ;;  %v4060_v11 = vld [vmem:[%s6612_s2 + $0xb0] sm:$0xff] }
 0x22f   : > { %1357 = vmatprep.mubr.f32.mxu1 %v520_v54  ;;  %v4061_v54 = vld [vmem:[%s6612_s2 + $0xb8] sm:$0xff] }
 0x232   : > { %1358 = vmatmul.mubr.f32.gmra.mxu1 %v519_v35  ;;  %v4062_v35 = vld [vmem:[%s6612_s2 + $0xc0] sm:$0xff] }
 0x233   : > { %1362 = vmatprep.mubr.f32.mxu1 %v522_v59  ;;  %v4063_v59 = vld [vmem:[%s6612_s2 + $0xc8] sm:$0xff] }
 0x236   : > { %1363 = vmatmul.mubr.f32.gmra.mxu1 %v521_v61  ;;  %v4064_v61 = vld [vmem:[%s6612_s2 + $0xd0] sm:$0xff] }
 0x237   : > { %1367 = vmatprep.mubr.f32.mxu1 %v524_v9  ;;  %v4065_v9 = vld [vmem:[%s6612_s2 + $0xd8] sm:$0xff] }
 0x23a   : > { %1368 = vmatmul.mubr.f32.gmra.mxu1 %v523_v22  ;;  %v4066_v22 = vld [vmem:[%s6612_s2 + $0xe0] sm:$0xff] }
 0x23b   : > { %1372 = vmatprep.mubr.f32.mxu1 %v526_v44  ;;  %v4067_v44 = vld [vmem:[%s6612_s2 + $0xe8] sm:$0xff] }
 0x23e   : > { %1373 = vmatmul.mubr.f32.gmra.mxu1 %v525_v3  ;;  %v4068_v3 = vld [vmem:[%s6612_s2 + $0xf0] sm:$0xff] }
 0x23f   : > { %1377 = vmatprep.mubr.f32.mxu1 %v528_v53  ;;  %v4069_v53 = vld [vmem:[%s6612_s2 + $0xf8] sm:$0xff] }
 0x242   : > { %1378 = vmatmul.mubr.f32.gmra.mxu1 %v527_v60 }
 0x243   : > { %1382 = vmatprep.mubr.f32.mxu1 %v530_v1 }
 0x246   : > { %1383 = vmatmul.mubr.f32.gmra.mxu1 %v529_v23 }
 0x247   : > { %1387 = vmatprep.mubr.f32.mxu1 %v532_v32 }
 0x24a   : > { %1388 = vmatmul.mubr.f32.gmra.mxu1 %v531_v0 }
 0x24b   : > { %1392 = vmatprep.mubr.f32.mxu1 %v534_v56 }
 0x24e   : > { %1393 = vmatmul.mubr.f32.gmra.mxu1 %v533_v52 }
 0x24f   : > { %1397 = vmatprep.mubr.f32.mxu1 %v536_v58 }
 0x252   : > { %1398 = vmatmul.mubr.f32.gmra.mxu1 %v535_v38 }
 0x253   : > { %1402 = vmatprep.mubr.f32.mxu1 %v538_v29 }
 0x256   : > { %1403 = vmatmul.mubr.f32.gmra.mxu1 %v537_v49 }
 0x257   : > { %1407 = vmatprep.mubr.f32.mxu1 %v540_v28 }
 0x25a   : > { %1408 = vmatmul.mubr.f32.gmra.mxu1 %v539_v51 }
 0x25b   : > { %1412 = vmatprep.mubr.f32.mxu1 %v542_v16 }
 0x25e   : > { %1413 = vmatmul.mubr.f32.gmra.mxu1 %v541_v42 }
 0x25f   : > { %1417 = vmatprep.mubr.f32.mxu1 %v544_v45 }
 0x262   : > { %1418 = vmatmul.mubr.f32.gmra.mxu1 %v543_v55 }
 0x263   : > { %1422 = vmatprep.mubr.f32.mxu1 %v546_v25 }
 0x266   : > { %1423 = vmatmul.mubr.f32.gmra.mxu1 %v545_v18 }
 0x267   : > { %1427 = vmatprep.mubr.f32.mxu1 %v548_v57 }
 0x26a   : > { %1428 = vmatmul.mubr.f32.gmra.mxu1 %v547_v5 }
 0x26b   : > { %1432 = vmatprep.mubr.f32.mxu1 %v550_v26 }
 0x26e   : > { %1433 = vmatmul.mubr.f32.gmra.mxu1 %v549_v36 }
 0x26f   : > { %1437 = vmatprep.mubr.f32.mxu1 %v552_v12 }
 0x272   : > { %1438 = vmatmul.mubr.f32.gmra.mxu1 %v551_v39 }
 0x273   : > { %1442 = vmatprep.mubr.f32.mxu1 %v554_v20 }
 0x276   : > { %1443 = vmatmul.mubr.f32.gmra.mxu1 %v553_v48 }
 0x277   : > { %1447 = vmatprep.mubr.f32.mxu1 %v556_v15 }
 0x27a   : > { %1448 = vmatmul.mubr.f32.gmra.mxu1 %v555_v62 }
 0x27b   : > { %1452 = vmatprep.mubr.f32.mxu1 %v558_v7 }
 0x27e   : > { %1453 = vmatmul.mubr.f32.gmra.mxu1 %v557_v13 }
 0x27f   : > { %3599 = vmatprep.mubr.msk.f32.mxu1 %vm623_vm0, %v4038_v27 }
 0x282   : > { %3600 = vmatmul.mubr.msk.f32.vlgmr.msra.gmra.mxu1 %vm623_vm0, %v4039_v40 }
 0x283   : > { %3602 = vmatprep.mubr.msk.f32.mxu1 %vm623_vm0, %v4040_v14 }
 0x286   : > { %3603 = vmatmul.mubr.msk.f32.gmra.mxu1 %vm623_vm0, %v4041_v50 }
 0x287   : > { %3605 = vmatprep.mubr.msk.f32.mxu1 %vm623_vm0, %v4042_v63 }
 0x28a   : > { %3606 = vmatmul.mubr.msk.f32.gmra.mxu1 %vm623_vm0, %v4043_v2 }
 0x28b   : > { %3608 = vmatprep.mubr.msk.f32.mxu1 %vm623_vm0, %v4044_v41 }
 0x28e   : > { %3609 = vmatmul.mubr.msk.f32.gmra.mxu1 %vm623_vm0, %v4045_v47 }
 0x28f   : > { %3611 = vmatprep.mubr.msk.f32.mxu1 %vm623_vm0, %v4046_v17 }
 0x292   : > { %3612 = vmatmul.mubr.msk.f32.gmra.mxu1 %vm623_vm0, %v4047_v43 }
 0x293   : > { %3614 = vmatprep.mubr.msk.f32.mxu1 %vm623_vm0, %v4048_v21 }
 0x296   : > { %3615 = vmatmul.mubr.msk.f32.gmra.mxu1 %vm623_vm0, %v4049_v24 }
 0x297   : > { %3617 = vmatprep.mubr.msk.f32.mxu1 %vm623_vm0, %v4050_v33 }
 0x29a   : > { %3618 = vmatmul.mubr.msk.f32.gmra.mxu1 %vm623_vm0, %v4051_v6 }
 0x29b   : > { %3620 = vmatprep.mubr.msk.f32.mxu1 %vm623_vm0, %v4052_v4 }
 0x29e   : > { %3621 = vmatmul.mubr.msk.f32.gmra.mxu1 %vm623_vm0, %v4053_v34 }
 0x29f   : > { %3623 = vmatprep.mubr.msk.f32.mxu1 %vm623_vm0, %v4054_v30 }
 0x2a2   : > { %3624 = vmatmul.mubr.msk.f32.gmra.mxu1 %vm623_vm0, %v4055_v31 }
 0x2a3   : > { %3626 = vmatprep.mubr.msk.f32.mxu1 %vm623_vm0, %v4056_v8 }
 0x2a6   : > { %3627 = vmatmul.mubr.msk.f32.gmra.mxu1 %vm623_vm0, %v4057_v19 }
 0x2a7   : > { %3629 = vmatprep.mubr.msk.f32.mxu1 %vm623_vm0, %v4058_v46 }
 0x2aa   : > { %3630 = vmatmul.mubr.msk.f32.gmra.mxu1 %vm623_vm0, %v4059_v10 }
 0x2ab   : > { %3632 = vmatprep.mubr.msk.f32.mxu1 %vm623_vm0, %v4060_v11 }
 0x2ae   : > { %3633 = vmatmul.mubr.msk.f32.gmra.mxu1 %vm623_vm0, %v4061_v54 }
 0x2af   : > { %3635 = vmatprep.mubr.msk.f32.mxu1 %vm623_vm0, %v4062_v35 }
 0x2b2   : > { %3636 = vmatmul.mubr.msk.f32.gmra.mxu1 %vm623_vm0, %v4063_v59 }
 0x2b3   : > { %3638 = vmatprep.mubr.msk.f32.mxu1 %vm623_vm0, %v4064_v61 }
 0x2b6   : > { %3639 = vmatmul.mubr.msk.f32.gmra.mxu1 %vm623_vm0, %v4065_v9 }
 0x2b7   : > { %3641 = vmatprep.mubr.msk.f32.mxu1 %vm623_vm0, %v4066_v22 }
 0x2ba   : > { %3642 = vmatmul.mubr.msk.f32.gmra.mxu1 %vm623_vm0, %v4067_v44 }
 0x2bb   : > { %3644 = vmatprep.mubr.msk.f32.mxu1 %vm623_vm0, %v4068_v3 }
 0x2be   : > { %3645 = vmatmul.mubr.msk.f32.gmra.mxu1 %vm623_vm0, %v4069_v53 }
 0x2c2   : > { %v5100_v60 = vpop.f32.mrf.mxu1 }
 0x2c4   : > { %v1301_v1 = vpop.f32.mrf.mxu1 }
 0x2c6   : > { %v5102_v23 = vpop.f32.mrf.mxu1 }
 0x2c8   : > { %v1306_v32 = vpop.f32.mrf.mxu1 }
 0x2ca   : > { %v5104_v0 = vpop.f32.mrf.mxu1 }
 0x2cc   : > { %v1311_v56 = vpop.f32.mrf.mxu1 }
 0x2ce   : > { %v5106_v52 = vpop.f32.mrf.mxu1 }
 0x2d0   : > { %v1316_v58 = vpop.f32.mrf.mxu1 }
 0x2d2   : > { %v5108_v38 = vpop.f32.mrf.mxu1 }
 0x2d4   : > { %v1321_v29 = vpop.f32.mrf.mxu1 }
 0x2d5   : > { %v1462_v29 = vmul.f32 %v5108_v38, %v5108_v38 }
 0x2d6   : > { %v5110_v49 = vpop.f32.mrf.mxu1 }
 0x2d7   : > { %v1463_v22 = vmul.f32 %v5110_v49, %v5110_v49 }
 0x2d8   : > { %v1326_v28 = vpop.f32.mrf.mxu1 }
 0x2da   : > { %v5112_v51 = vpop.f32.mrf.mxu1 }
 0x2db   : > { %v1464_v10 = vmul.f32 %v5112_v51, %v5112_v51 }
 0x2dc   : > { %v1331_v16 = vpop.f32.mrf.mxu1 }
 0x2dd   : > { %v1496_v28 = vmul.f32 %v1464_v10, %v5112_v51 }
 0x2de   : > { %v5114_v42 = vpop.f32.mrf.mxu1 }
 0x2df   : > { %v1465_v4 = vmul.f32 %v5114_v42, %v5114_v42 }
 0x2e0   : > { %v1336_v45 = vpop.f32.mrf.mxu1 }
 0x2e1   : > { %v1497_v44 = vmul.f32 %v1465_v4, %v5114_v42 }
 0x2e2   : > { %v5116_v55 = vpop.f32.mrf.mxu1 }
 0x2e3   : > { %v1466_v24 = vmul.f32 %v5116_v55, %v5116_v55 }
 0x2e4   : > { %v1341_v25 = vpop.f32.mrf.mxu1 }
 0x2e5   : > { %v1498_v35 = vmul.f32 %v1466_v24, %v5116_v55 }
 0x2e6   : > { %v5118_v18 = vpop.f32.mrf.mxu1 }
 0x2e7   : > { %v1467_v2 = vmul.f32 %v5118_v18, %v5118_v18  ;;  %v1530_v45 = vmul.f32 0.044715, %v1498_v35 }
 0x2e8   : > { %v1346_v57 = vpop.f32.mrf.mxu1 }
 0x2e9   : > { %v1499_v30 = vmul.f32 %v1467_v2, %v5118_v18  ;;  %v1562_v2 = vadd.f32 %v1530_v45, %v5116_v55 }
 0x2ea   : > { %v5120_v5 = vpop.f32.mrf.mxu1 }
 0x2eb   : > { %v1468_v14 = vmul.f32 %v5120_v5, %v5120_v5  ;;  %v1531_v53 = vmul.f32 0.044715, %v1499_v30 }
 0x2ec   : > { %v1351_v26 = vpop.f32.mrf.mxu1 }
 0x2ed   : > { %v1500_v33 = vmul.f32 %v1468_v14, %v5120_v5  ;;  %v1494_v14 = vmul.f32 %v1462_v29, %v5108_v38 }
 0x2ee   : > { %v5122_v36 = vpop.f32.mrf.mxu1 }
 0x2ef   : > { %v1469_v7 = vmul.f32 %v5122_v36, %v5122_v36  ;;  %v1532_v59 = vmul.f32 0.044715, %v1500_v33 }
 0x2f0   : > { %v1356_v12 = vpop.f32.mrf.mxu1 }
 0x2f1   : > { %v1501_v41 = vmul.f32 %v1469_v7, %v5122_v36  ;;  %v1564_v25 = vadd.f32 %v1532_v59, %v5120_v5  ;;  %v1461_v12 = vmul.f32 %v5106_v52, %v5106_v52 }
 0x2f2   : > { %v5124_v39 = vpop.f32.mrf.mxu1 }
 0x2f3   : > { %v1470_v48 = vmul.f32 %v5124_v39, %v5124_v39  ;;  %v1533_v31 = vmul.f32 0.044715, %v1501_v41  ;;  %v1596_v41 = vmul.f32 0.7978846, %v1564_v25 }
 0x2f4   : > { %v1361_v20 = vpop.f32.mrf.mxu1 }
 0x2f5   : > { %v1502_v27 = vmul.f32 %v1470_v48, %v5124_v39  ;;  %v1565_v1 = vadd.f32 %v1533_v31, %v5122_v36  ;;  %v1495_v20 = vmul.f32 %v1463_v22, %v5110_v49  ;;  %v1529_v48 = vmul.f32 0.044715, %v1497_v44 }
 0x2f6   : > { %v5128_v15 = vpop.f32.mrf.mxu1  ;;  %v1526_v31 = vmul.f32 0.044715, %v1494_v14 }
 0x2f7   : > { %v1471_v62 = vmul.f32 %v5128_v15, %v5128_v15  ;;  %v1534_v43 = vmul.f32 0.044715, %v1502_v27  ;;  %v1597_v7 = vmul.f32 0.7978846, %v1565_v1  ;;  %v1561_v24 = vadd.f32 %v1529_v48, %v5114_v42 }
 0x2f8   : > { %v1366_v13 = vpop.f32.mrf.mxu1  ;;  %v1558_v44 = vadd.f32 %v1526_v31, %v5108_v38 }
 0x2f9   : > { %v1503_v40 = vmul.f32 %v1471_v62, %v5128_v15  ;;  %v1566_v11 = vadd.f32 %v1534_v43, %v5124_v39  ;;  %v1563_v62 = vadd.f32 %v1531_v53, %v5118_v18  ;;  %v1493_v43 = vmul.f32 %v1461_v12, %v5106_v52 }
 0x2fa   : > { %v5138_v50 = vpop.f32.mrf.mxu1  ;;  %v1593_v35 = vmul.f32 0.7978846, %v1561_v24 }
 0x2fb   : > { %v1472_v63 = vmul.f32 %v5138_v50, %v5138_v50  ;;  %v1535_v47 = vmul.f32 0.044715, %v1503_v40  ;;  %v1598_v16 = vmul.f32 0.7978846, %v1566_v11  ;;  %v1460_v40 = vmul.f32 %v5104_v0, %v5104_v0 }
 0x2fc   : > { %v1371_v17 = vpop.f32.mrf.mxu1  ;;  %v1595_v33 = vmul.f32 0.7978846, %v1563_v62  ;;  %v1525_v11 = vmul.f32 0.044715, %v1493_v43 }
 0x2fd   : > { %v1504_v21 = vmul.f32 %v1472_v63, %v5138_v50  ;;  %v1567_v8 = vadd.f32 %v1535_v47, %v5128_v15  ;;  %v1528_v63 = vmul.f32 0.044715, %v1496_v28  ;;  %v1459_v17 = vmul.f32 %v5102_v23, %v5102_v23 }
 0x2fe   : > { %v5149_v6 = vpop.f32.mrf.mxu1  ;;  %v1492_v30 = vmul.f32 %v1460_v40, %v5104_v0 }
 0x2ff   : > { %v1536_v34 = vmul.f32 0.044715, %v1504_v21  ;;  %v1473_v19 = vmul.f32 %v5149_v6, %v5149_v6  ;;  %v1599_v32 = vmul.f32 0.7978846, %v1567_v8  ;;  %v1527_v21 = vmul.f32 0.044715, %v1495_v20 }
 0x300   : > { %v1376_v46 = vpop.f32.mrf.mxu1  ;;  %v1560_v8 = vadd.f32 %v1528_v63, %v5112_v51  ;;  %v1491_v10 = vmul.f32 %v1459_v17, %v5102_v23  ;;  %v1524_v22 = vmul.f32 0.044715, %v1492_v30 }
 0x301   : > { %v1568_v54 = vadd.f32 %v1536_v34, %v5138_v50  ;;  %v1505_v61 = vmul.f32 %v1473_v19, %v5149_v6  ;;  %v1458_v34 = vmul.f32 %v5100_v60, %v5100_v60  ;;  %v1594_v19 = vmul.f32 0.7978846, %v1562_v2 }
 0x302   : > { %v5163_v9 = vpop.f32.mrf.mxu1  ;;  %v1556_v45 = vadd.f32 %v1524_v22, %v5104_v0 }
 0x303   : > { %v1600_v3 = vmul.f32 0.7978846, %v1568_v54  ;;  %v1537_v56 = vmul.f32 0.044715, %v1505_v61  ;;  %v1559_v54 = vadd.f32 %v1527_v21, %v5110_v49  ;;  %v1490_v61 = vmul.f32 %v1458_v34, %v5100_v60 }
 0x304   : > { %v1381_v58 = vpop.f32.mrf.mxu1  ;;  %v1588_v2 = vmul.f32 0.7978846, %v1556_v45 }
 0x305   : > { %3846 = vtanh.f32 %v1600_v3  ;;  %v1569_v57 = vadd.f32 %v1537_v56, %v5149_v6  ;;  %v1592_v3 = vmul.f32 0.7978846, %v1560_v8  ;;  %v1557_v56 = vadd.f32 %v1525_v11, %v5106_v52  ;;  %v560_v8 = vld [vmem:[%s6614_s4 + $0x8] sm:$0xff] }
 0x306   : > { %v5174_v26 = vpop.f32.mrf.mxu1  ;;  %3848 = vtanh.f32 %v1599_v32  ;;  %v1523_v32 = vmul.f32 0.044715, %v1491_v10  ;;  %v1591_v58 = vmul.f32 0.7978846, %v1559_v54  ;;  %1810 = vmatprep.mubr.f32.mxu0 %v560_v8 }
 0x307   : > { %v1601_v13 = vmul.f32 0.7978846, %v1569_v57  ;;  %3850 = vtanh.f32 %v1598_v16  ;;  %v1522_v16 = vmul.f32 0.044715, %v1490_v61  ;;  %v1590_v57 = vmul.f32 0.7978846, %v1558_v44 }
 0x308   : > { %v1386_v27 = vpop.f32.mrf.mxu1  ;;  %v1555_v62 = vadd.f32 %v1523_v32, %v5102_v23 }
 0x309   : > { %3852 = vtanh.f32 %v1601_v13  ;;  %v1554_v63 = vadd.f32 %v1522_v16, %v5100_v60 }
 0x30a   : > { %v5184_v47 = vpop.f32.mrf.mxu1  ;;  %3854 = vtanh.f32 %v1597_v7  ;;  %v1589_v7 = vmul.f32 0.7978846, %v1557_v56 }
 0x30b   : > { %3856 = vtanh.f32 %v1596_v41  ;;  %v1586_v10 = vmul.f32 0.7978846, %v1554_v63 }
 0x30c   : > { %v1391_v4 = vpop.f32.mrf.mxu1  ;;  %3858 = vtanh.f32 %v1595_v33  ;;  %v1587_v33 = vmul.f32 0.7978846, %v1555_v62 }
 0x30d   : > { %3860 = vtanh.f32 %v1594_v19 }
 0x30e   : > { %v5194_v46 = vpop.f32.mrf.mxu1  ;;  %3862 = vtanh.f32 %v1593_v35 }
 0x30f   : > { %3864 = vtanh.f32 %v1592_v3 }
 0x310   : > { %v1396_v59 = vpop.f32.mrf.mxu1  ;;  %3866 = vtanh.f32 %v1591_v58 }
 0x311   : > { %3868 = vtanh.f32 %v1590_v57 }
 0x312   : > { %v5200_v53 = vpop.f32.mrf.mxu1  ;;  %v3847_v1 = vpop.eup %3846  ;;  %3870 = vtanh.f32 %v1589_v7 }
 0x313   : > { %v3849_v28 = vpop.eup %3848  ;;  %v1664_v12 = vadd.f32 1.0, %v3847_v1  ;;  %3872 = vtanh.f32 %v1588_v2 }
 0x314   : > { %v1401_v29 = vpop.f32.mrf.mxu1  ;;  %v3851_v25 = vpop.eup %3850  ;;  %v1663_v13 = vadd.f32 1.0, %v3849_v28  ;;  %3874 = vtanh.f32 %v1587_v33 }
 0x315   : > { %v1662_v41 = vadd.f32 1.0, %v3851_v25  ;;  %v1696_v17 = vmul.f32 0.5, %v1664_v12  ;;  %3876 = vtanh.f32 %v1586_v10 }
 0x316   : > { %v5204_v20 = vpop.f32.mrf.mxu1  ;;  %v3853_v48 = vpop.eup %3852  ;;  %v1695_v34 = vmul.f32 0.5, %v1663_v13  ;;  %v574_v13 = vld [vmem:[%s6614_s4 + $0x78] sm:$0xff] }
 0x317   : > { %v1665_v27 = vadd.f32 1.0, %v3853_v48  ;;  %v3855_v14 = vpop.eup %3854  ;;  %v1694_v54 = vmul.f32 0.5, %v1662_v41  ;;  %v1728_v35 = vmul.f32 %v1696_v17, %v5138_v50  ;;  %3128 = vmatprep.mubr.f32.mxu1 %v574_v13 }
 0x318   : > { %v1406_v40 = vpop.f32.mrf.mxu1  ;;  %v3857_v24 = vpop.eup %3856  ;;  %v1661_v4 = vadd.f32 1.0, %v3855_v14  ;;  %v1727_v44 = vmul.f32 %v1695_v34, %v5128_v15  ;;  %v1478_v14 = vmul.f32 %v5200_v53, %v5200_v53 }
 0x319   : > { %v1697_v43 = vmul.f32 0.5, %v1665_v27  ;;  %v3859_v19 = vpop.eup %3858  ;;  %v1660_v11 = vadd.f32 1.0, %v3857_v24  ;;  %v1726_v50 = vmul.f32 %v1694_v54, %v5124_v39 }
 0x31a   : > { %v5208_v21 = vpop.f32.mrf.mxu1  ;;  %v3861_v61 = vpop.eup %3860  ;;  %v1693_v22 = vmul.f32 0.5, %v1661_v4 }
 0x31b   : > { %v1729_v30 = vmul.f32 %v1697_v43, %v5149_v6  ;;  %v1659_v6 = vadd.f32 1.0, %v3859_v19  ;;  %v3863_v1 = vpop.eup %3862  ;;  %v1658_v32 = vadd.f32 1.0, %v3861_v61  ;;  %v1692_v56 = vmul.f32 0.5, %v1660_v11 }
 0x31c   : > { %v1411_v31 = vpop.f32.mrf.mxu1  ;;  %v3865_v29 = vpop.eup %3864  ;;  %v1657_v16 = vadd.f32 1.0, %v3863_v1  ;;  %v1725_v15 = vmul.f32 %v1693_v22, %v5122_v36 }
 0x31d   : > { %1747 = vmatpush1.msra.mxu0 %v1729_v30  ;;  %v3867_v28 = vpop.eup %3866  ;;  %v1691_v45 = vmul.f32 0.5, %v1659_v6  ;;  %v1656_v57 = vadd.f32 1.0, %v3865_v29  ;;  %v1690_v12 = vmul.f32 0.5, %v1658_v32  ;;  %v1724_v48 = vmul.f32 %v1692_v56, %v5120_v5 }
 0x31e   : > { %v5215_v59 = vpop.f32.mrf.mxu1  ;;  %1748 = vmatprep.subr.mxu0 %v6645_v37  ;;  %v3869_v62 = vpop.eup %3868  ;;  %v1655_v7 = vadd.f32 1.0, %v3867_v28  ;;  %v1689_v27 = vmul.f32 0.5, %v1657_v16  ;;  %v1510_v30 = vmul.f32 %v1478_v14, %v5200_v53  ;;  %v1480_v31 = vmul.f32 %v5208_v21, %v5208_v21 }
 0x31f   : > { %1749 = vmatpush1.msra.mxu0 %v1728_v35  ;;  %v3871_v36 = vpop.eup %3870  ;;  %v1723_v40 = vmul.f32 %v1691_v45, %v5118_v18  ;;  %v1654_v2 = vadd.f32 1.0, %v3869_v62  ;;  %v1688_v41 = vmul.f32 0.5, %v1656_v57  ;;  %v1722_v17 = vmul.f32 %v1690_v12, %v5116_v55 }
 0x320   : > { %v1416_v3 = vpop.f32.mrf.mxu1  ;;  %1750 = vmatprep.subr.mxu0 %v6645_v37  ;;  %v3873_v63 = vpop.eup %3872  ;;  %v1653_v24 = vadd.f32 1.0, %v3871_v36  ;;  %v1687_v33 = vmul.f32 0.5, %v1655_v7  ;;  %v1479_v18 = vmul.f32 %v5204_v20, %v5204_v20  ;;  %v1721_v34 = vmul.f32 %v1689_v27, %v5114_v42 }
 0x321   : > { %1751 = vmatpush1.msra.mxu0 %v1727_v44  ;;  %v3875_v4 = vpop.eup %3874  ;;  %v1652_v19 = vadd.f32 1.0, %v3873_v63  ;;  %v1686_v11 = vmul.f32 0.5, %v1654_v2  ;;  %v1720_v54 = vmul.f32 %v1688_v41, %v5112_v51  ;;  %v1542_v32 = vmul.f32 0.044715, %v1510_v30 }
 0x322   : > { %v5221_v58 = vpop.f32.mrf.mxu1  ;;  %1752 = vmatprep.subr.mxu0 %v6645_v37  ;;  %v3877_v6 = vpop.eup %3876  ;;  %v1651_v22 = vadd.f32 1.0, %v3875_v4  ;;  %v1685_v44 = vmul.f32 0.5, %v1653_v24  ;;  %v1511_v3 = vmul.f32 %v1479_v18, %v5204_v20  ;;  %v1719_v51 = vmul.f32 %v1687_v33, %v5110_v49 }
 0x323   : > { %1753 = vmatpush1.msra.mxu0 %v1726_v50  ;;  %v1482_v10 = vmul.f32 %v5221_v58, %v5221_v58  ;;  %v1512_v56 = vmul.f32 %v1480_v31, %v5208_v21  ;;  %v1481_v50 = vmul.f32 %v5215_v59, %v5215_v59  ;;  %v1718_v57 = vmul.f32 %v1686_v11, %v5108_v38 }
 0x324   : > { %v1421_v25 = vpop.f32.mrf.mxu1  ;;  %1754 = vmatprep.subr.mxu0 %v6645_v37  ;;  %v1543_v62 = vmul.f32 0.044715, %v1511_v3  ;;  %v1717_v36 = vmul.f32 %v1685_v44, %v5106_v52  ;;  %v1574_v27 = vadd.f32 %v1542_v32, %v5200_v53 }
 0x325   : > { %1755 = vmatpush1.msra.mxu0 %v1725_v15  ;;  %v1514_v28 = vmul.f32 %v1482_v10, %v5221_v58  ;;  %v1650_v15 = vadd.f32 1.0, %v3877_v6  ;;  %v1684_v25 = vmul.f32 0.5, %v1652_v19  ;;  %v1513_v38 = vmul.f32 %v1481_v50, %v5215_v59 }
 0x326   : > { %v5227_v39 = vpop.f32.mrf.mxu1  ;;  %1756 = vmatprep.subr.mxu0 %v6645_v37  ;;  %v1575_v18 = vadd.f32 %v1543_v62, %v5204_v20  ;;  %v1606_v31 = vmul.f32 0.7978846, %v1574_v27  ;;  %v1476_v50 = vmul.f32 %v5184_v47, %v5184_v47 }
 0x327   : > { %1757 = vmatpush1.msra.mxu0 %v1724_v48  ;;  %v1483_v42 = vmul.f32 %v5227_v39, %v5227_v39  ;;  %v1683_v48 = vmul.f32 0.5, %v1651_v22  ;;  %v1682_v41 = vmul.f32 0.5, %v1650_v15  ;;  %v1475_v22 = vmul.f32 %v5174_v26, %v5174_v26 }
 0x328   : > { %v1426_v5 = vpop.f32.mrf.mxu1  ;;  %1758 = vmatprep.subr.mxu0 %v6645_v37  ;;  %v1607_v44 = vmul.f32 0.7978846, %v1575_v18  ;;  %3878 = vtanh.f32 %v1606_v31  ;;  %v1508_v27 = vmul.f32 %v1476_v50, %v5184_v47 }
 0x329   : > { %1759 = vmatpush1.msra.mxu0 %v1723_v40  ;;  %v1515_v49 = vmul.f32 %v1483_v42, %v5227_v39  ;;  %v1544_v40 = vmul.f32 0.044715, %v1512_v56  ;;  %v1546_v5 = vmul.f32 0.044715, %v1514_v28  ;;  %v1715_v30 = vmul.f32 %v1683_v48, %v5102_v23 }
 0x32a   : > { %v5238_v43 = vpop.f32.mrf.mxu1  ;;  %1760 = vmatprep.subr.mxu0 %v6645_v37  ;;  %v1474_v42 = vmul.f32 %v5163_v9, %v5163_v9  ;;  %v1540_v18 = vmul.f32 0.044715, %v1508_v27 }
 0x32b   : > { %v1484_v55 = vmul.f32 %v5238_v43, %v5238_v43  ;;  %1761 = vmatpush1.msra.mxu0 %v1722_v17  ;;  %v1716_v17 = vmul.f32 %v1684_v25, %v5104_v0  ;;  %v1547_v24 = vmul.f32 0.044715, %v1515_v49  ;;  %v1545_v0 = vmul.f32 0.044715, %v1513_v38 }
 0x32c   : > { %v1431_v8 = vpop.f32.mrf.mxu1  ;;  %1762 = vmatprep.subr.mxu0 %v6645_v37  ;;  %v1578_v19 = vadd.f32 %v1546_v5, %v5221_v58 }
 0x32d   : > { %v1516_v35 = vmul.f32 %v1484_v55, %v5238_v43  ;;  %1763 = vmatpush1.msra.mxu0 %v1721_v34  ;;  %v1576_v55 = vadd.f32 %v1544_v40, %v5208_v21  ;;  %v1579_v23 = vadd.f32 %v1547_v24, %v5227_v39 }
 0x32e   : > { %v5256_v61 = vpop.f32.mrf.mxu1  ;;  %1764 = vmatprep.subr.mxu0 %v6645_v37 }
 0x32f   : > { %v1485_v1 = vmul.f32 %v5256_v61, %v5256_v61  ;;  %1765 = vmatpush1.msra.mxu0 %v1720_v54  ;;  %v1548_v16 = vmul.f32 0.044715, %v1516_v35  ;;  %v1714_v54 = vmul.f32 %v1682_v41, %v5100_v60  ;;  %v1608_v60 = vmul.f32 0.7978846, %v1576_v55 }
 0x330   : > { %v1436_v29 = vpop.f32.mrf.mxu1  ;;  %1766 = vmatprep.subr.mxu0 %v6645_v37  ;;  %v1611_v15 = vmul.f32 0.7978846, %v1579_v23 }
 0x331   : > { %v1517_v45 = vmul.f32 %v1485_v1, %v5256_v61  ;;  %1767 = vmatpush1.msra.mxu0 %v1719_v51  ;;  %v1580_v63 = vadd.f32 %v1548_v16, %v5238_v43  ;;  %v1577_v51 = vadd.f32 %v1545_v0, %v5215_v59  ;;  %v1610_v29 = vmul.f32 0.7978846, %v1578_v19 }
 0x332   : > { %v5271_v12 = vpop.f32.mrf.mxu1  ;;  %1768 = vmatprep.subr.mxu0 %v6645_v37  ;;  %v1506_v16 = vmul.f32 %v1474_v42, %v5163_v9 }
 0x333   : > { %v1549_v7 = vmul.f32 0.044715, %v1517_v45  ;;  %v1486_v13 = vmul.f32 %v5271_v12, %v5271_v12  ;;  %1769 = vmatpush1.msra.mxu0 %v1718_v57  ;;  %v1612_v10 = vmul.f32 0.7978846, %v1580_v63  ;;  %v1477_v45 = vmul.f32 %v5194_v46, %v5194_v46 }
 0x334   : > { %v1441_v14 = vpop.f32.mrf.mxu1  ;;  %1770 = vmatprep.subr.mxu0 %v6645_v37  ;;  %v1507_v57 = vmul.f32 %v1475_v22, %v5174_v26  ;;  %v1609_v62 = vmul.f32 0.7978846, %v1577_v51  ;;  %v1538_v63 = vmul.f32 0.044715, %v1506_v16 }
 0x335   : > { %v1518_v2 = vmul.f32 %v1486_v13, %v5271_v12  ;;  %v1581_v52 = vadd.f32 %v1549_v7, %v5256_v61  ;;  %1771 = vmatpush1.msra.mxu0 %v1717_v36  ;;  %3880 = vtanh.f32 %v1612_v10  ;;  %v1509_v38 = vmul.f32 %v1477_v45, %v5194_v46  ;;  %v3879_v10 = vpop.eup %3878 }
 0x336   : > { %v5284_v33 = vpop.f32.mrf.mxu1  ;;  %1772 = vmatprep.subr.mxu0 %v6645_v37  ;;  %v1539_v41 = vmul.f32 0.044715, %v1507_v57  ;;  %v1570_v55 = vadd.f32 %v1538_v63, %v5163_v9 }
 0x337   : > { %v1550_v4 = vmul.f32 0.044715, %v1518_v2  ;;  %v1487_v34 = vmul.f32 %v5284_v33, %v5284_v33  ;;  %1773 = vmatpush1.msra.mxu0 %v1716_v17  ;;  %v1613_v35 = vmul.f32 0.7978846, %v1581_v52 }
 0x338   : > { %v1446_v8 = vpop.f32.mrf.mxu1  ;;  %1774 = vmatprep.subr.mxu0 %v6645_v37  ;;  %v1571_v0 = vadd.f32 %v1539_v41, %v5174_v26 }
 0x339   : > { %v1519_v11 = vmul.f32 %v1487_v34, %v5284_v33  ;;  %1775 = vmatpush1.msra.mxu0 %v1715_v30  ;;  %v1582_v3 = vadd.f32 %v1550_v4, %v5271_v12  ;;  %3882 = vtanh.f32 %v1613_v35  ;;  %v1541_v34 = vmul.f32 0.044715, %v1509_v38 }
 0x33a   : > { %v5299_v6 = vpop.f32.mrf.mxu1  ;;  %1776 = vmatprep.subr.mxu0 %v6645_v37  ;;  %3884 = vtanh.f32 %v1607_v44  ;;  %v1603_v51 = vmul.f32 0.7978846, %v1571_v0 }
 0x33b   : > { %v1488_v1 = vmul.f32 %v5299_v6, %v5299_v6  ;;  %v1551_v32 = vmul.f32 0.044715, %v1519_v11  ;;  %1777 = vmatpush1.msra.mxu0 %v1714_v54  ;;  %v1614_v49 = vmul.f32 0.7978846, %v1582_v3  ;;  %3886 = vtanh.f32 %v1608_v60 }
 0x33c   : > { %v1451_v56 = vpop.f32.mrf.mxu1  ;;  %1778 = vmatprep.subr.mxu0 %v6645_v37  ;;  %3888 = vtanh.f32 %v1610_v29  ;;  %v1572_v11 = vadd.f32 %v1540_v18, %v5184_v47  ;;  %v1573_v35 = vadd.f32 %v1541_v34, %v5194_v46  ;;  %v1602_v3 = vmul.f32 0.7978846, %v1570_v55 }
 0x33d   : > { %v1520_v28 = vmul.f32 %v1488_v1, %v5299_v6  ;;  %v1583_v7 = vadd.f32 %v1551_v32, %v5284_v33  ;;  %3890 = vtanh.f32 %v1611_v15 }
 0x33e   : > { %v5315_v25 = vpop.f32.mrf.mxu1  ;;  %3892 = vtanh.f32 %v1614_v49  ;;  %v1604_v50 = vmul.f32 0.7978846, %v1572_v11  ;;  %v1605_v45 = vmul.f32 0.7978846, %v1573_v35 }
 0x33f   : > { %v1552_v48 = vmul.f32 0.044715, %v1520_v28  ;;  %v1489_v13 = vmul.f32 %v5315_v25, %v5315_v25  ;;  %3894 = vtanh.f32 %v1609_v62  ;;  %v1615_v17 = vmul.f32 0.7978846, %v1583_v7 }
 0x340   : > { %v1456_v36 = vpop.f32.mrf.mxu1 }
 0x341   : > { %v1584_v40 = vadd.f32 %v1552_v48, %v5299_v6  ;;  %v1521_v14 = vmul.f32 %v1489_v13, %v5315_v25 }
 0x342   : > { %v5325_v5 = vpop.f32.mrf.mxu1  ;;  %v3881_v23 = vpop.eup %3880 }
 0x343   : > { %v1616_v2 = vmul.f32 0.7978846, %v1584_v40  ;;  %v1553_v24 = vmul.f32 0.044715, %v1521_v14  ;;  %v2229_v4 = vmul.f32 %v5325_v5, %v5325_v5  ;;  %v1676_v15 = vadd.f32 1.0, %v3881_v23 }
 0x344   : > { %v5327_v52 = vpop.f32.mrf.mxu1 }
 0x345   : > { %6663 = vst [vmem:[#allocation9_spill] sm:$0xff] %v5327_v52  ;;  %3896 = vtanh.f32 %v1616_v2  ;;  %v1585_v30 = vadd.f32 %v1553_v24, %v5315_v25  ;;  %v2261_v54 = vmul.f32 %v5325_v5, %v2229_v4  ;;  %v2228_v42 = vmul.f32 %v5327_v52, %v5327_v52 }
 0x346   : > { %v5332_v31 = vpop.f32.mrf.mxu1  ;;  %3898 = vtanh.f32 %v1615_v17  ;;  %v3883_v44 = vpop.eup %3882  ;;  %v1708_v17 = vmul.f32 0.5, %v1676_v15  ;;  %v5360_v4 = vadd.f32 1.0, %v3879_v10 }
 0x347   : > { %v1617_v8 = vmul.f32 0.7978846, %v1585_v30  ;;  %v2231_v1 = vmul.f32 %v5332_v31, %v5332_v31  ;;  %v3885_v60 = vpop.eup %3884  ;;  %v2293_v29 = vmul.f32 0.044715, %v2261_v54  ;;  %v2260_v28 = vmul.f32 %v2228_v42, %v5327_v52 }
 0x348   : > { %v5336_v19 = vpop.f32.mrf.mxu1  ;;  %v3887_v56 = vpop.eup %3886  ;;  %v1677_v57 = vadd.f32 1.0, %v3883_v44  ;;  %v5363_v0 = vadd.f32 1.0, %v3885_v60  ;;  %v5379_v60 = vmul.f32 %v1708_v17, %v5238_v43 }
 0x349   : > { %3900 = vtanh.f32 %v1617_v8  ;;  %v3889_v16 = vpop.eup %3888  ;;  %v2263_v62 = vmul.f32 %v5332_v31, %v2231_v1  ;;  %v2230_v7 = vmul.f32 %v5336_v19, %v5336_v19  ;;  %v1672_v36 = vadd.f32 1.0, %v3887_v56 }
 0x34a   : > { %v5343_v22 = vpop.f32.mrf.mxu1  ;;  %v3891_v48 = vpop.eup %3890  ;;  %3902 = vtanh.f32 %v1602_v3  ;;  %v1674_v38 = vadd.f32 1.0, %v3889_v16  ;;  %v2325_v14 = vadd.f32 %v5325_v5, %v2293_v29  ;;  %v2292_v63 = vmul.f32 0.044715, %v2260_v28 }
 0x34b   : > { %v3893_v13 = vpop.eup %3892  ;;  %3904 = vtanh.f32 %v1603_v51  ;;  %v1675_v41 = vadd.f32 1.0, %v3891_v48  ;;  %v1709_v24 = vmul.f32 0.5, %v1677_v57  ;;  %v2295_v30 = vmul.f32 0.044715, %v2263_v62 }
 0x34c   : > { %v5347_v32 = vpop.f32.mrf.mxu1  ;;  %v3895_v40 = vpop.eup %3894  ;;  %3906 = vtanh.f32 %v1604_v50  ;;  %v1678_v34 = vadd.f32 1.0, %v3893_v13  ;;  %v2262_v55 = vmul.f32 %v2230_v7, %v5336_v19  ;;  %v5365_v8 = vmul.f32 0.5, %v1672_v36 }
 0x34d   : > { %3908 = vtanh.f32 %v1605_v45  ;;  %v5367_v11 = vadd.f32 1.0, %v3895_v40  ;;  %v5373_v35 = vmul.f32 0.5, %v1674_v38  ;;  %v2357_v44 = vmul.f32 0.7978846, %v2325_v14 }
 0x34e   : > { %v5350_v49 = vpop.f32.mrf.mxu1  ;;  %v2324_v3 = vadd.f32 %v2292_v63, %v5327_v52  ;;  %v5376_v1 = vmul.f32 0.5, %v1675_v41  ;;  %v5382_v51 = vmul.f32 %v1709_v24, %v5256_v61  ;;  %v2233_v56 = vmul.f32 %v5343_v22, %v5343_v22 }
 0x34f   : > { %v1710_v28 = vmul.f32 0.5, %v1678_v34  ;;  %v2327_v16 = vadd.f32 %v5332_v31, %v2295_v30  ;;  %v2294_v45 = vmul.f32 0.044715, %v2262_v55  ;;  %v2232_v15 = vmul.f32 %v5347_v32, %v5347_v32 }
 0x350   : > { %v5355_v27 = vpop.f32.mrf.mxu1  ;;  %3910 = vtanh.f32 %v2357_v44  ;;  %v2356_v13 = vmul.f32 0.7978846, %v2324_v3  ;;  %v2265_v38 = vmul.f32 %v5343_v22, %v2233_v56  ;;  %v2235_v56 = vmul.f32 %v5350_v49, %v5350_v49 }
 0x351   : > { %v1742_v41 = vmul.f32 %v1710_v28, %v5271_v12  ;;  %v2359_v17 = vmul.f32 0.7978846, %v2327_v16  ;;  %v2326_v24 = vadd.f32 %v2294_v45, %v5336_v19  ;;  %v2264_v34 = vmul.f32 %v2232_v15, %v5347_v32 }
 0x352   : > { %v3897_v2 = vpop.eup %3896  ;;  %v5358_v18 = vpop.f32.mrf.mxu1  ;;  %3912 = vtanh.f32 %v2356_v13 }
 0x353   : > { %v2237_v54 = vmul.f32 %v5358_v18, %v5358_v18  ;;  %v3899_v23 = vpop.eup %3898  ;;  %v1680_v10 = vadd.f32 1.0, %v3897_v2  ;;  %3914 = vtanh.f32 %v2359_v17 }
 0x354   : > { %v5371_v42 = vpop.f32.mrf.mxu1  ;;  %v1679_v57 = vadd.f32 1.0, %v3899_v23 }
 0x355   : > { %v2269_v43 = vmul.f32 %v5358_v18, %v2237_v54  ;;  %v1712_v7 = vmul.f32 0.5, %v1680_v10  ;;  %v2236_v14 = vmul.f32 %v5371_v42, %v5371_v42 }
 0x356   : > { %v5386_v50 = vpop.f32.mrf.mxu1  ;;  %v3901_v29 = vpop.eup %3900  ;;  %v1711_v55 = vmul.f32 0.5, %v1679_v57 }
 0x357   : > { %v1681_v48 = vadd.f32 1.0, %v3901_v29  ;;  %v2239_v61 = vmul.f32 %v5386_v50, %v5386_v50  ;;  %v5407_v30 = vpop.eup %3902  ;;  %v2301_v23 = vmul.f32 0.044715, %v2269_v43  ;;  %v1744_v12 = vmul.f32 %v1712_v7, %v5299_v6 }
 0x358   : > { %v5394_v62 = vpop.f32.mrf.mxu1  ;;  %v5414_v3 = vpop.eup %3904  ;;  %v2234_v29 = vmul.f32 %v5355_v27, %v5355_v27  ;;  %v2358_v43 = vmul.f32 0.7978846, %v2326_v24  ;;  %v2296_v7 = vmul.f32 0.044715, %v2264_v34 }
 0x359   : > { %v2238_v36 = vmul.f32 %v5394_v62, %v5394_v62  ;;  %v1713_v40 = vmul.f32 0.5, %v1681_v48  ;;  %v2271_v63 = vmul.f32 %v5386_v50, %v2239_v61  ;;  %v5422_v16 = vpop.eup %3906  ;;  %v2297_v61 = vmul.f32 0.044715, %v2265_v38 }
 0x35a   : > { %v5402_v2 = vpop.f32.mrf.mxu1  ;;  %v5430_v48 = vpop.eup %3908  ;;  %3916 = vtanh.f32 %v2358_v43 }
 0x35b   : > { %v1745_v54 = vmul.f32 %v1713_v40, %v5315_v25  ;;  %v2241_v10 = vmul.f32 %v5402_v2, %v5402_v2  ;;  %v2270_v28 = vmul.f32 %v2238_v36, %v5394_v62  ;;  %v2268_v25 = vmul.f32 %v2236_v14, %v5371_v42 }
 0x35c   : > { %v5412_v44 = vpop.f32.mrf.mxu1  ;;  %v2303_v45 = vmul.f32 0.044715, %v2271_v63  ;;  %v1743_v36 = vmul.f32 %v1711_v55, %v5284_v33  ;;  %v2333_v40 = vadd.f32 %v5358_v18, %v2301_v23  ;;  %v2266_v33 = vmul.f32 %v2234_v29, %v5355_v27 }
 0x35d   : > { %v2273_v15 = vmul.f32 %v5402_v2, %v2241_v10  ;;  %v2240_v57 = vmul.f32 %v5412_v44, %v5412_v44  ;;  %1779 = vmatpush2.msra.mxu0 %v1745_v54  ;;  %v2267_v54 = vmul.f32 %v5350_v49, %v2235_v56  ;;  %v2302_v52 = vmul.f32 0.044715, %v2270_v28 }
 0x35e   : > { %v5428_v6 = vpop.f32.mrf.mxu1  ;;  %1780 = vmatprep.subr.mxu0 %v6645_v37  ;;  %v2300_v24 = vmul.f32 0.044715, %v2268_v25  ;;  %v2335_v34 = vadd.f32 %v5386_v50, %v2303_v45  ;;  %v2365_v29 = vmul.f32 0.7978846, %v2333_v40 }
 0x35f   : > { %v2305_v14 = vmul.f32 0.044715, %v2273_v15  ;;  %v2272_v63 = vmul.f32 %v2240_v57, %v5412_v44  ;;  %1781 = vmatpush2.msra.mxu0 %v1744_v12  ;;  %v2243_v13 = vmul.f32 %v5428_v6, %v5428_v6  ;;  %v2329_v15 = vadd.f32 %v5343_v22, %v2297_v61 }
 0x360   : > { %v5436_v10 = vpop.f32.mrf.mxu1  ;;  %1782 = vmatprep.subr.mxu0 %v6645_v37  ;;  %v2334_v57 = vadd.f32 %v2302_v52, %v5394_v62  ;;  %v2332_v43 = vadd.f32 %v2300_v24, %v5371_v42  ;;  %v2367_v61 = vmul.f32 0.7978846, %v2335_v34  ;;  %v1738_v24 = vmul.f32 %v5373_v35, %v5221_v58 }
 0x361   : > { %v2242_v38 = vmul.f32 %v5436_v10, %v5436_v10  ;;  %v2337_v55 = vadd.f32 %v5402_v2, %v2305_v14  ;;  %1783 = vmatpush2.msra.mxu0 %v1743_v36  ;;  %v2304_v12 = vmul.f32 0.044715, %v2272_v63  ;;  %v2275_v56 = vmul.f32 %v5428_v6, %v2243_v13  ;;  %v5458_v63 = vpop.eup %3910 }
 0x362   : > { %v5447_v23 = vpop.f32.mrf.mxu1  ;;  %1784 = vmatprep.subr.mxu0 %v6645_v37  ;;  %v2299_v13 = vmul.f32 0.044715, %v2267_v54  ;;  %v1739_v54 = vmul.f32 %v5376_v1, %v5227_v39  ;;  %v2366_v34 = vmul.f32 0.7978846, %v2334_v57  ;;  %v5483_v58 = vpop.eup %3912  ;;  %v1703_v35 = vmul.f32 0.5, %v5363_v0 }
 0x363   : > { %v2274_v28 = vmul.f32 %v2242_v38, %v5436_v10  ;;  %v2369_v25 = vmul.f32 0.7978846, %v2337_v55  ;;  %1785 = vmatpush2.msra.mxu0 %v1742_v41  ;;  %v2336_v36 = vadd.f32 %v2304_v12, %v5412_v44  ;;  %v2307_v17 = vmul.f32 0.044715, %v2275_v56 }
 0x364   : > { %v5453_v45 = vpop.f32.mrf.mxu1  ;;  %1786 = vmatprep.subr.mxu0 %v6645_v37  ;;  %v2298_v38 = vmul.f32 0.044715, %v2266_v33  ;;  %v1705_v12 = vmul.f32 0.5, %v5367_v11  ;;  %v2328_v33 = vadd.f32 %v2296_v7, %v5347_v32  ;;  %v2331_v11 = vadd.f32 %v5350_v49, %v2299_v13  ;;  %v3915_v13 = vpop.eup %3914 }
 0x365   : > { %v2306_v14 = vmul.f32 0.044715, %v2274_v28  ;;  %1787 = vmatpush2.msra.mxu0 %v5382_v51  ;;  %3918 = vtanh.f32 %v2369_v25  ;;  %v2368_v40 = vmul.f32 0.7978846, %v2336_v36  ;;  %v2339_v52 = vadd.f32 %v5428_v6, %v2307_v17 }
 0x366   : > { %v5462_v41 = vpop.f32.mrf.mxu1  ;;  %1788 = vmatprep.subr.mxu0 %v6645_v37  ;;  %3920 = vtanh.f32 %v2365_v29  ;;  %v2364_v28 = vmul.f32 0.7978846, %v2332_v43  ;;  %v2361_v7 = vmul.f32 0.7978846, %v2329_v15  ;;  %v2330_v29 = vadd.f32 %v2298_v38, %v5355_v27 }
 0x367   : > { %v2338_v55 = vadd.f32 %v2306_v14, %v5436_v10  ;;  %1789 = vmatpush2.msra.mxu0 %v5379_v60  ;;  %3922 = vtanh.f32 %v2368_v40  ;;  %v2371_v56 = vmul.f32 0.7978846, %v2339_v52  ;;  %v1669_v60 = vadd.f32 1.0, %v5430_v48 }
 0x368   : > { %v5472_v51 = vpop.f32.mrf.mxu1  ;;  %1790 = vmatprep.subr.mxu0 %v6645_v37  ;;  %3924 = vtanh.f32 %v2367_v61  ;;  %v1737_v25 = vmul.f32 %v1705_v12, %v5215_v59  ;;  %v2360_v57 = vmul.f32 0.7978846, %v2328_v33  ;;  %v1668_v17 = vadd.f32 1.0, %v5422_v16 }
 0x369   : > { %v2370_v39 = vmul.f32 0.7978846, %v2338_v55  ;;  %1791 = vmatpush2.msra.mxu0 %v1739_v54  ;;  %3926 = vtanh.f32 %v2371_v56  ;;  %v1702_v48 = vmul.f32 0.5, %v5360_v4  ;;  %v1736_v15 = vmul.f32 %v5365_v8, %v5208_v21  ;;  %v3917_v21 = vpop.eup %3916 }
 0x36a   : > { %v5478_v1 = vpop.f32.mrf.mxu1  ;;  %1792 = vmatprep.subr.mxu0 %v6645_v37  ;;  %v2363_v14 = vmul.f32 0.7978846, %v2331_v11  ;;  %v2362_v59 = vmul.f32 0.7978846, %v2330_v29  ;;  %v1667_v16 = vadd.f32 1.0, %v5414_v3  ;;  %v1701_v38 = vmul.f32 0.5, %v1669_v60 }
 0x36b   : > { %3928 = vtanh.f32 %v2370_v39  ;;  %1793 = vmatpush2.msra.mxu0 %v1738_v24  ;;  %v1735_v43 = vmul.f32 %v1703_v35, %v5204_v20  ;;  %v1666_v8 = vadd.f32 1.0, %v5407_v30  ;;  %v1700_v61 = vmul.f32 0.5, %v1668_v17 }
 0x36c   : > { %v5487_v36 = vpop.f32.mrf.mxu1  ;;  %3930 = vtanh.f32 %v2366_v34  ;;  %1794 = vmatprep.subr.mxu0 %v6645_v37  ;;  %v1734_v40 = vmul.f32 %v1702_v48, %v5200_v53  ;;  %v1699_v3 = vmul.f32 0.5, %v1667_v16  ;;  %v1733_v55 = vmul.f32 %v1701_v38, %v5194_v46 }
 0x36d   : > { %3932 = vtanh.f32 %v2364_v28  ;;  %1795 = vmatpush2.msra.mxu0 %v1737_v25  ;;  %v1698_v33 = vmul.f32 0.5, %v1666_v8  ;;  %v1732_v53 = vmul.f32 %v1700_v61, %v5184_v47  ;;  %v2423_v35 = vadd.f32 1.0, %v3915_v13 }
 0x36e   : > { %v5494_v0 = vpop.f32.mrf.mxu1  ;;  %3934 = vtanh.f32 %v2361_v7  ;;  %1796 = vmatprep.subr.mxu0 %v6645_v37  ;;  %v1731_v46 = vmul.f32 %v1699_v3, %v5174_v26  ;;  %v2422_v25 = vadd.f32 1.0, %v3917_v21  ;;  %v559_v26 = vld [vmem:[%s6614_s4] sm:$0xff]  ;;  %v5530_v16 = vadd.f32 1.0, %v5458_v63 }
 0x36f   : > { %3936 = vtanh.f32 %v2360_v57  ;;  %1797 = vmatpush2.msra.mxu0 %v1736_v15  ;;  %v1730_v47 = vmul.f32 %v1698_v33, %v5163_v9  ;;  %v562_v9 = vld [vmem:[%s6614_s4 + $0x18] sm:$0xff]  ;;  %v5533_v38 = vadd.f32 1.0, %v5483_v58  ;;  %v5541_v63 = vmul.f32 0.5, %v2423_v35 }
 0x370   : > { %v5499_v4 = vpop.f32.mrf.mxu1  ;;  %1798 = vmatprep.subr.mxu0 %v6645_v37  ;;  %3938 = vtanh.f32 %v2363_v14  ;;  %v5543_v58 = vmul.f32 0.5, %v2422_v25 }
 0x371   : > { %1799 = vmatpush2.msra.mxu0 %v1735_v43  ;;  %3940 = vtanh.f32 %v2362_v59 }
 0x372   : > { %v5504_v52 = vpop.f32.mrf.mxu1  ;;  %1800 = vmatprep.subr.mxu0 %v6645_v37  ;;  %v3919_v20 = vpop.eup %3918 }
 0x373   : > { %1801 = vmatpush2.msra.mxu0 %v1734_v40  ;;  %v3921_v54 = vpop.eup %3920  ;;  %v2433_v56 = vadd.f32 1.0, %v3919_v20 }
 0x374   : > { %v5508_v12 = vpop.f32.mrf.mxu1  ;;  %1802 = vmatprep.subr.mxu0 %v6645_v37  ;;  %v3923_v30 = vpop.eup %3922  ;;  %v2429_v43 = vadd.f32 1.0, %v3921_v54 }
 0x375   : > { %1803 = vmatpush2.msra.mxu0 %v1733_v55  ;;  %v3925_v34 = vpop.eup %3924  ;;  %v2432_v60 = vadd.f32 1.0, %v3923_v30  ;;  %v2465_v14 = vmul.f32 0.5, %v2433_v56 }
 0x376   : > { %v5512_v24 = vpop.f32.mrf.mxu1  ;;  %1804 = vmatprep.subr.mxu0 %v6645_v37  ;;  %v3927_v11 = vpop.eup %3926  ;;  %v2431_v15 = vadd.f32 1.0, %v3925_v34 }
 0x377   : > { %1805 = vmatpush2.msra.mxu0 %v1732_v53  ;;  %v2435_v7 = vadd.f32 1.0, %v3927_v11  ;;  %v2464_v20 = vmul.f32 0.5, %v2432_v60  ;;  %v2255_v55 = vmul.f32 %v5512_v24, %v5512_v24  ;;  %v2497_v34 = vmul.f32 %v5402_v2, %v2465_v14  ;;  %v561_v11 = vld [vmem:[%s6614_s4 + $0x10] sm:$0xff] }
 0x378   : > { %v5516_v28 = vpop.f32.mrf.mxu1  ;;  %v3929_v39 = vpop.eup %3928  ;;  %1806 = vmatprep.subr.mxu0 %v6645_v37  ;;  %v2463_v53 = vmul.f32 0.5, %v2431_v15 }
 0x379   : > { %v3931_v29 = vpop.eup %3930  ;;  %v2434_v57 = vadd.f32 1.0, %v3929_v39  ;;  %1807 = vmatpush2.msra.mxu0 %v1731_v46  ;;  %v2467_v59 = vmul.f32 0.5, %v2435_v7  ;;  %v2496_v25 = vmul.f32 %v2464_v20, %v5412_v44 }
 0x37a   : > { %v5520_v17 = vpop.f32.mrf.mxu1  ;;  %v3933_v48 = vpop.eup %3932  ;;  %1808 = vmatprep.subr.mxu0 %v6645_v37  ;;  %v2430_v40 = vadd.f32 1.0, %v3931_v29  ;;  %v564_v29 = vld [vmem:[%s6614_s4 + $0x28] sm:$0xff] }
 0x37b   : > { %v3935_v13 = vpop.eup %3934  ;;  %v2466_v21 = vmul.f32 0.5, %v2434_v57  ;;  %1809 = vmatpush2.msra.mxu0 %v1730_v47  ;;  %v2499_v3 = vmul.f32 %v5428_v6, %v2467_v59  ;;  %v2428_v54 = vadd.f32 1.0, %v3933_v48  ;;  %v2254_v6 = vmul.f32 %v5516_v28, %v5516_v28 }
 0x37c   : > { %v5535_v8 = vpop.f32.mrf.mxu1  ;;  %v3937_v61 = vpop.eup %3936  ;;  %1811 = vmatmul.mubr.f32.vlgmr.msra.gmra.mxu0 %v559_v26  ;;  %2516 = vmatprep.subr.mxu0 %v6645_v37  ;;  %v2257_v56 = vmul.f32 %v5520_v17, %v5520_v17  ;;  %v2425_v39 = vadd.f32 1.0, %v3935_v13  ;;  %v2461_v47 = vmul.f32 0.5, %v2429_v43  ;;  %v2462_v35 = vmul.f32 0.5, %v2430_v40  ;;  %v563_v43 = vld [vmem:[%s6614_s4 + $0x20] sm:$0xff] }
 0x37d   : > { %v2498_v30 = vmul.f32 %v2466_v21, %v5436_v10  ;;  %1815 = vmatprep.mubr.f32.mxu0 %v562_v9  ;;  %v3939_v33 = vpop.eup %3938  ;;  %2517 = vmatpush1.msra.mxu0 %v2499_v3  ;;  %v2424_v60 = vadd.f32 1.0, %v3937_v61  ;;  %v2287_v10 = vmul.f32 %v5512_v24, %v2255_v55  ;;  %v2256_v7 = vmul.f32 %v5535_v8, %v5535_v8  ;;  %v566_v21 = vld [vmem:[%s6614_s4 + $0x38] sm:$0xff] }
 0x37e   : > { %v3941_v46 = vpop.eup %3940  ;;  %v5557_v2 = vpop.f32.mrf.mxu1  ;;  %2518 = vmatprep.subr.mxu0 %v6645_v37  ;;  %v2253_v57 = vmul.f32 %v5504_v52, %v5504_v52  ;;  %v2427_v26 = vadd.f32 1.0, %v3939_v33  ;;  %v2252_v48 = vmul.f32 %v5508_v12, %v5508_v12  ;;  %v2289_v15 = vmul.f32 %v5520_v17, %v2257_v56 }
 0x37f   : > { %2519 = vmatpush1.msra.mxu0 %v2498_v30  ;;  %v2288_v14 = vmul.f32 %v2256_v7, %v5535_v8  ;;  %v2426_v59 = vadd.f32 1.0, %v3941_v46  ;;  %v2460_v9 = vmul.f32 0.5, %v2428_v54  ;;  %v2495_v13 = vmul.f32 %v5386_v50, %v2463_v53 }
 0x380   : > { %1816 = vmatmul.mubr.f32.gmra.mxu0 %v561_v11  ;;  %2520 = vmatprep.subr.mxu0 %v6645_v37  ;;  %v2286_v44 = vmul.f32 %v2254_v6, %v5516_v28  ;;  %v2251_v61 = vmul.f32 %v5494_v0, %v5494_v0  ;;  %v2319_v40 = vmul.f32 0.044715, %v2287_v10  ;;  %v2321_v20 = vmul.f32 0.044715, %v2289_v15  ;;  %v5581_v55 = vpop.f32.mrf.mxu1 }
 0x381   : > { %2521 = vmatpush1.msra.mxu0 %v2497_v34  ;;  %1820 = vmatprep.mubr.f32.mxu0 %v564_v29  ;;  %v2320_v3 = vmul.f32 0.044715, %v2288_v14  ;;  %v5584_v50 = vmul.f32 0.5, %v2425_v39  ;;  %v2493_v54 = vmul.f32 %v5358_v18, %v2461_v47  ;;  %v2494_v30 = vmul.f32 %v2462_v35, %v5394_v62  ;;  %v565_v39 = vld [vmem:[%s6614_s4 + $0x30] sm:$0xff]  ;;  %v568_v35 = vld [vmem:[%s6614_s4 + $0x48] sm:$0xff] }
 0x382   : > { %2522 = vmatprep.subr.mxu0 %v6645_v37  ;;  %v2285_v33 = vmul.f32 %v5504_v52, %v2253_v57  ;;  %v2459_v53 = vmul.f32 0.5, %v2427_v26  ;;  %v2250_v34 = vmul.f32 %v5499_v4, %v5499_v4  ;;  %v2284_v6 = vmul.f32 %v2252_v48, %v5508_v12 }
 0x383   : > { %2523 = vmatpush1.msra.mxu0 %v2496_v25  ;;  %v2353_v56 = vadd.f32 %v5520_v17, %v2321_v20  ;;  %v2318_v11 = vmul.f32 0.044715, %v2286_v44  ;;  %v2352_v46 = vadd.f32 %v2320_v3, %v5535_v8  ;;  %v2259_v18 = vmul.f32 %v5557_v2, %v5557_v2  ;;  %v570_v20 = vld [vmem:[%s6614_s4 + $0x58] sm:$0xff] }
 0x384   : > { %1821 = vmatmul.mubr.f32.gmra.mxu0 %v563_v43  ;;  %2524 = vmatprep.subr.mxu0 %v6645_v37  ;;  %v2258_v62 = vmul.f32 %v5581_v55, %v5581_v55  ;;  %v2458_v10 = vmul.f32 0.5, %v2426_v59  ;;  %v2492_v7 = vmul.f32 %v2460_v9, %v5371_v42  ;;  %v2283_v29 = vmul.f32 %v5494_v0, %v2251_v61  ;;  %v567_v9 = vld [vmem:[%s6614_s4 + $0x40] sm:$0xff] }
 0x385   : > { %2525 = vmatpush1.msra.mxu0 %v2495_v13  ;;  %1825 = vmatprep.mubr.f32.mxu0 %v566_v21  ;;  %v2351_v47 = vadd.f32 %v5512_v24, %v2319_v40  ;;  %v2317_v25 = vmul.f32 0.044715, %v2285_v33  ;;  %v2385_v57 = vmul.f32 0.7978846, %v2353_v56  ;;  %v2291_v26 = vmul.f32 %v5557_v2, %v2259_v18 }
 0x386   : > { %2526 = vmatprep.subr.mxu0 %v6645_v37  ;;  %v2290_v48 = vmul.f32 %v2258_v62, %v5581_v55  ;;  %v2456_v15 = vmul.f32 0.5, %v2424_v60  ;;  %v2491_v42 = vmul.f32 %v5350_v49, %v2459_v53  ;;  %v2249_v14 = vmul.f32 %v5478_v1, %v5478_v1 }
 0x387   : > { %2527 = vmatpush1.msra.mxu0 %v2494_v30  ;;  %v2282_v59 = vmul.f32 %v2250_v34, %v5499_v4  ;;  %v2316_v13 = vmul.f32 0.044715, %v2284_v6  ;;  %v2350_v44 = vadd.f32 %v2318_v11, %v5516_v28  ;;  %v2384_v43 = vmul.f32 0.7978846, %v2352_v46  ;;  %v569_v46 = vld [vmem:[%s6614_s4 + $0x50] sm:$0xff] }
 0x388   : > { %1826 = vmatmul.mubr.f32.gmra.mxu0 %v565_v39  ;;  %2528 = vmatprep.subr.mxu0 %v6645_v37  ;;  %v2323_v21 = vmul.f32 0.044715, %v2291_v26  ;;  %v2490_v49 = vmul.f32 %v2458_v10, %v5355_v27  ;;  %v2248_v60 = vmul.f32 %v5487_v36, %v5487_v36  ;;  %v2383_v61 = vmul.f32 0.7978846, %v2351_v47  ;;  %v572_v10 = vld [vmem:[%s6614_s4 + $0x68] sm:$0xff] }
 0x389   : > { %2529 = vmatpush1.msra.mxu0 %v2493_v54  ;;  %1830 = vmatprep.mubr.f32.mxu0 %v568_v35  ;;  %v2322_v40 = vmul.f32 0.044715, %v2290_v48  ;;  %v2315_v3 = vmul.f32 0.044715, %v2283_v29  ;;  %v2349_v30 = vadd.f32 %v5504_v52, %v2317_v25  ;;  %3942 = vtanh.f32 %v2385_v57 }
 0x38a   : > { %2530 = vmatprep.subr.mxu0 %v6645_v37  ;;  %v2355_v54 = vadd.f32 %v5557_v2, %v2323_v21  ;;  %v2247_v27 = vmul.f32 %v5462_v41, %v5462_v41  ;;  %v2281_v33 = vmul.f32 %v5478_v1, %v2249_v14  ;;  %v2314_v53 = vmul.f32 0.044715, %v2282_v59 }
 0x38b   : > { %2531 = vmatpush1.msra.mxu0 %v2492_v7  ;;  %v2354_v34 = vadd.f32 %v2322_v40, %v5581_v55  ;;  %v2348_v6 = vadd.f32 %v2316_v13, %v5508_v12  ;;  %v2382_v56 = vmul.f32 0.7978846, %v2350_v44  ;;  %3944 = vtanh.f32 %v2384_v43 }
 0x38c   : > { %1831 = vmatmul.mubr.f32.gmra.mxu0 %v567_v9  ;;  %2532 = vmatprep.subr.mxu0 %v6645_v37  ;;  %v2387_v11 = vmul.f32 0.7978846, %v2355_v54  ;;  %v2489_v18 = vmul.f32 %v5343_v22, %v5584_v50  ;;  %v2246_v62 = vmul.f32 %v5472_v51, %v5472_v51  ;;  %3946 = vtanh.f32 %v2383_v61 }
 0x38d   : > { %2533 = vmatpush1.msra.mxu0 %v2491_v42  ;;  %1835 = vmatprep.mubr.f32.mxu0 %v570_v20  ;;  %v2386_v39 = vmul.f32 0.7978846, %v2354_v34  ;;  %v2280_v7 = vmul.f32 %v2248_v60, %v5487_v36  ;;  %v2347_v29 = vadd.f32 %v5494_v0, %v2315_v3  ;;  %v2381_v47 = vmul.f32 0.7978846, %v2349_v30  ;;  %v6664_v3 = vld [vmem:[#allocation9_spill] sm:$0xff] }
 0x38e   : > { %2534 = vmatprep.subr.mxu0 %v6645_v37  ;;  %3948 = vtanh.f32 %v2387_v11  ;;  %v2488_v22 = vmul.f32 %v2456_v15, %v5347_v32  ;;  %v2245_v50 = vmul.f32 %v5447_v23, %v5447_v23  ;;  %v2279_v35 = vmul.f32 %v5462_v41, %v2247_v27  ;;  %v571_v32 = vld [vmem:[%s6614_s4 + $0x60] sm:$0xff] }
 0x38f   : > { %2535 = vmatpush1.msra.mxu0 %v2490_v49  ;;  %3950 = vtanh.f32 %v2386_v39  ;;  %v2313_v25 = vmul.f32 0.044715, %v2281_v33  ;;  %v2346_v57 = vadd.f32 %v2314_v53, %v5499_v4  ;;  %v2380_v26 = vmul.f32 0.7978846, %v2348_v6  ;;  %v578_v6 = vld [vmem:[%s6614_s4 + $0x98] sm:$0xff] }
 0x390   : > { %1836 = vmatmul.mubr.f32.gmra.mxu0 %v569_v46  ;;  %2536 = vmatprep.subr.mxu0 %v6645_v37  ;;  %3952 = vtanh.f32 %v2382_v56  ;;  %v2453_v48 = vmul.f32 0.5, %v5530_v16  ;;  %v2244_v15 = vmul.f32 %v5453_v45, %v5453_v45  ;;  %v2278_v42 = vmul.f32 %v2246_v62, %v5472_v51 }
 0x391   : > { %2537 = vmatpush1.msra.mxu0 %v2489_v18  ;;  %1840 = vmatprep.mubr.f32.mxu0 %v572_v10  ;;  %v2487_v14 = vmul.f32 %v5332_v31, %v5541_v63  ;;  %v2312_v59 = vmul.f32 0.044715, %v2280_v7  ;;  %v2379_v9 = vmul.f32 0.7978846, %v2347_v29  ;;  %3954 = vtanh.f32 %v2381_v47  ;;  %v4070_v31 = vld [vmem:[%s6614_s4 + $0x78] sm:$0xff]  ;;  %v577_v47 = vld [vmem:[%s6614_s4 + $0x90] sm:$0xff] }
 0x392   : > { %2538 = vmatprep.subr.mxu0 %v6645_v37  ;;  %v2452_v13 = vmul.f32 0.5, %v5533_v38  ;;  %v2486_v44 = vmul.f32 %v5543_v58, %v5336_v19  ;;  %v2277_v16 = vmul.f32 %v5447_v23, %v2245_v50  ;;  %v2311_v43 = vmul.f32 0.044715, %v2279_v35  ;;  %v573_v19 = vld [vmem:[%s6614_s4 + $0x70] sm:$0xff]  ;;  %v576_v58 = vld [vmem:[%s6614_s4 + $0x88] sm:$0xff] }
 0x393   : > { %2539 = vmatpush1.msra.mxu0 %v2488_v22  ;;  %v2345_v21 = vadd.f32 %v5478_v1, %v2313_v25  ;;  %v2378_v49 = vmul.f32 0.7978846, %v2346_v57  ;;  %3956 = vtanh.f32 %v2380_v26  ;;  %v2276_v38 = vmul.f32 %v2244_v15, %v5453_v45  ;;  %v580_v57 = vld [vmem:[%s6614_s4 + $0xa8] sm:$0xff] }
 0x394   : > { %1841 = vmatmul.mubr.f32.gmra.mxu0 %v571_v32  ;;  %2540 = vmatprep.subr.mxu0 %v6645_v37  ;;  %v2310_v63 = vmul.f32 0.044715, %v2278_v42  ;;  %v2485_v60 = vmul.f32 %v5325_v5, %v2453_v48  ;;  %v2344_v61 = vadd.f32 %v2312_v59, %v5487_v36  ;;  %3958 = vtanh.f32 %v2379_v9  ;;  %v575_v5 = vld [vmem:[%s6614_s4 + $0x80] sm:$0xff] }
 0x395   : > { %2541 = vmatpush1.msra.mxu0 %v2487_v14  ;;  %1845 = vmatprep.mubr.f32.mxu0 %v4070_v31  ;;  %v2309_v20 = vmul.f32 0.044715, %v2277_v16  ;;  %v2484_v30 = vmul.f32 %v2452_v13, %v6664_v3  ;;  %v2343_v54 = vadd.f32 %v5462_v41, %v2311_v43  ;;  %v2377_v27 = vmul.f32 0.7978846, %v2345_v21 }
 0x396   : > { %2542 = vmatprep.subr.mxu0 %v6645_v37  ;;  %v3943_v40 = vpop.eup %3942  ;;  %3960 = vtanh.f32 %v2378_v49  ;;  %v2308_v53 = vmul.f32 0.044715, %v2276_v38  ;;  %v2342_v34 = vadd.f32 %v2310_v63, %v5472_v51  ;;  %v2376_v11 = vmul.f32 0.7978846, %v2344_v61  ;;  %v582_v49 = vld [vmem:[%s6614_s4 + $0xb8] sm:$0xff] }
 0x397   : > { %2543 = vmatpush1.msra.mxu0 %v2486_v44  ;;  %v2449_v46 = vadd.f32 1.0, %v3943_v40  ;;  %v2341_v62 = vadd.f32 %v5447_v23, %v2309_v20  ;;  %v2375_v10 = vmul.f32 0.7978846, %v2343_v54  ;;  %3962 = vtanh.f32 %v2377_v27  ;;  %v579_v44 = vld [vmem:[%s6614_s4 + $0xa0] sm:$0xff] }
 0x398   : > { %1846 = vmatmul.mubr.f32.gmra.mxu0 %v573_v19  ;;  %2544 = vmatprep.subr.mxu0 %v6645_v37  ;;  %v3945_v33 = vpop.eup %3944  ;;  %v2340_v50 = vadd.f32 %v2308_v53, %v5453_v45  ;;  %v2374_v35 = vmul.f32 0.7978846, %v2342_v34  ;;  %3964 = vtanh.f32 %v2376_v11  ;;  %v583_v27 = vld [vmem:[%s6614_s4 + $0xc0] sm:$0xff]  ;;  %v585_v11 = vld [vmem:[%s6614_s4 + $0xd0] sm:$0xff] }
 0x399   : > { %2545 = vmatpush1.msra.mxu0 %v2485_v60  ;;  %1850 = vmatprep.mubr.f32.mxu0 %v576_v58  ;;  %v3947_v56 = vpop.eup %3946  ;;  %v2448_v7 = vadd.f32 1.0, %v3945_v33  ;;  %v2481_v32 = vmul.f32 0.5, %v2449_v46  ;;  %v2373_v42 = vmul.f32 0.7978846, %v2341_v62  ;;  %3966 = vtanh.f32 %v2375_v10 }
 0x39a   : > { %2546 = vmatprep.subr.mxu0 %v6645_v37  ;;  %v2447_v26 = vadd.f32 1.0, %v3947_v56  ;;  %v2372_v43 = vmul.f32 0.7978846, %v2340_v50  ;;  %3968 = vtanh.f32 %v2374_v35 }
 0x39b   : > { %2547 = vmatpush1.msra.mxu0 %v2484_v30  ;;  %v3949_v18 = vpop.eup %3948  ;;  %v2480_v9 = vmul.f32 0.5, %v2448_v7  ;;  %v2513_v38 = vmul.f32 %v5520_v17, %v2481_v32  ;;  %3970 = vtanh.f32 %v2373_v42  ;;  %v584_v17 = vld [vmem:[%s6614_s4 + $0xc8] sm:$0xff] }
 0x39c   : > { %1851 = vmatmul.mubr.f32.gmra.mxu0 %v575_v5  ;;  %2548 = vmatprep.subr.mxu0 %v6645_v37  ;;  %v3951_v39 = vpop.eup %3950  ;;  %v2451_v29 = vadd.f32 1.0, %v3949_v18  ;;  %v2479_v19 = vmul.f32 0.5, %v2447_v26  ;;  %3972 = vtanh.f32 %v2372_v43  ;;  %v589_v26 = vld [vmem:[%s6614_s4 + $0xf0] sm:$0xff]  ;;  %v592_v32 = vld [vmem:[%s6614_s4 + $0x108] sm:$0xff]  ;;  %v598_v43 = vld [vmem:[%s6614_s4 + $0x138] sm:$0xff] }
 0x39d   : > { %1855 = vmatprep.mubr.f32.mxu0 %v578_v6  ;;  %v3953_v22 = vpop.eup %3952  ;;  %v2450_v25 = vadd.f32 1.0, %v3951_v39  ;;  %v2512_v60 = vmul.f32 %v2480_v9, %v5535_v8  ;;  %v594_v9 = vld [vmem:[%s6614_s4 + $0x118] sm:$0xff] }
 0x39e   : > { %v2483_v48 = vmul.f32 0.5, %v2451_v29  ;;  %v3955_v15 = vpop.eup %3954  ;;  %v2446_v59 = vadd.f32 1.0, %v3953_v22  ;;  %v2511_v3 = vmul.f32 %v5512_v24, %v2479_v19  ;;  %v586_v24 = vld [vmem:[%s6614_s4 + $0xd8] sm:$0xff]  ;;  %v587_v29 = vld [vmem:[%s6614_s4 + $0xe0] sm:$0xff]  ;;  %v601_v19 = vld [vmem:[%s6614_s4 + $0x150] sm:$0xff] }
 0x39f   : > { %v2482_v14 = vmul.f32 0.5, %v2450_v25  ;;  %v2445_v31 = vadd.f32 1.0, %v3955_v15 }
 0x3a0   : > { %1856 = vmatmul.mubr.f32.gmra.mxu0 %v577_v47  ;;  %v2515_v13 = vmul.f32 %v5557_v2, %v2483_v48  ;;  %v3957_v16 = vpop.eup %3956  ;;  %v2478_v58 = vmul.f32 0.5, %v2446_v59  ;;  %v591_v59 = vld [vmem:[%s6614_s4 + $0x100] sm:$0xff] }
 0x3a1   : > { %1860 = vmatprep.mubr.f32.mxu0 %v580_v57  ;;  %v2514_v21 = vmul.f32 %v2482_v14, %v5581_v55  ;;  %v3959_v2 = vpop.eup %3958  ;;  %v2444_v63 = vadd.f32 1.0, %v3957_v16  ;;  %v581_v55 = vld [vmem:[%s6614_s4 + $0xb0] sm:$0xff]  ;;  %v2477_v20 = vmul.f32 0.5, %v2445_v31  ;;  %v596_v16 = vld [vmem:[%s6614_s4 + $0x128] sm:$0xff]  ;;  %v602_v31 = vld [vmem:[%s6614_s4 + $0x158] sm:$0xff] }
 0x3a2   : > { %2549 = vmatpush2.msra.mxu0 %v2515_v13  ;;  %v2443_v40 = vadd.f32 1.0, %v3959_v2  ;;  %v2510_v54 = vmul.f32 %v2478_v58, %v5516_v28  ;;  %v603_v2 = vld [vmem:[%s6614_s4 + $0x160] sm:$0xff]  ;;  %v605_v58 = vld [vmem:[%s6614_s4 + $0x170] sm:$0xff] }
 0x3a3   : > { %2550 = vmatprep.subr.mxu0 %v6645_v37  ;;  %v3961_v61 = vpop.eup %3960  ;;  %v2476_v30 = vmul.f32 0.5, %v2444_v63  ;;  %v2509_v53 = vmul.f32 %v5504_v52, %v2477_v20  ;;  %v588_v52 = vld [vmem:[%s6614_s4 + $0xe8] sm:$0xff]  ;;  %v606_v63 = vld [vmem:[%s6614_s4 + $0x178] sm:$0xff]  ;;  %v611_v20 = vld [vmem:[%s6614_s4 + $0x1a0] sm:$0xff] }
 0x3a4   : > { %1861 = vmatmul.mubr.f32.gmra.mxu0 %v579_v44  ;;  %v2442_v8 = vadd.f32 1.0, %v3961_v61  ;;  %v3963_v5 = vpop.eup %3962  ;;  %v2475_v33 = vmul.f32 0.5, %v2443_v40  ;;  %v593_v44 = vld [vmem:[%s6614_s4 + $0x110] sm:$0xff]  ;;  %v610_v61 = vld [vmem:[%s6614_s4 + $0x198] sm:$0xff]  ;;  %v612_v40 = vld [vmem:[%s6614_s4 + $0x1a8] sm:$0xff] }
 0x3a5   : > { %2551 = vmatpush2.msra.mxu0 %v2514_v21  ;;  %1865 = vmatprep.mubr.f32.mxu0 %v582_v49  ;;  %v3965_v34 = vpop.eup %3964  ;;  %v2441_v28 = vadd.f32 1.0, %v3963_v5  ;;  %v2508_v56 = vmul.f32 %v2476_v30, %v5508_v12  ;;  %v600_v21 = vld [vmem:[%s6614_s4 + $0x148] sm:$0xff]  ;;  %v599_v49 = vld [vmem:[%s6614_s4 + $0x140] sm:$0xff]  ;;  %v617_v5 = vld [vmem:[%s6614_s4 + $0x1d0] sm:$0xff] }
 0x3a6   : > { %2552 = vmatprep.subr.mxu0 %v6645_v37  ;;  %v2474_v6 = vmul.f32 0.5, %v2442_v8  ;;  %v3967_v46 = vpop.eup %3966  ;;  %v2440_v18 = vadd.f32 1.0, %v3965_v34  ;;  %v2507_v62 = vmul.f32 %v5494_v0, %v2475_v33  ;;  %v590_v0 = vld [vmem:[%s6614_s4 + $0xf8] sm:$0xff]  ;;  %v613_v8 = vld [vmem:[%s6614_s4 + $0x1b0] sm:$0xff]  ;;  %v616_v30 = vld [vmem:[%s6614_s4 + $0x1c8] sm:$0xff] }
 0x3a7   : > { %2553 = vmatpush2.msra.mxu0 %v2513_v38  ;;  %v3969_v39 = vpop.eup %3968  ;;  %v2439_v12 = vadd.f32 1.0, %v3967_v46  ;;  %v2473_v10 = vmul.f32 0.5, %v2441_v28  ;;  %v604_v38 = vld [vmem:[%s6614_s4 + $0x168] sm:$0xff]  ;;  %v619_v33 = vld [vmem:[%s6614_s4 + $0x1e0] sm:$0xff]  ;;  %v621_v34 = vld [vmem:[%s6614_s4 + $0x1f0] sm:$0xff] }
 0x3a8   : > { %2554 = vmatprep.subr.mxu0 %v6645_v37  ;;  %1866 = vmatmul.mubr.f32.gmra.mxu0 %v581_v55  ;;  %v2506_v7 = vmul.f32 %v2474_v6, %v5499_v4  ;;  %v3971_v47 = vpop.eup %3970  ;;  %v2438_v22 = vadd.f32 1.0, %v3969_v39  ;;  %v2472_v50 = vmul.f32 0.5, %v2440_v18  ;;  %v607_v55 = vld [vmem:[%s6614_s4 + $0x180] sm:$0xff]  ;;  %v4071_v28 = vld [vmem:[%s6613_s3 + $0x8] sm:$0xff]  ;;  %v4077_v18 = vld [vmem:[%s6613_s3 + $0x38] sm:$0xff] }
 0x3a9   : > { %2555 = vmatpush2.msra.mxu0 %v2512_v60  ;;  %1870 = vmatprep.mubr.f32.mxu0 %v584_v17  ;;  %v3973_v35 = vpop.eup %3972  ;;  %v2437_v4 = vadd.f32 1.0, %v3971_v47  ;;  %v2471_v25 = vmul.f32 0.5, %v2439_v12  ;;  %v2505_v57 = vmul.f32 %v5478_v1, %v2473_v10  ;;  %v608_v60 = vld [vmem:[%s6614_s4 + $0x188] sm:$0xff]  ;;  %v609_v17 = vld [vmem:[%s6614_s4 + $0x190] sm:$0xff]  ;;  %v4072_v6 = vld [vmem:[%s6613_s3] sm:$0xff] }
 0x3aa   : > { %2556 = vmatprep.subr.mxu0 %v6645_v37  ;;  %v2436_v48 = vadd.f32 1.0, %v3973_v35  ;;  %v2470_v15 = vmul.f32 0.5, %v2438_v22  ;;  %v2504_v42 = vmul.f32 %v2472_v50, %v5487_v36  ;;  %v4075_v46 = vld [vmem:[%s6613_s3 + $0x28] sm:$0xff]  ;;  %v4080_v12 = vld [vmem:[%s6613_s3 + $0x40] sm:$0xff]  ;;  %v4081_v10 = vld [vmem:[%s6613_s3 + $0x58] sm:$0xff] }
 0x3ab   : > { %2557 = vmatpush2.msra.mxu0 %v2511_v3  ;;  %v2469_v1 = vmul.f32 0.5, %v2437_v4  ;;  %v2503_v14 = vmul.f32 %v5462_v41, %v2471_v25  ;;  %v614_v3 = vld [vmem:[%s6614_s4 + $0x1b8] sm:$0xff]  ;;  %v4079_v39 = vld [vmem:[%s6613_s3 + $0x48] sm:$0xff]  ;;  %v4084_v47 = vld [vmem:[%s6613_s3 + $0x60] sm:$0xff] }
 0x3ac   : > { %2558 = vmatprep.subr.mxu0 %v6645_v37  ;;  %1871 = vmatmul.mubr.f32.gmra.mxu0 %v583_v27  ;;  %v2468_v36 = vmul.f32 0.5, %v2436_v48  ;;  %v2502_v13 = vmul.f32 %v2470_v15, %v5472_v51  ;;  %v618_v27 = vld [vmem:[%s6614_s4 + $0x1d8] sm:$0xff]  ;;  %v4086_v22 = vld [vmem:[%s6613_s3 + $0x70] sm:$0xff]  ;;  %v4087_v50 = vld [vmem:[%s6613_s3 + $0x88] sm:$0xff] }
 0x3ad   : > { %2559 = vmatpush2.msra.mxu0 %v2510_v54  ;;  %1875 = vmatprep.mubr.f32.mxu0 %v586_v24  ;;  %v2501_v41 = vmul.f32 %v5447_v23, %v2469_v1  ;;  %v595_v23 = vld [vmem:[%s6614_s4 + $0x120] sm:$0xff]  ;;  %v620_v24 = vld [vmem:[%s6614_s4 + $0x1e8] sm:$0xff]  ;;  %v4089_v4 = vld [vmem:[%s6613_s3 + $0x98] sm:$0xff] }
 0x3ae   : > { %2560 = vmatprep.subr.mxu0 %v6645_v37  ;;  %v2500_v51 = vmul.f32 %v2468_v36, %v5453_v45  ;;  %v597_v45 = vld [vmem:[%s6614_s4 + $0x130] sm:$0xff]  ;;  %v615_v54 = vld [vmem:[%s6614_s4 + $0x1c0] sm:$0xff]  ;;  %v4095_v15 = vld [vmem:[%s6613_s3 + $0xc8] sm:$0xff] }
 0x3af   : > { %2561 = vmatpush2.msra.mxu0 %v2509_v53  ;;  %v622_v53 = vld [vmem:[%s6614_s4 + $0x1f8] sm:$0xff]  ;;  %v4088_v35 = vld [vmem:[%s6613_s3 + $0x80] sm:$0xff]  ;;  %v4090_v25 = vld [vmem:[%s6613_s3 + $0x90] sm:$0xff] }
 0x3b0   : > { %2562 = vmatprep.subr.mxu0 %v6645_v37  ;;  %1876 = vmatmul.mubr.f32.gmra.mxu0 %v585_v11  ;;  %v4074_v11 = vld [vmem:[%s6613_s3 + $0x10] sm:$0xff]  ;;  %v4097_v1 = vld [vmem:[%s6613_s3 + $0xd8] sm:$0xff] }
 0x3b1   : > { %2563 = vmatpush2.msra.mxu0 %v2508_v56  ;;  %1880 = vmatprep.mubr.f32.mxu0 %v588_v52  ;;  %v4073_v56 = vld [vmem:[%s6613_s3 + $0x18] sm:$0xff]  ;;  %v4076_v52 = vld [vmem:[%s6613_s3 + $0x20] sm:$0xff]  ;;  %v4094_v48 = vld [vmem:[%s6613_s3 + $0xb0] sm:$0xff] }
 0x3b2   : > { %2564 = vmatprep.subr.mxu0 %v6645_v37  ;;  %v4101_v36 = vld [vmem:[%s6613_s3 + $0xf8] sm:$0xff] }
 0x3b3   : > { %2565 = vmatpush2.msra.mxu0 %v2507_v62  ;;  %v4078_v62 = vld [vmem:[%s6613_s3 + $0x30] sm:$0xff] }
 0x3b4   : > { %2566 = vmatprep.subr.mxu0 %v6645_v37  ;;  %1881 = vmatmul.mubr.f32.gmra.mxu0 %v587_v29  ;;  %v4083_v29 = vld [vmem:[%s6613_s3 + $0x68] sm:$0xff] }
 0x3b5   : > { %2567 = vmatpush2.msra.mxu0 %v2506_v7  ;;  %1885 = vmatprep.mubr.f32.mxu0 %v590_v0  ;;  %v4082_v7 = vld [vmem:[%s6613_s3 + $0x50] sm:$0xff]  ;;  %v4085_v0 = vld [vmem:[%s6613_s3 + $0x78] sm:$0xff] }
 0x3b6   : > { %2568 = vmatprep.subr.mxu0 %v6645_v37 }
 0x3b7   : > { %2569 = vmatpush2.msra.mxu0 %v2505_v57  ;;  %v4091_v57 = vld [vmem:[%s6613_s3 + $0xa8] sm:$0xff] }
 0x3b8   : > { %2570 = vmatprep.subr.mxu0 %v6645_v37  ;;  %1886 = vmatmul.mubr.f32.gmra.mxu0 %v589_v26  ;;  %v4092_v26 = vld [vmem:[%s6613_s3 + $0xa0] sm:$0xff] }
 0x3b9   : > { %2571 = vmatpush2.msra.mxu0 %v2504_v42  ;;  %1890 = vmatprep.mubr.f32.mxu0 %v592_v32  ;;  %v4093_v32 = vld [vmem:[%s6613_s3 + $0xb8] sm:$0xff]  ;;  %v4096_v42 = vld [vmem:[%s6613_s3 + $0xc0] sm:$0xff] }
 0x3ba   : > { %2572 = vmatprep.subr.mxu0 %v6645_v37 }
 0x3bb   : > { %2573 = vmatpush2.msra.mxu0 %v2503_v14  ;;  %v4098_v14 = vld [vmem:[%s6613_s3 + $0xd0] sm:$0xff] }
 0x3bc   : > { %2574 = vmatprep.subr.mxu0 %v6645_v37  ;;  %1891 = vmatmul.mubr.f32.gmra.mxu0 %v591_v59  ;;  %v4099_v59 = vld [vmem:[%s6613_s3 + $0xe8] sm:$0xff] }
 0x3bd   : > { %2575 = vmatpush2.msra.mxu0 %v2502_v13  ;;  %1895 = vmatprep.mubr.f32.mxu0 %v594_v9  ;;  %v4100_v9 = vld [vmem:[%s6613_s3 + $0xe0] sm:$0xff]  ;;  %v4102_v13 = vld [vmem:[%s6613_s3 + $0xf0] sm:$0xff] }
 0x3be   : > { %2576 = vmatprep.subr.mxu0 %v6645_v37 }
 0x3bf   : > { %2577 = vmatpush2.msra.mxu0 %v2501_v41  ;;  %v4103_v41 = vld [vmem:[%s6613_s3 + $0x108] sm:$0xff] }
 0x3c0   : > { %2578 = vmatprep.subr.mxu0 %v6645_v37  ;;  %1896 = vmatmul.mubr.f32.gmra.mxu0 %v593_v44 }
 0x3c1   : > { %2579 = vmatpush2.msra.mxu0 %v2500_v51  ;;  %1900 = vmatprep.mubr.f32.mxu0 %v596_v16  ;;  %v4104_v16 = vld [vmem:[%s6613_s3 + $0x100] sm:$0xff] }
 0x3c2   : > { %3029 = vmatprep.subr.mxu0 %v6645_v37 }
 0x3c4   : > { %1901 = vmatmul.mubr.f32.gmra.mxu0 %v595_v23  ;;  %v4105_v23 = vld [vmem:[%s6613_s3 + $0x118] sm:$0xff] }
 0x3c5   : > { %1905 = vmatprep.mubr.f32.mxu0 %v598_v43 }
 0x3c8   : > { %1906 = vmatmul.mubr.f32.gmra.mxu0 %v597_v45  ;;  %v4106_v45 = vld [vmem:[%s6613_s3 + $0x110] sm:$0xff] }
 0x3c9   : > { %1910 = vmatprep.mubr.f32.mxu0 %v600_v21  ;;  %v4107_v21 = vld [vmem:[%s6613_s3 + $0x128] sm:$0xff] }
 0x3cc   : > { %1911 = vmatmul.mubr.f32.gmra.mxu0 %v599_v49 }
 0x3cd   : > { %1915 = vmatprep.mubr.f32.mxu0 %v602_v31 }
 0x3d0   : > { %1916 = vmatmul.mubr.f32.gmra.mxu0 %v601_v19  ;;  %v4108_v19 = vld [vmem:[%s6613_s3 + $0x120] sm:$0xff] }
 0x3d1   : > { %1920 = vmatprep.mubr.f32.mxu0 %v604_v38  ;;  %v4109_v38 = vld [vmem:[%s6613_s3 + $0x138] sm:$0xff] }
 0x3d4   : > { %1921 = vmatmul.mubr.f32.gmra.mxu0 %v603_v2 }
 0x3d5   : > { %1925 = vmatprep.mubr.f32.mxu0 %v606_v63 }
 0x3d8   : > { %1926 = vmatmul.mubr.f32.gmra.mxu0 %v605_v58  ;;  %v4110_v58 = vld [vmem:[%s6613_s3 + $0x130] sm:$0xff] }
 0x3d9   : > { %1930 = vmatprep.mubr.f32.mxu0 %v608_v60  ;;  %v4111_v60 = vld [vmem:[%s6613_s3 + $0x148] sm:$0xff] }
 0x3dc   : > { %1931 = vmatmul.mubr.f32.gmra.mxu0 %v607_v55 }
 0x3dd   : > { %1935 = vmatprep.mubr.f32.mxu0 %v610_v61 }
 0x3e0   : > { %1936 = vmatmul.mubr.f32.gmra.mxu0 %v609_v17  ;;  %v4112_v17 = vld [vmem:[%s6613_s3 + $0x140] sm:$0xff] }
 0x3e1   : > { %1940 = vmatprep.mubr.f32.mxu0 %v612_v40  ;;  %v4113_v40 = vld [vmem:[%s6613_s3 + $0x158] sm:$0xff] }
 0x3e4   : > { %1941 = vmatmul.mubr.f32.gmra.mxu0 %v611_v20 }
 0x3e5   : > { %1945 = vmatprep.mubr.f32.mxu0 %v614_v3 }
 0x3e8   : > { %1946 = vmatmul.mubr.f32.gmra.mxu0 %v613_v8  ;;  %v4114_v8 = vld [vmem:[%s6613_s3 + $0x150] sm:$0xff] }
 0x3e9   : > { %1950 = vmatprep.mubr.f32.mxu0 %v616_v30  ;;  %v4115_v30 = vld [vmem:[%s6613_s3 + $0x168] sm:$0xff] }
 0x3ec   : > { %1951 = vmatmul.mubr.f32.gmra.mxu0 %v615_v54 }
 0x3ed   : > { %1955 = vmatprep.mubr.f32.mxu0 %v618_v27 }
 0x3f0   : > { %1956 = vmatmul.mubr.f32.gmra.mxu0 %v617_v5  ;;  %v4116_v5 = vld [vmem:[%s6613_s3 + $0x160] sm:$0xff] }
 0x3f1   : > { %1960 = vmatprep.mubr.f32.mxu0 %v620_v24  ;;  %v4117_v24 = vld [vmem:[%s6613_s3 + $0x178] sm:$0xff] }
 0x3f4   : > { %1961 = vmatmul.mubr.f32.gmra.mxu0 %v619_v33 }
 0x3f5   : > { %1965 = vmatprep.mubr.f32.mxu0 %v622_v53 }
 0x3f8   : > { %1966 = vmatmul.mubr.f32.gmra.mxu0 %v621_v34  ;;  %v4118_v34 = vld [vmem:[%s6613_s3 + $0x170] sm:$0xff] }
 0x3f9   : > { %2580 = vmatprep.mubr.f32.mxu0 %v4071_v28  ;;  %v4119_v28 = vld [vmem:[%s6613_s3 + $0x188] sm:$0xff] }
 0x3fc   : > { %2581 = vmatmul.mubr.f32.vlgmr.msra.gmra.mxu0 %v4072_v6 }
 0x3fd   : > { %2585 = vmatprep.mubr.f32.mxu0 %v4073_v56 }
 0x400   : > { %2586 = vmatmul.mubr.f32.gmra.mxu0 %v4074_v11  ;;  %v4120_v11 = vld [vmem:[%s6613_s3 + $0x180] sm:$0xff] }
 0x401   : > { %2590 = vmatprep.mubr.f32.mxu0 %v4075_v46  ;;  %v4121_v46 = vld [vmem:[%s6613_s3 + $0x198] sm:$0xff] }
 0x404   : > { %2591 = vmatmul.mubr.f32.gmra.mxu0 %v4076_v52 }
 0x405   : > { %2595 = vmatprep.mubr.f32.mxu0 %v4077_v18 }
 0x408   : > { %2596 = vmatmul.mubr.f32.gmra.mxu0 %v4078_v62  ;;  %v4122_v62 = vld [vmem:[%s6613_s3 + $0x190] sm:$0xff] }
 0x409   : > { %2600 = vmatprep.mubr.f32.mxu0 %v4079_v39  ;;  %v4123_v39 = vld [vmem:[%s6613_s3 + $0x1a8] sm:$0xff] }
 0x40c   : > { %2601 = vmatmul.mubr.f32.gmra.mxu0 %v4080_v12 }
 0x40d   : > { %2605 = vmatprep.mubr.f32.mxu0 %v4081_v10 }
 0x410   : > { %2606 = vmatmul.mubr.f32.gmra.mxu0 %v4082_v7  ;;  %v4124_v7 = vld [vmem:[%s6613_s3 + $0x1a0] sm:$0xff] }
 0x411   : > { %2610 = vmatprep.mubr.f32.mxu0 %v4083_v29  ;;  %v4125_v29 = vld [vmem:[%s6613_s3 + $0x1b8] sm:$0xff] }
 0x414   : > { %2611 = vmatmul.mubr.f32.gmra.mxu0 %v4084_v47 }
 0x415   : > { %2615 = vmatprep.mubr.f32.mxu0 %v4085_v0 }
 0x418   : > { %2616 = vmatmul.mubr.f32.gmra.mxu0 %v4086_v22  ;;  %v4126_v22 = vld [vmem:[%s6613_s3 + $0x1b0] sm:$0xff] }
 0x419   : > { %2620 = vmatprep.mubr.f32.mxu0 %v4087_v50  ;;  %v4127_v50 = vld [vmem:[%s6613_s3 + $0x1c8] sm:$0xff] }
 0x41c   : > { %2621 = vmatmul.mubr.f32.gmra.mxu0 %v4088_v35 }
 0x41d   : > { %2625 = vmatprep.mubr.f32.mxu0 %v4089_v4 }
 0x420   : > { %2626 = vmatmul.mubr.f32.gmra.mxu0 %v4090_v25  ;;  %v4128_v25 = vld [vmem:[%s6613_s3 + $0x1c0] sm:$0xff] }
 0x421   : > { %2630 = vmatprep.mubr.f32.mxu0 %v4091_v57  ;;  %v4129_v57 = vld [vmem:[%s6613_s3 + $0x1d8] sm:$0xff] }
 0x424   : > { %2631 = vmatmul.mubr.f32.gmra.mxu0 %v4092_v26 }
 0x425   : > { %2635 = vmatprep.mubr.f32.mxu0 %v4093_v32 }
 0x428   : > { %2636 = vmatmul.mubr.f32.gmra.mxu0 %v4094_v48  ;;  %v4130_v48 = vld [vmem:[%s6613_s3 + $0x1d0] sm:$0xff] }
 0x429   : > { %2640 = vmatprep.mubr.f32.mxu0 %v4095_v15  ;;  %v4131_v15 = vld [vmem:[%s6613_s3 + $0x1e8] sm:$0xff] }
 0x42c   : > { %2641 = vmatmul.mubr.f32.gmra.mxu0 %v4096_v42 }
 0x42d   : > { %2645 = vmatprep.mubr.f32.mxu0 %v4097_v1 }
 0x430   : > { %2646 = vmatmul.mubr.f32.gmra.mxu0 %v4098_v14  ;;  %v4132_v14 = vld [vmem:[%s6613_s3 + $0x1e0] sm:$0xff] }
 0x431   : > { %2650 = vmatprep.mubr.f32.mxu0 %v4099_v59  ;;  %v4133_v59 = vld [vmem:[%s6613_s3 + $0x1f8] sm:$0xff] }
 0x434   : > { %2651 = vmatmul.mubr.f32.gmra.mxu0 %v4100_v9 }
 0x435   : > { %2655 = vmatprep.mubr.f32.mxu0 %v4101_v36 }
 0x438   : > { %2656 = vmatmul.mubr.f32.gmra.mxu0 %v4102_v13  ;;  %v4134_v13 = vld [vmem:[%s6613_s3 + $0x1f0] sm:$0xff] }
 0x439   : > { %2660 = vmatprep.mubr.f32.mxu0 %v4103_v41  ;;  %v4135_v41 = vld [vmem:[%s6614_s4 + $0x8] sm:$0xff] }
 0x43c   : > { %v1812_v44 = vpop.f32.mrf.mxu0  ;;  %2661 = vmatmul.mubr.f32.gmra.mxu0 %v4104_v16 }
 0x43d   : > { %1971 = vst [vmem:[%s5967_s23] sm:$0xff] %v1812_v44  ;;  %2665 = vmatprep.mubr.f32.mxu0 %v4105_v23 }
 0x43e   : > { %v1814_v51 = vpop.f32.mrf.mxu0 }
 0x440   : > { %v1817_v43 = vpop.f32.mrf.mxu0  ;;  %2666 = vmatmul.mubr.f32.gmra.mxu0 %v4106_v45 }
 0x441   : > { %1972 = vst [vmem:[%s5967_s23 + $0x10] sm:$0xff] %v1817_v43  ;;  %2670 = vmatprep.mubr.f32.mxu0 %v4107_v21 }
 0x442   : > { %v1819_v49 = vpop.f32.mrf.mxu0 }
 0x444   : > { %v1822_v31 = vpop.f32.mrf.mxu0  ;;  %2671 = vmatmul.mubr.f32.gmra.mxu0 %v4108_v19 }
 0x445   : > { %1973 = vst [vmem:[%s5967_s23 + $0x20] sm:$0xff] %v1822_v31  ;;  %2675 = vmatprep.mubr.f32.mxu0 %v4109_v38 }
 0x446   : > { %v1824_v2 = vpop.f32.mrf.mxu0 }
 0x448   : > { %v1827_v63 = vpop.f32.mrf.mxu0  ;;  %2676 = vmatmul.mubr.f32.gmra.mxu0 %v4110_v58 }
 0x449   : > { %1974 = vst [vmem:[%s5967_s23 + $0x30] sm:$0xff] %v1827_v63  ;;  %2680 = vmatprep.mubr.f32.mxu0 %v4111_v60 }
 0x44a   : > { %v1829_v55 = vpop.f32.mrf.mxu0 }
 0x44c   : > { %v1832_v61 = vpop.f32.mrf.mxu0  ;;  %2681 = vmatmul.mubr.f32.gmra.mxu0 %v4112_v17 }
 0x44d   : > { %1975 = vst [vmem:[%s5967_s23 + $0x40] sm:$0xff] %v1832_v61  ;;  %2685 = vmatprep.mubr.f32.mxu0 %v4113_v40 }
 0x44e   : > { %v1834_v20 = vpop.f32.mrf.mxu0 }
 0x450   : > { %v1837_v3 = vpop.f32.mrf.mxu0  ;;  %2686 = vmatmul.mubr.f32.gmra.mxu0 %v4114_v8 }
 0x451   : > { %1976 = vst [vmem:[%s5967_s23 + $0x50] sm:$0xff] %v1837_v3  ;;  %2690 = vmatprep.mubr.f32.mxu0 %v4115_v30 }
 0x452   : > { %v1839_v54 = vpop.f32.mrf.mxu0 }
 0x454   : > { %v1842_v27 = vpop.f32.mrf.mxu0  ;;  %2691 = vmatmul.mubr.f32.gmra.mxu0 %v4116_v5 }
 0x455   : > { %1977 = vst [vmem:[%s5967_s23 + $0x60] sm:$0xff] %v1842_v27  ;;  %2695 = vmatprep.mubr.f32.mxu0 %v4117_v24 }
 0x456   : > { %v1844_v33 = vpop.f32.mrf.mxu0 }
 0x458   : > { %v1847_v53 = vpop.f32.mrf.mxu0  ;;  %2696 = vmatmul.mubr.f32.gmra.mxu0 %v4118_v34 }
 0x459   : > { %1978 = vst [vmem:[%s5967_s23 + $0x70] sm:$0xff] %v1847_v53  ;;  %2700 = vmatprep.mubr.f32.mxu0 %v4119_v28 }
 0x45a   : > { %v1849_v6 = vpop.f32.mrf.mxu0 }
 0x45c   : > { %v1852_v56 = vpop.f32.mrf.mxu0  ;;  %2701 = vmatmul.mubr.f32.gmra.mxu0 %v4120_v11 }
 0x45d   : > { %1979 = vst [vmem:[%s5967_s23 + $0x80] sm:$0xff] %v1852_v56  ;;  %2705 = vmatprep.mubr.f32.mxu0 %v4121_v46 }
 0x45e   : > { %v1854_v52 = vpop.f32.mrf.mxu0 }
 0x460   : > { %v1857_v18 = vpop.f32.mrf.mxu0  ;;  %2706 = vmatmul.mubr.f32.gmra.mxu0 %v4122_v62 }
 0x461   : > { %1980 = vst [vmem:[%s5967_s23 + $0x90] sm:$0xff] %v1857_v18  ;;  %2710 = vmatprep.mubr.f32.mxu0 %v4123_v39 }
 0x462   : > { %v1859_v12 = vpop.f32.mrf.mxu0 }
 0x464   : > { %v1862_v10 = vpop.f32.mrf.mxu0  ;;  %2711 = vmatmul.mubr.f32.gmra.mxu0 %v4124_v7 }
 0x465   : > { %1981 = vst [vmem:[%s5967_s23 + $0xa0] sm:$0xff] %v1862_v10  ;;  %2715 = vmatprep.mubr.f32.mxu0 %v4125_v29 }
 0x466   : > { %v1864_v47 = vpop.f32.mrf.mxu0 }
 0x468   : > { %v1867_v0 = vpop.f32.mrf.mxu0  ;;  %2716 = vmatmul.mubr.f32.gmra.mxu0 %v4126_v22 }
 0x469   : > { %1982 = vst [vmem:[%s5967_s23 + $0xb0] sm:$0xff] %v1867_v0  ;;  %2720 = vmatprep.mubr.f32.mxu0 %v4127_v50 }
 0x46a   : > { %v1869_v35 = vpop.f32.mrf.mxu0 }
 0x46c   : > { %v1872_v4 = vpop.f32.mrf.mxu0  ;;  %2721 = vmatmul.mubr.f32.gmra.mxu0 %v4128_v25 }
 0x46d   : > { %1983 = vst [vmem:[%s5967_s23 + $0xc0] sm:$0xff] %v1872_v4  ;;  %2725 = vmatprep.mubr.f32.mxu0 %v4129_v57 }
 0x46e   : > { %v1874_v26 = vpop.f32.mrf.mxu0 }
 0x470   : > { %v1877_v32 = vpop.f32.mrf.mxu0  ;;  %2726 = vmatmul.mubr.f32.gmra.mxu0 %v4130_v48 }
 0x471   : > { %1984 = vst [vmem:[%s5967_s23 + $0xd0] sm:$0xff] %v1877_v32  ;;  %2730 = vmatprep.mubr.f32.mxu0 %v4131_v15 }
 0x472   : > { %v1879_v42 = vpop.f32.mrf.mxu0 }
 0x474   : > { %v1882_v1 = vpop.f32.mrf.mxu0  ;;  %2731 = vmatmul.mubr.f32.gmra.mxu0 %v4132_v14 }
 0x475   : > { %1985 = vst [vmem:[%s5967_s23 + $0xe0] sm:$0xff] %v1882_v1  ;;  %2735 = vmatprep.mubr.f32.mxu0 %v4133_v59 }
 0x476   : > { %v1884_v9 = vpop.f32.mrf.mxu0 }
 0x478   : > { %v1887_v36 = vpop.f32.mrf.mxu0  ;;  %2736 = vmatmul.mubr.f32.gmra.mxu0 %v4134_v13 }
 0x479   : > { %1986 = vst [vmem:[%s5967_s23 + $0xf0] sm:$0xff] %v1887_v36  ;;  %3093 = vmatprep.mubr.f32.mxu0 %v4135_v41 }
 0x47a   : > { %v1889_v44 = vpop.f32.mrf.mxu0 }
 0x47c   : > { %v1892_v16 = vpop.f32.mrf.mxu0 }
 0x47d   : > { %1987 = vst [vmem:[%s5967_s23 + $0x100] sm:$0xff] %v1892_v16 }
 0x47e   : > { %v1894_v51 = vpop.f32.mrf.mxu0 }
 0x480   : > { %v1897_v23 = vpop.f32.mrf.mxu0 }
 0x481   : > { %1988 = vst [vmem:[%s5967_s23 + $0x110] sm:$0xff] %v1897_v23 }
 0x482   : > { %v1899_v43 = vpop.f32.mrf.mxu0 }
 0x484   : > { %v1902_v45 = vpop.f32.mrf.mxu0 }
 0x485   : > { %1989 = vst [vmem:[%s5967_s23 + $0x120] sm:$0xff] %v1902_v45 }
 0x486   : > { %v1904_v21 = vpop.f32.mrf.mxu0 }
 0x488   : > { %v1907_v49 = vpop.f32.mrf.mxu0 }
 0x489   : > { %1990 = vst [vmem:[%s5967_s23 + $0x130] sm:$0xff] %v1907_v49 }
 0x48a   : > { %v1909_v31 = vpop.f32.mrf.mxu0 }
 0x48c   : > { %v1912_v19 = vpop.f32.mrf.mxu0 }
 0x48d   : > { %1991 = vst [vmem:[%s5967_s23 + $0x140] sm:$0xff] %v1912_v19 }
 0x48e   : > { %v1914_v38 = vpop.f32.mrf.mxu0 }
 0x490   : > { %v1917_v2 = vpop.f32.mrf.mxu0 }
 0x491   : > { %1992 = vst [vmem:[%s5967_s23 + $0x150] sm:$0xff] %v1917_v2 }
 0x492   : > { %v1919_v63 = vpop.f32.mrf.mxu0 }
 0x494   : > { %v1922_v58 = vpop.f32.mrf.mxu0 }
 0x495   : > { %1993 = vst [vmem:[%s5967_s23 + $0x160] sm:$0xff] %v1922_v58 }
 0x496   : > { %v1924_v60 = vpop.f32.mrf.mxu0 }
 0x498   : > { %v1927_v55 = vpop.f32.mrf.mxu0 }
 0x499   : > { %1994 = vst [vmem:[%s5967_s23 + $0x170] sm:$0xff] %v1927_v55 }
 0x49a   : > { %v1929_v61 = vpop.f32.mrf.mxu0 }
 0x49c   : > { %v1932_v17 = vpop.f32.mrf.mxu0 }
 0x49d   : > { %1995 = vst [vmem:[%s5967_s23 + $0x180] sm:$0xff] %v1932_v17 }
 0x49e   : > { %v1934_v40 = vpop.f32.mrf.mxu0 }
 0x4a0   : > { %v1937_v20 = vpop.f32.mrf.mxu0 }
 0x4a1   : > { %1996 = vst [vmem:[%s5967_s23 + $0x190] sm:$0xff] %v1937_v20 }
 0x4a2   : > { %v1939_v3 = vpop.f32.mrf.mxu0 }
 0x4a4   : > { %v1942_v8 = vpop.f32.mrf.mxu0 }
 0x4a5   : > { %1997 = vst [vmem:[%s5967_s23 + $0x1a0] sm:$0xff] %v1942_v8 }
 0x4a6   : > { %v1944_v30 = vpop.f32.mrf.mxu0 }
 0x4a8   : > { %v1947_v54 = vpop.f32.mrf.mxu0 }
 0x4a9   : > { %1998 = vst [vmem:[%s5967_s23 + $0x1b0] sm:$0xff] %v1947_v54 }
 0x4aa   : > { %v1949_v27 = vpop.f32.mrf.mxu0 }
 0x4ac   : > { %v1952_v5 = vpop.f32.mrf.mxu0 }
 0x4ad   : > { %1999 = vst [vmem:[%s5967_s23 + $0x1c0] sm:$0xff] %v1952_v5 }
 0x4ae   : > { %v1954_v24 = vpop.f32.mrf.mxu0 }
 0x4b0   : > { %v1957_v33 = vpop.f32.mrf.mxu0 }
 0x4b1   : > { %2000 = vst [vmem:[%s5967_s23 + $0x1d0] sm:$0xff] %v1957_v33 }
 0x4b2   : > { %v1959_v53 = vpop.f32.mrf.mxu0 }
 0x4b4   : > { %v1962_v34 = vpop.f32.mrf.mxu0 }
 0x4b5   : > { %2001 = vst [vmem:[%s5967_s23 + $0x1e0] sm:$0xff] %v1962_v34 }
 0x4b6   : > { %v1964_v28 = vpop.f32.mrf.mxu0 }
 0x4b8   : > { %v1967_v6 = vpop.f32.mrf.mxu0 }
 0x4b9   : > { %2002 = vst [vmem:[%s5967_s23 + $0x1f0] sm:$0xff] %v1967_v6 }
 0x4ba   : > { %v1969_v56 = vpop.f32.mrf.mxu0 }
 0x4bc   : > { %v6097_v11 = vpop.f32.mrf.mxu0 }
 0x4be   : > { %v2584_v46 = vpop.f32.mrf.mxu0 }
 0x4c0   : > { %v6099_v52 = vpop.f32.mrf.mxu0 }
 0x4c2   : > { %v2589_v18 = vpop.f32.mrf.mxu0 }
 0x4c4   : > { %v6101_v62 = vpop.f32.mrf.mxu0 }
 0x4c6   : > { %v2594_v39 = vpop.f32.mrf.mxu0 }
 0x4c8   : > { %v6103_v12 = vpop.f32.mrf.mxu0 }
 0x4ca   : > { %v2599_v10 = vpop.f32.mrf.mxu0 }
 0x4cc   : > { %v6105_v7 = vpop.f32.mrf.mxu0 }
 0x4ce   : > { %v2604_v29 = vpop.f32.mrf.mxu0 }
 0x4cf   : > { %v2745_v29 = vmul.f32 %v6105_v7, %v6105_v7 }
 0x4d0   : > { %v6107_v47 = vpop.f32.mrf.mxu0 }
 0x4d1   : > { %v2746_v34 = vmul.f32 %v6107_v47, %v6107_v47 }
 0x4d2   : > { %v2609_v0 = vpop.f32.mrf.mxu0 }
 0x4d4   : > { %v6109_v22 = vpop.f32.mrf.mxu0 }
 0x4d5   : > { %v2747_v30 = vmul.f32 %v6109_v22, %v6109_v22 }
 0x4d6   : > { %v2614_v50 = vpop.f32.mrf.mxu0 }
 0x4d7   : > { %v2779_v0 = vmul.f32 %v2747_v30, %v6109_v22 }
 0x4d8   : > { %v6111_v35 = vpop.f32.mrf.mxu0 }
 0x4d9   : > { %v2748_v55 = vmul.f32 %v6111_v35, %v6111_v35 }
 0x4da   : > { %v2619_v4 = vpop.f32.mrf.mxu0 }
 0x4db   : > { %v2780_v28 = vmul.f32 %v2748_v55, %v6111_v35 }
 0x4dc   : > { %v6113_v25 = vpop.f32.mrf.mxu0 }
 0x4dd   : > { %v2749_v63 = vmul.f32 %v6113_v25, %v6113_v25 }
 0x4de   : > { %v2624_v57 = vpop.f32.mrf.mxu0 }
 0x4df   : > { %v2781_v5 = vmul.f32 %v2749_v63, %v6113_v25 }
 0x4e0   : > { %v6115_v26 = vpop.f32.mrf.mxu0 }
 0x4e1   : > { %v2750_v21 = vmul.f32 %v6115_v26, %v6115_v26  ;;  %v2813_v4 = vmul.f32 0.044715, %v2781_v5 }
 0x4e2   : > { %v2629_v32 = vpop.f32.mrf.mxu0 }
 0x4e3   : > { %v2782_v17 = vmul.f32 %v2750_v21, %v6115_v26  ;;  %v2845_v21 = vadd.f32 %v2813_v4, %v6113_v25 }
 0x4e4   : > { %v6117_v48 = vpop.f32.mrf.mxu0 }
 0x4e5   : > { %v2751_v23 = vmul.f32 %v6117_v48, %v6117_v48  ;;  %v2814_v56 = vmul.f32 0.044715, %v2782_v17 }
 0x4e6   : > { %v2634_v15 = vpop.f32.mrf.mxu0 }
 0x4e7   : > { %v2783_v58 = vmul.f32 %v2751_v23, %v6117_v48  ;;  %v2777_v23 = vmul.f32 %v2745_v29, %v6105_v7 }
 0x4e8   : > { %v6119_v42 = vpop.f32.mrf.mxu0 }
 0x4e9   : > { %v2752_v41 = vmul.f32 %v6119_v42, %v6119_v42  ;;  %v2815_v24 = vmul.f32 0.044715, %v2783_v58 }
 0x4ea   : > { %v2639_v1 = vpop.f32.mrf.mxu0 }
 0x4eb   : > { %v2784_v49 = vmul.f32 %v2752_v41, %v6119_v42  ;;  %v2847_v57 = vadd.f32 %v2815_v24, %v6117_v48  ;;  %v2744_v1 = vmul.f32 %v6103_v12, %v6103_v12 }
 0x4ec   : > { %v6121_v14 = vpop.f32.mrf.mxu0 }
 0x4ed   : > { %v2753_v9 = vmul.f32 %v6121_v14, %v6121_v14  ;;  %v2816_v40 = vmul.f32 0.044715, %v2784_v49  ;;  %v2879_v49 = vmul.f32 0.7978846, %v2847_v57 }
 0x4ee   : > { %v2644_v59 = vpop.f32.mrf.mxu0 }
 0x4ef   : > { %v2785_v16 = vmul.f32 %v2753_v9, %v6121_v14  ;;  %v2848_v46 = vadd.f32 %v2816_v40, %v6119_v42  ;;  %v2778_v59 = vmul.f32 %v2746_v34, %v6107_v47  ;;  %v2812_v9 = vmul.f32 0.044715, %v2780_v28 }
 0x4f0   : > { %v6125_v36 = vpop.f32.mrf.mxu0  ;;  %v2809_v40 = vmul.f32 0.044715, %v2777_v23 }
 0x4f1   : > { %v2754_v13 = vmul.f32 %v6125_v36, %v6125_v36  ;;  %v2817_v38 = vmul.f32 0.044715, %v2785_v16  ;;  %v2880_v41 = vmul.f32 0.7978846, %v2848_v46  ;;  %v2844_v63 = vadd.f32 %v2812_v9, %v6111_v35 }
 0x4f2   : > { %v2649_v44 = vpop.f32.mrf.mxu0  ;;  %v2841_v28 = vadd.f32 %v2809_v40, %v6105_v7 }
 0x4f3   : > { %v2786_v51 = vmul.f32 %v2754_v13, %v6125_v36  ;;  %v2849_v54 = vadd.f32 %v2817_v38, %v6121_v14  ;;  %v2846_v13 = vadd.f32 %v2814_v56, %v6115_v26  ;;  %v2776_v38 = vmul.f32 %v2744_v1, %v6103_v12 }
 0x4f4   : > { %v6135_v43 = vpop.f32.mrf.mxu0  ;;  %v2876_v5 = vmul.f32 0.7978846, %v2844_v63 }
 0x4f5   : > { %v2755_v45 = vmul.f32 %v6135_v43, %v6135_v43  ;;  %v2818_v31 = vmul.f32 0.044715, %v2786_v51  ;;  %v2881_v50 = vmul.f32 0.7978846, %v2849_v54  ;;  %v2743_v51 = vmul.f32 %v6101_v62, %v6101_v62 }
 0x4f6   : > { %v2654_v19 = vpop.f32.mrf.mxu0  ;;  %v2878_v58 = vmul.f32 0.7978846, %v2846_v13  ;;  %v2808_v54 = vmul.f32 0.044715, %v2776_v38 }
 0x4f7   : > { %v2787_v2 = vmul.f32 %v2755_v45, %v6135_v43  ;;  %v2850_v20 = vadd.f32 %v2818_v31, %v6125_v36  ;;  %v2811_v45 = vmul.f32 0.044715, %v2779_v0  ;;  %v2742_v19 = vmul.f32 %v6099_v52, %v6099_v52 }
 0x4f8   : > { %v6146_v60 = vpop.f32.mrf.mxu0  ;;  %v2775_v17 = vmul.f32 %v2743_v51, %v6101_v62 }
 0x4f9   : > { %v2819_v61 = vmul.f32 0.044715, %v2787_v2  ;;  %v2756_v3 = vmul.f32 %v6146_v60, %v6146_v60  ;;  %v2882_v18 = vmul.f32 0.7978846, %v2850_v20  ;;  %v2810_v2 = vmul.f32 0.044715, %v2778_v59 }
 0x4fa   : > { %v2659_v8 = vpop.f32.mrf.mxu0  ;;  %v2843_v20 = vadd.f32 %v2811_v45, %v6109_v22  ;;  %v2774_v30 = vmul.f32 %v2742_v19, %v6099_v52  ;;  %v2807_v34 = vmul.f32 0.044715, %v2775_v17 }
 0x4fb   : > { %v2851_v27 = vadd.f32 %v2819_v61, %v6135_v43  ;;  %v2788_v33 = vmul.f32 %v2756_v3, %v6146_v60  ;;  %v2741_v61 = vmul.f32 %v6097_v11, %v6097_v11  ;;  %v2877_v3 = vmul.f32 0.7978846, %v2845_v21 }
 0x4fc   : > { %v6160_v53 = vpop.f32.mrf.mxu0  ;;  %v2839_v4 = vadd.f32 %v2807_v34, %v6101_v62 }
 0x4fd   : > { %v2883_v6 = vmul.f32 0.7978846, %v2851_v27  ;;  %v2820_v39 = vmul.f32 0.044715, %v2788_v33  ;;  %v2842_v27 = vadd.f32 %v2810_v2, %v6107_v47  ;;  %v2773_v33 = vmul.f32 %v2741_v61, %v6097_v11 }
 0x4fe   : > { %v2664_v10 = vpop.f32.mrf.mxu0  ;;  %v2871_v21 = vmul.f32 0.7978846, %v2839_v4 }
 0x4ff   : > { %3974 = vtanh.f32 %v2883_v6  ;;  %v2852_v32 = vadd.f32 %v2820_v39, %v6146_v60  ;;  %v2875_v6 = vmul.f32 0.7978846, %v2843_v20  ;;  %v2840_v39 = vadd.f32 %v2808_v54, %v6103_v12 }
 0x500   : > { %v6171_v15 = vpop.f32.mrf.mxu0  ;;  %3976 = vtanh.f32 %v2882_v18  ;;  %v2806_v18 = vmul.f32 0.044715, %v2774_v30  ;;  %v2874_v10 = vmul.f32 0.7978846, %v2842_v27 }
 0x501   : > { %v2884_v44 = vmul.f32 0.7978846, %v2852_v32  ;;  %3978 = vtanh.f32 %v2881_v50  ;;  %v2805_v50 = vmul.f32 0.044715, %v2773_v33  ;;  %v2873_v32 = vmul.f32 0.7978846, %v2841_v28 }
 0x502   : > { %v2669_v16 = vpop.f32.mrf.mxu0  ;;  %v2838_v13 = vadd.f32 %v2806_v18, %v6099_v52 }
 0x503   : > { %3980 = vtanh.f32 %v2884_v44  ;;  %v2837_v45 = vadd.f32 %v2805_v50, %v6097_v11 }
 0x504   : > { %v6181_v31 = vpop.f32.mrf.mxu0  ;;  %3982 = vtanh.f32 %v2880_v41  ;;  %v2872_v41 = vmul.f32 0.7978846, %v2840_v39 }
 0x505   : > { %3984 = vtanh.f32 %v2879_v49 }
 0x506   : > { %v2674_v55 = vpop.f32.mrf.mxu0  ;;  %3986 = vtanh.f32 %v2878_v58  ;;  %v2870_v58 = vmul.f32 0.7978846, %v2838_v13 }
 0x507   : > { %3988 = vtanh.f32 %v2877_v3  ;;  %v2869_v3 = vmul.f32 0.7978846, %v2837_v45 }
 0x508   : > { %v6191_v8 = vpop.f32.mrf.mxu0  ;;  %3990 = vtanh.f32 %v2876_v5 }
 0x509   : > { %3992 = vtanh.f32 %v2875_v6 }
 0x50a   : > { %v2679_v24 = vpop.f32.mrf.mxu0  ;;  %3994 = vtanh.f32 %v2874_v10 }
 0x50b   : > { %3996 = vtanh.f32 %v2873_v32 }
 0x50c   : > { %v6197_v56 = vpop.f32.mrf.mxu0  ;;  %v3975_v46 = vpop.eup %3974  ;;  %3998 = vtanh.f32 %v2872_v41 }
 0x50d   : > { %v3977_v0 = vpop.eup %3976  ;;  %v2947_v1 = vadd.f32 1.0, %v3975_v46  ;;  %4000 = vtanh.f32 %v2871_v21 }
 0x50e   : > { %v2684_v29 = vpop.f32.mrf.mxu0  ;;  %v3979_v57 = vpop.eup %3978  ;;  %v2946_v44 = vadd.f32 1.0, %v3977_v0  ;;  %4002 = vtanh.f32 %v2870_v58 }
 0x50f   : > { %v2945_v49 = vadd.f32 1.0, %v3979_v57  ;;  %v2979_v19 = vmul.f32 0.5, %v2947_v1  ;;  %4004 = vtanh.f32 %v2869_v3 }
 0x510   : > { %v6201_v59 = vpop.f32.mrf.mxu0  ;;  %v3981_v9 = vpop.eup %3980  ;;  %v2978_v61 = vmul.f32 0.5, %v2946_v44 }
 0x511   : > { %v2948_v16 = vadd.f32 1.0, %v3981_v9  ;;  %v3983_v23 = vpop.eup %3982  ;;  %v2977_v54 = vmul.f32 0.5, %v2945_v49  ;;  %v3011_v27 = vmul.f32 %v2979_v19, %v6135_v43 }
 0x512   : > { %v2689_v51 = vpop.f32.mrf.mxu0  ;;  %v3985_v63 = vpop.eup %3984  ;;  %v2944_v55 = vadd.f32 1.0, %v3983_v23  ;;  %v3010_v34 = vmul.f32 %v2978_v61, %v6125_v36 }
 0x513   : > { %v2980_v38 = vmul.f32 0.5, %v2948_v16  ;;  %v3987_v20 = vpop.eup %3986  ;;  %v2943_v30 = vadd.f32 1.0, %v3985_v63  ;;  %v3009_v18 = vmul.f32 %v2977_v54, %v6121_v14 }
 0x514   : > { %v6205_v2 = vpop.f32.mrf.mxu0  ;;  %v3989_v24 = vpop.eup %3988  ;;  %v2942_v33 = vadd.f32 1.0, %v3987_v20 }
 0x515   : > { %v3012_v17 = vmul.f32 %v2980_v38, %v6146_v60  ;;  %v2976_v60 = vmul.f32 0.5, %v2944_v55  ;;  %v3991_v6 = vpop.eup %3990  ;;  %v2941_v43 = vadd.f32 1.0, %v3989_v24  ;;  %v2975_v46 = vmul.f32 0.5, %v2943_v30 }
 0x516   : > { %v2694_v40 = vpop.f32.mrf.mxu0  ;;  %v3993_v10 = vpop.eup %3992  ;;  %v2940_v36 = vadd.f32 1.0, %v3991_v6  ;;  %v2974_v29 = vmul.f32 0.5, %v2942_v33 }
 0x517   : > { %3030 = vmatpush1.msra.mxu0 %v3012_v17  ;;  %3679 = vmatpush1.msra.mxu1 %v3012_v17  ;;  %v3008_v0 = vmul.f32 %v2976_v60, %v6119_v42  ;;  %v3995_v4 = vpop.eup %3994  ;;  %v2939_v14 = vadd.f32 1.0, %v3993_v10  ;;  %v2973_v57 = vmul.f32 0.5, %v2941_v43  ;;  %v3007_v32 = vmul.f32 %v2975_v46, %v6117_v48 }
 0x518   : > { %v6209_v5 = vpop.f32.mrf.mxu0  ;;  %3031 = vmatprep.subr.mxu0 %v6645_v37  ;;  %3648 = vmatprep.subr.mxu1 %v6645_v37  ;;  %v3997_v9 = vpop.eup %3996  ;;  %v2938_v42 = vadd.f32 1.0, %v3995_v4  ;;  %v2972_v13 = vmul.f32 0.5, %v2940_v36  ;;  %v3006_v41 = vmul.f32 %v2974_v29, %v6115_v26 }
 0x519   : > { %3032 = vmatpush1.msra.mxu0 %v3011_v27  ;;  %3680 = vmatpush1.msra.mxu1 %v3011_v27  ;;  %v3999_v16 = vpop.eup %3998  ;;  %v2937_v48 = vadd.f32 1.0, %v3997_v9  ;;  %v2971_v51 = vmul.f32 0.5, %v2939_v14  ;;  %v3005_v23 = vmul.f32 %v2973_v57, %v6113_v25 }
 0x51a   : > { %v2699_v28 = vpop.f32.mrf.mxu0  ;;  %3033 = vmatprep.subr.mxu0 %v6645_v37  ;;  %3649 = vmatprep.subr.mxu1 %v6645_v37  ;;  %v4001_v21 = vpop.eup %4000  ;;  %v2936_v26 = vadd.f32 1.0, %v3999_v16  ;;  %v2970_v49 = vmul.f32 0.5, %v2938_v42  ;;  %v3004_v19 = vmul.f32 %v2972_v13, %v6111_v35  ;;  %v2764_v13 = vmul.f32 %v6209_v5, %v6209_v5 }
 0x51b   : > { %3034 = vmatpush1.msra.mxu0 %v3010_v34  ;;  %3681 = vmatpush1.msra.mxu1 %v3010_v34  ;;  %v4003_v63 = vpop.eup %4002  ;;  %v2935_v25 = vadd.f32 1.0, %v4001_v21  ;;  %v2969_v58 = vmul.f32 0.5, %v2937_v48  ;;  %v3003_v55 = vmul.f32 %v2971_v51, %v6109_v22  ;;  %v2763_v21 = vmul.f32 %v6205_v2, %v6205_v2 }
 0x51c   : > { %v6217_v39 = vpop.f32.mrf.mxu0  ;;  %3035 = vmatprep.subr.mxu0 %v6645_v37  ;;  %3650 = vmatprep.subr.mxu1 %v6645_v37  ;;  %v4005_v17 = vpop.eup %4004  ;;  %v2934_v35 = vadd.f32 1.0, %v4003_v63  ;;  %v2968_v40 = vmul.f32 0.5, %v2936_v26  ;;  %v3002_v20 = vmul.f32 %v2970_v49, %v6107_v47 }
 0x51d   : > { %3036 = vmatpush1.msra.mxu0 %v3009_v18  ;;  %3682 = vmatpush1.msra.mxu1 %v3009_v18  ;;  %v2933_v22 = vadd.f32 1.0, %v4005_v17  ;;  %v2967_v30 = vmul.f32 0.5, %v2935_v25  ;;  %v3001_v54 = vmul.f32 %v2969_v58, %v6105_v7  ;;  %v2762_v25 = vmul.f32 %v6201_v59, %v6201_v59 }
 0x51e   : > { %v2704_v50 = vpop.f32.mrf.mxu0  ;;  %3037 = vmatprep.subr.mxu0 %v6645_v37  ;;  %3651 = vmatprep.subr.mxu1 %v6645_v37  ;;  %v2966_v47 = vmul.f32 0.5, %v2934_v35  ;;  %v3000_v24 = vmul.f32 %v2968_v40, %v6103_v12  ;;  %v2796_v58 = vmul.f32 %v2764_v13, %v6209_v5 }
 0x51f   : > { %3038 = vmatpush1.msra.mxu0 %v3008_v0  ;;  %3683 = vmatpush1.msra.mxu1 %v3008_v0  ;;  %v2965_v7 = vmul.f32 0.5, %v2933_v22  ;;  %v2999_v34 = vmul.f32 %v2967_v30, %v6101_v62  ;;  %v2795_v22 = vmul.f32 %v2763_v21, %v6205_v2 }
 0x520   : > { %v6225_v1 = vpop.f32.mrf.mxu0  ;;  %3039 = vmatprep.subr.mxu0 %v6645_v37  ;;  %3652 = vmatprep.subr.mxu1 %v6645_v37  ;;  %v2998_v6 = vmul.f32 %v2966_v47, %v6099_v52 }
 0x521   : > { %3040 = vmatpush1.msra.mxu0 %v3007_v32  ;;  %3684 = vmatpush1.msra.mxu1 %v3007_v32  ;;  %v2997_v10 = vmul.f32 %v2965_v7, %v6097_v11  ;;  %v2766_v0 = vmul.f32 %v6225_v1, %v6225_v1  ;;  %v2765_v32 = vmul.f32 %v6217_v39, %v6217_v39  ;;  %v2828_v7 = vmul.f32 0.044715, %v2796_v58 }
 0x522   : > { %v2709_v44 = vpop.f32.mrf.mxu0  ;;  %3041 = vmatprep.subr.mxu0 %v6645_v37  ;;  %3653 = vmatprep.subr.mxu1 %v6645_v37 }
 0x523   : > { %3042 = vmatpush1.msra.mxu0 %v3006_v41  ;;  %3685 = vmatpush1.msra.mxu1 %v3006_v41  ;;  %v2798_v44 = vmul.f32 %v2766_v0, %v6225_v1 }
 0x524   : > { %v6233_v45 = vpop.f32.mrf.mxu0  ;;  %3043 = vmatprep.subr.mxu0 %v6645_v37  ;;  %3654 = vmatprep.subr.mxu1 %v6645_v37 }
 0x525   : > { %3044 = vmatpush1.msra.mxu0 %v3005_v23  ;;  %3686 = vmatpush1.msra.mxu1 %v3005_v23  ;;  %v2767_v36 = vmul.f32 %v6233_v45, %v6233_v45  ;;  %v2830_v17 = vmul.f32 0.044715, %v2798_v44 }
 0x526   : > { %v2714_v38 = vpop.f32.mrf.mxu0  ;;  %3045 = vmatprep.subr.mxu0 %v6645_v37  ;;  %3655 = vmatprep.subr.mxu1 %v6645_v37 }
 0x527   : > { %3046 = vmatpush1.msra.mxu0 %v3004_v19  ;;  %3687 = vmatpush1.msra.mxu1 %v3004_v19  ;;  %v2799_v9 = vmul.f32 %v2767_v36, %v6233_v45  ;;  %v2797_v19 = vmul.f32 %v2765_v32, %v6217_v39  ;;  %v2758_v36 = vmul.f32 %v6171_v15, %v6171_v15 }
 0x528   : > { %v6241_v61 = vpop.f32.mrf.mxu0  ;;  %3047 = vmatprep.subr.mxu0 %v6645_v37  ;;  %3656 = vmatprep.subr.mxu1 %v6645_v37 }
 0x529   : > { %3048 = vmatpush1.msra.mxu0 %v3003_v55  ;;  %3688 = vmatpush1.msra.mxu1 %v3003_v55  ;;  %v2768_v43 = vmul.f32 %v6241_v61, %v6241_v61  ;;  %v2831_v38 = vmul.f32 0.044715, %v2799_v9  ;;  %v2790_v13 = vmul.f32 %v2758_v36, %v6171_v15 }
 0x52a   : > { %v2719_v3 = vpop.f32.mrf.mxu0  ;;  %3049 = vmatprep.subr.mxu0 %v6645_v37  ;;  %3657 = vmatprep.subr.mxu1 %v6645_v37 }
 0x52b   : > { %3050 = vmatpush1.msra.mxu0 %v3002_v20  ;;  %3689 = vmatpush1.msra.mxu1 %v3002_v20  ;;  %v2800_v50 = vmul.f32 %v2768_v43, %v6241_v61  ;;  %v2761_v3 = vmul.f32 %v6197_v56, %v6197_v56  ;;  %v2863_v47 = vadd.f32 %v2831_v38, %v6233_v45 }
 0x52c   : > { %v6249_v27 = vpop.f32.mrf.mxu0  ;;  %3051 = vmatprep.subr.mxu0 %v6645_v37  ;;  %3658 = vmatprep.subr.mxu1 %v6645_v37  ;;  %v2759_v43 = vmul.f32 %v6181_v31, %v6181_v31 }
 0x52d   : > { %3052 = vmatpush1.msra.mxu0 %v3001_v54  ;;  %3690 = vmatpush1.msra.mxu1 %v3001_v54  ;;  %v2769_v60 = vmul.f32 %v6249_v27, %v6249_v27  ;;  %v2832_v16 = vmul.f32 0.044715, %v2800_v50  ;;  %v2829_v54 = vmul.f32 0.044715, %v2797_v19  ;;  %v2860_v50 = vadd.f32 %v2828_v7, %v6209_v5 }
 0x52e   : > { %v2724_v33 = vpop.f32.mrf.mxu0  ;;  %3053 = vmatprep.subr.mxu0 %v6645_v37  ;;  %3659 = vmatprep.subr.mxu1 %v6645_v37 }
 0x52f   : > { %3054 = vmatpush1.msra.mxu0 %v3000_v24  ;;  %3691 = vmatpush1.msra.mxu1 %v3000_v24  ;;  %v2801_v62 = vmul.f32 %v2769_v60, %v6249_v27  ;;  %v2864_v35 = vadd.f32 %v2832_v16, %v6241_v61  ;;  %v2760_v33 = vmul.f32 %v6191_v8, %v6191_v8  ;;  %v2892_v16 = vmul.f32 0.7978846, %v2860_v50 }
 0x530   : > { %v6259_v28 = vpop.f32.mrf.mxu0  ;;  %3055 = vmatprep.subr.mxu0 %v6645_v37  ;;  %3660 = vmatprep.subr.mxu1 %v6645_v37  ;;  %v2794_v60 = vmul.f32 %v2762_v25, %v6201_v59 }
 0x531   : > { %v2770_v12 = vmul.f32 %v6259_v28, %v6259_v28  ;;  %3056 = vmatpush1.msra.mxu0 %v2999_v34  ;;  %3692 = vmatpush1.msra.mxu1 %v2999_v34  ;;  %v2833_v14 = vmul.f32 0.044715, %v2801_v62  ;;  %v2862_v34 = vadd.f32 %v2830_v17, %v6225_v1  ;;  %v2827_v62 = vmul.f32 0.044715, %v2795_v22 }
 0x532   : > { %v2729_v46 = vpop.f32.mrf.mxu0  ;;  %3057 = vmatprep.subr.mxu0 %v6645_v37  ;;  %3661 = vmatprep.subr.mxu1 %v6645_v37  ;;  %v2826_v0 = vmul.f32 0.044715, %v2794_v60 }
 0x533   : > { %v2802_v18 = vmul.f32 %v2770_v12, %v6259_v28  ;;  %3058 = vmatpush1.msra.mxu0 %v2998_v6  ;;  %3693 = vmatpush1.msra.mxu1 %v2998_v6  ;;  %v2865_v26 = vadd.f32 %v2833_v14, %v6249_v27  ;;  %v2896_v12 = vmul.f32 0.7978846, %v2864_v35  ;;  %v2793_v46 = vmul.f32 %v2761_v3, %v6197_v56 }
 0x534   : > { %v6275_v52 = vpop.f32.mrf.mxu0  ;;  %3059 = vmatprep.subr.mxu0 %v6645_v37  ;;  %3662 = vmatprep.subr.mxu1 %v6645_v37  ;;  %v2791_v14 = vmul.f32 %v2759_v43, %v6181_v31  ;;  %v2859_v32 = vadd.f32 %v2827_v62, %v6205_v2  ;;  %v2858_v44 = vadd.f32 %v2826_v0, %v6201_v59 }
 0x535   : > { %v2771_v29 = vmul.f32 %v6275_v52, %v6275_v52  ;;  %v2834_v11 = vmul.f32 0.044715, %v2802_v18  ;;  %3060 = vmatpush1.msra.mxu0 %v2997_v10  ;;  %3694 = vmatpush1.msra.mxu1 %v2997_v10  ;;  %v2897_v30 = vmul.f32 0.7978846, %v2865_v26  ;;  %v2861_v18 = vadd.f32 %v2829_v54, %v6217_v39 }
 0x536   : > { %v2734_v4 = vpop.f32.mrf.mxu0  ;;  %3061 = vmatprep.subr.mxu0 %v6645_v37  ;;  %3663 = vmatprep.subr.mxu1 %v6645_v37  ;;  %v2895_v10 = vmul.f32 0.7978846, %v2863_v47  ;;  %v2891_v21 = vmul.f32 0.7978846, %v2859_v32  ;;  %v2890_v38 = vmul.f32 0.7978846, %v2858_v44 }
 0x537   : > { %v2803_v57 = vmul.f32 %v2771_v29, %v6275_v52  ;;  %v2866_v48 = vadd.f32 %v2834_v11, %v6259_v28  ;;  %v2792_v29 = vmul.f32 %v2760_v33, %v6191_v8  ;;  %v2894_v11 = vmul.f32 0.7978846, %v2862_v34 }
 0x538   : > { %v6290_v42 = vpop.f32.mrf.mxu0  ;;  %v2757_v4 = vmul.f32 %v6160_v53, %v6160_v53  ;;  %v2893_v9 = vmul.f32 0.7978846, %v2861_v18 }
 0x539   : > { %v2835_v41 = vmul.f32 0.044715, %v2803_v57  ;;  %v2772_v51 = vmul.f32 %v6290_v42, %v6290_v42  ;;  %v2898_v40 = vmul.f32 0.7978846, %v2866_v48  ;;  %v2825_v57 = vmul.f32 0.044715, %v2793_v46 }
 0x53a   : > { %v2739_v23 = vpop.f32.mrf.mxu0  ;;  %v2789_v48 = vmul.f32 %v2757_v4, %v6160_v53 }
 0x53b   : > { %v2867_v49 = vadd.f32 %v2835_v41, %v6275_v52  ;;  %v2804_v63 = vmul.f32 %v2772_v51, %v6290_v42  ;;  %v2824_v41 = vmul.f32 0.044715, %v2792_v29  ;;  %v2823_v51 = vmul.f32 0.044715, %v2791_v14 }
 0x53c   : > { %v2857_v23 = vadd.f32 %v2825_v57, %v6197_v56  ;;  %v2821_v25 = vmul.f32 0.044715, %v2789_v48 }
 0x53d   : > { %v2899_v55 = vmul.f32 0.7978846, %v2867_v49  ;;  %v2836_v20 = vmul.f32 0.044715, %v2804_v63  ;;  %v2822_v49 = vmul.f32 0.044715, %v2790_v13  ;;  %v2856_v19 = vadd.f32 %v2824_v41, %v6191_v8 }
 0x53e   : > { %v2855_v58 = vadd.f32 %v2823_v51, %v6181_v31  ;;  %v2889_v17 = vmul.f32 0.7978846, %v2857_v23  ;;  %v2853_v47 = vadd.f32 %v2821_v25, %v6160_v53 }
 0x53f   : > { %4006 = vtanh.f32 %v2899_v55  ;;  %v2868_v24 = vadd.f32 %v2836_v20, %v6290_v42  ;;  %v2854_v20 = vadd.f32 %v2822_v49, %v6171_v15  ;;  %v2888_v3 = vmul.f32 0.7978846, %v2856_v19 }
 0x540   : > { %4008 = vtanh.f32 %v2898_v40  ;;  %v2885_v18 = vmul.f32 0.7978846, %v2853_v47  ;;  %v4140_v47 = vld [vmem:[%s6614_s4 + $0x80] sm:$0xff] }
 0x541   : > { %v2900_v6 = vmul.f32 0.7978846, %v2868_v24  ;;  %4010 = vtanh.f32 %v2897_v30  ;;  %v2887_v24 = vmul.f32 0.7978846, %v2855_v58 }
 0x543   : > { %4012 = vtanh.f32 %v2900_v6 }
 0x544   : > { %4014 = vtanh.f32 %v2896_v12  ;;  %v2886_v12 = vmul.f32 0.7978846, %v2854_v20 }
 0x545   : > { %4016 = vtanh.f32 %v2895_v10 }
 0x546   : > { %4018 = vtanh.f32 %v2894_v11 }
 0x547   : > { %4020 = vtanh.f32 %v2893_v9 }
 0x548   : > { %4022 = vtanh.f32 %v2892_v16 }
 0x549   : > { %4024 = vtanh.f32 %v2891_v21 }
 0x54a   : > { %4026 = vtanh.f32 %v2890_v38 }
 0x54b   : > { %4028 = vtanh.f32 %v2889_v17 }
 0x54c   : > { %v4007_v26 = vpop.eup %4006  ;;  %4030 = vtanh.f32 %v2888_v3 }
 0x54d   : > { %v4009_v63 = vpop.eup %4008  ;;  %v2963_v35 = vadd.f32 1.0, %v4007_v26  ;;  %4032 = vtanh.f32 %v2887_v24  ;;  %v4141_v24 = vld [vmem:[%s6614_s4 + $0x10] sm:$0xff] }
 0x54e   : > { %v4011_v55 = vpop.eup %4010  ;;  %v2962_v22 = vadd.f32 1.0, %v4009_v63  ;;  %4034 = vtanh.f32 %v2886_v12  ;;  %v4146_v12 = vld [vmem:[%s6614_s4 + $0xa8] sm:$0xff] }
 0x54f   : > { %v2961_v33 = vadd.f32 1.0, %v4011_v55  ;;  %v2995_v60 = vmul.f32 0.5, %v2963_v35  ;;  %4036 = vtanh.f32 %v2885_v18  ;;  %v4151_v18 = vld [vmem:[%s6614_s4 + $0x48] sm:$0xff] }
 0x550   : > { %v4013_v40 = vpop.eup %4012  ;;  %v2994_v43 = vmul.f32 0.5, %v2962_v22 }
 0x551   : > { %v2964_v30 = vadd.f32 1.0, %v4013_v40  ;;  %v4015_v54 = vpop.eup %4014  ;;  %v2993_v36 = vmul.f32 0.5, %v2961_v33  ;;  %v3027_v29 = vmul.f32 %v2995_v60, %v6275_v52  ;;  %v4142_v33 = vld [vmem:[%s6614_s4 + $0x98] sm:$0xff]  ;;  %v4143_v60 = vld [vmem:[%s6614_s4 + $0x28] sm:$0xff] }
 0x552   : > { %v4017_v34 = vpop.eup %4016  ;;  %v2960_v6 = vadd.f32 1.0, %v4015_v54  ;;  %v3026_v4 = vmul.f32 %v2994_v43, %v6259_v28  ;;  %v4148_v43 = vld [vmem:[%s6614_s4 + $0xa0] sm:$0xff] }
 0x553   : > { %v2996_v7 = vmul.f32 0.5, %v2964_v30  ;;  %v4019_v62 = vpop.eup %4018  ;;  %v2959_v10 = vadd.f32 1.0, %v4017_v34  ;;  %v3025_v57 = vmul.f32 %v2993_v36, %v6249_v27  ;;  %v4145_v34 = vld [vmem:[%s6614_s4 + $0x20] sm:$0xff] }
 0x554   : > { %v4021_v0 = vpop.eup %4020  ;;  %v2958_v50 = vadd.f32 1.0, %v4019_v62  ;;  %v2992_v11 = vmul.f32 0.5, %v2960_v6  ;;  %v4147_v6 = vld [vmem:[%s6614_s4 + $0x38] sm:$0xff]  ;;  %v4153_v36 = vld [vmem:[%s6614_s4 + $0x40] sm:$0xff] }
 0x555   : > { %v3028_v46 = vmul.f32 %v2996_v7, %v6290_v42  ;;  %v4023_v42 = vpop.eup %4022  ;;  %v2957_v52 = vadd.f32 1.0, %v4021_v0  ;;  %v2991_v14 = vmul.f32 0.5, %v2959_v10  ;;  %v4144_v7 = vld [vmem:[%s6614_s4 + $0x90] sm:$0xff]  ;;  %v4150_v62 = vld [vmem:[%s6614_s4 + $0xb8] sm:$0xff] }
 0x556   : > { %v4025_v32 = vpop.eup %4024  ;;  %v2956_v28 = vadd.f32 1.0, %v4023_v42  ;;  %v2990_v9 = vmul.f32 0.5, %v2958_v50  ;;  %v3024_v13 = vmul.f32 %v2992_v11, %v6241_v61  ;;  %v4152_v10 = vld [vmem:[%s6614_s4 + $0xb0] sm:$0xff]  ;;  %v4155_v0 = vld [vmem:[%s6614_s4 + $0x58] sm:$0xff]  ;;  %v4156_v50 = vld [vmem:[%s6614_s4 + $0xc0] sm:$0xff] }
 0x557   : > { %3062 = vmatpush2.msra.mxu0 %v3028_v46  ;;  %3695 = vmatpush2.msra.mxu1 %v3028_v46  ;;  %v4027_v41 = vpop.eup %4026  ;;  %v2955_v44 = vadd.f32 1.0, %v4025_v32  ;;  %v2989_v27 = vmul.f32 0.5, %v2957_v52  ;;  %v3023_v16 = vmul.f32 %v2991_v14, %v6233_v45  ;;  %v4149_v46 = vld [vmem:[%s6614_s4 + $0x30] sm:$0xff]  ;;  %v4159_v42 = vld [vmem:[%s6614_s4 + $0x68] sm:$0xff]  ;;  %v4161_v14 = vld [vmem:[%s6614_s4 + $0x60] sm:$0xff] }
 0x558   : > { %3063 = vmatprep.subr.mxu0 %v6645_v37  ;;  %3664 = vmatprep.subr.mxu1 %v6645_v37  ;;  %v4029_v48 = vpop.eup %4028  ;;  %v2954_v51 = vadd.f32 1.0, %v4027_v41  ;;  %v2988_v61 = vmul.f32 0.5, %v2956_v28  ;;  %v3022_v23 = vmul.f32 %v2990_v9, %v6225_v1  ;;  %v4157_v11 = vld [vmem:[%s6614_s4 + $0x50] sm:$0xff]  ;;  %v4163_v32 = vld [vmem:[%s6614_s4 + $0xe0] sm:$0xff]  ;;  %v4164_v28 = vld [vmem:[%s6614_s4 + $0xf8] sm:$0xff] }
 0x559   : > { %3064 = vmatpush2.msra.mxu0 %v3027_v29  ;;  %3696 = vmatpush2.msra.mxu1 %v3027_v29  ;;  %v4031_v21 = vpop.eup %4030  ;;  %v2953_v26 = vadd.f32 1.0, %v4029_v48  ;;  %v2987_v45 = vmul.f32 0.5, %v2955_v44  ;;  %v3021_v49 = vmul.f32 %v2989_v27, %v6217_v39  ;;  %v4154_v29 = vld [vmem:[%s6614_s4 + $0xc8] sm:$0xff]  ;;  %v4160_v52 = vld [vmem:[%s6614_s4 + $0xd0] sm:$0xff]  ;;  %v4167_v41 = vld [vmem:[%s6614_s4 + $0x100] sm:$0xff] }
 0x55a   : > { %3065 = vmatprep.subr.mxu0 %v6645_v37  ;;  %3665 = vmatprep.subr.mxu1 %v6645_v37  ;;  %v4033_v19 = vpop.eup %4032  ;;  %v2952_v38 = vadd.f32 1.0, %v4031_v21  ;;  %v2986_v1 = vmul.f32 0.5, %v2954_v51  ;;  %v3020_v63 = vmul.f32 %v2988_v61, %v6209_v5  ;;  %v4165_v9 = vld [vmem:[%s6614_s4 + $0xf0] sm:$0xff]  ;;  %v4168_v44 = vld [vmem:[%s6614_s4 + $0x118] sm:$0xff]  ;;  %v4171_v48 = vld [vmem:[%s6614_s4 + $0x120] sm:$0xff] }
 0x55b   : > { %3066 = vmatpush2.msra.mxu0 %v3026_v4  ;;  %3697 = vmatpush2.msra.mxu1 %v3026_v4  ;;  %v4035_v25 = vpop.eup %4034  ;;  %v2951_v58 = vadd.f32 1.0, %v4033_v19  ;;  %v2985_v39 = vmul.f32 0.5, %v2953_v26  ;;  %v3019_v55 = vmul.f32 %v2987_v45, %v6205_v2  ;;  %v4158_v4 = vld [vmem:[%s6614_s4 + $0xd8] sm:$0xff]  ;;  %v4169_v27 = vld [vmem:[%s6614_s4 + $0x110] sm:$0xff]  ;;  %v4175_v21 = vld [vmem:[%s6614_s4 + $0x140] sm:$0xff] }
 0x55c   : > { %3067 = vmatprep.subr.mxu0 %v6645_v37  ;;  %3666 = vmatprep.subr.mxu1 %v6645_v37  ;;  %v4037_v17 = vpop.eup %4036  ;;  %v2950_v35 = vadd.f32 1.0, %v4035_v25  ;;  %v2984_v5 = vmul.f32 0.5, %v2952_v38  ;;  %v3018_v40 = vmul.f32 %v2986_v1, %v6201_v59  ;;  %v4172_v51 = vld [vmem:[%s6614_s4 + $0x138] sm:$0xff]  ;;  %v4173_v61 = vld [vmem:[%s6614_s4 + $0x130] sm:$0xff]  ;;  %v4179_v19 = vld [vmem:[%s6614_s4 + $0x160] sm:$0xff] }
 0x55d   : > { %3068 = vmatpush2.msra.mxu0 %v3025_v57  ;;  %3698 = vmatpush2.msra.mxu1 %v3025_v57  ;;  %v2949_v20 = vadd.f32 1.0, %v4037_v17  ;;  %v2983_v3 = vmul.f32 0.5, %v2951_v58  ;;  %v3017_v2 = vmul.f32 %v2985_v39, %v6197_v56  ;;  %v4162_v57 = vld [vmem:[%s6614_s4 + $0xe8] sm:$0xff]  ;;  %v4176_v26 = vld [vmem:[%s6614_s4 + $0x158] sm:$0xff]  ;;  %v4177_v45 = vld [vmem:[%s6614_s4 + $0x150] sm:$0xff] }
 0x55e   : > { %3069 = vmatprep.subr.mxu0 %v6645_v37  ;;  %3667 = vmatprep.subr.mxu1 %v6645_v37  ;;  %v2982_v22 = vmul.f32 0.5, %v2950_v35  ;;  %v3016_v30 = vmul.f32 %v2984_v5, %v6191_v8  ;;  %v4180_v38 = vld [vmem:[%s6614_s4 + $0x178] sm:$0xff]  ;;  %v4181_v1 = vld [vmem:[%s6614_s4 + $0x170] sm:$0xff]  ;;  %v4183_v25 = vld [vmem:[%s6614_s4 + $0x180] sm:$0xff] }
 0x55f   : > { %3070 = vmatpush2.msra.mxu0 %v3024_v13  ;;  %3699 = vmatpush2.msra.mxu1 %v3024_v13  ;;  %v2981_v59 = vmul.f32 0.5, %v2949_v20  ;;  %v3015_v54 = vmul.f32 %v2983_v3, %v6181_v31  ;;  %v4137_v31 = vld [vmem:[%s6614_s4] sm:$0xff]  ;;  %v4166_v13 = vld [vmem:[%s6614_s4 + $0x108] sm:$0xff]  ;;  %v4184_v58 = vld [vmem:[%s6614_s4 + $0x198] sm:$0xff] }
 0x560   : > { %3071 = vmatprep.subr.mxu0 %v6645_v37  ;;  %3668 = vmatprep.subr.mxu1 %v6645_v37  ;;  %v3014_v56 = vmul.f32 %v2982_v22, %v6171_v15  ;;  %v4136_v15 = vld [vmem:[%s6614_s4 + $0x70] sm:$0xff]  ;;  %v4187_v17 = vld [vmem:[%s6614_s4 + $0x1a0] sm:$0xff]  ;;  %v4188_v35 = vld [vmem:[%s6614_s4 + $0x1b8] sm:$0xff] }
 0x561   : > { %3072 = vmatpush2.msra.mxu0 %v3023_v16  ;;  %3700 = vmatpush2.msra.mxu1 %v3023_v16  ;;  %v3013_v8 = vmul.f32 %v2981_v59, %v6160_v53  ;;  %v4138_v53 = vld [vmem:[%s6614_s4 + $0x88] sm:$0xff]  ;;  %v4185_v39 = vld [vmem:[%s6614_s4 + $0x190] sm:$0xff]  ;;  %v4191_v20 = vld [vmem:[%s6614_s4 + $0x1c0] sm:$0xff] }
 0x562   : > { %3073 = vmatprep.subr.mxu0 %v6645_v37  ;;  %3669 = vmatprep.subr.mxu1 %v6645_v37  ;;  %v4170_v16 = vld [vmem:[%s6614_s4 + $0x128] sm:$0xff]  ;;  %v4189_v5 = vld [vmem:[%s6614_s4 + $0x1b0] sm:$0xff]  ;;  %v4192_v3 = vld [vmem:[%s6614_s4 + $0x1d8] sm:$0xff] }
 0x563   : > { %3074 = vmatpush2.msra.mxu0 %v3022_v23  ;;  %3701 = vmatpush2.msra.mxu1 %v3022_v23  ;;  %v4174_v23 = vld [vmem:[%s6614_s4 + $0x148] sm:$0xff]  ;;  %v4196_v59 = vld [vmem:[%s6614_s4 + $0x1f8] sm:$0xff] }
 0x564   : > { %3075 = vmatprep.subr.mxu0 %v6645_v37  ;;  %3670 = vmatprep.subr.mxu1 %v6645_v37  ;;  %v4194_v22 = vld [vmem:[%s6614_s4 + $0x1e8] sm:$0xff] }
 0x565   : > { %3076 = vmatpush2.msra.mxu0 %v3021_v49  ;;  %3702 = vmatpush2.msra.mxu1 %v3021_v49  ;;  %v4178_v49 = vld [vmem:[%s6614_s4 + $0x168] sm:$0xff] }
 0x566   : > { %3077 = vmatprep.subr.mxu0 %v6645_v37  ;;  %3671 = vmatprep.subr.mxu1 %v6645_v37 }
 0x567   : > { %3078 = vmatpush2.msra.mxu0 %v3020_v63  ;;  %3703 = vmatpush2.msra.mxu1 %v3020_v63  ;;  %v4182_v63 = vld [vmem:[%s6614_s4 + $0x188] sm:$0xff] }
 0x568   : > { %3079 = vmatprep.subr.mxu0 %v6645_v37  ;;  %3672 = vmatprep.subr.mxu1 %v6645_v37 }
 0x569   : > { %3080 = vmatpush2.msra.mxu0 %v3019_v55  ;;  %3704 = vmatpush2.msra.mxu1 %v3019_v55  ;;  %v4186_v55 = vld [vmem:[%s6614_s4 + $0x1a8] sm:$0xff] }
 0x56a   : > { %3081 = vmatprep.subr.mxu0 %v6645_v37  ;;  %3673 = vmatprep.subr.mxu1 %v6645_v37 }
 0x56b   : > { %3082 = vmatpush2.msra.mxu0 %v3018_v40  ;;  %3705 = vmatpush2.msra.mxu1 %v3018_v40  ;;  %v4190_v40 = vld [vmem:[%s6614_s4 + $0x1c8] sm:$0xff] }
 0x56c   : > { %3083 = vmatprep.subr.mxu0 %v6645_v37  ;;  %3674 = vmatprep.subr.mxu1 %v6645_v37 }
 0x56d   : > { %3084 = vmatpush2.msra.mxu0 %v3017_v2  ;;  %3706 = vmatpush2.msra.mxu1 %v3017_v2  ;;  %v4193_v2 = vld [vmem:[%s6614_s4 + $0x1d0] sm:$0xff] }
 0x56e   : > { %3085 = vmatprep.subr.mxu0 %v6645_v37  ;;  %3675 = vmatprep.subr.mxu1 %v6645_v37 }
 0x56f   : > { %3086 = vmatpush2.msra.mxu0 %v3016_v30  ;;  %3707 = vmatpush2.msra.mxu1 %v3016_v30  ;;  %v4195_v30 = vld [vmem:[%s6614_s4 + $0x1e0] sm:$0xff] }
 0x570   : > { %3087 = vmatprep.subr.mxu0 %v6645_v37  ;;  %3676 = vmatprep.subr.mxu1 %v6645_v37 }
 0x571   : > { %3088 = vmatpush2.msra.mxu0 %v3015_v54  ;;  %3708 = vmatpush2.msra.mxu1 %v3015_v54  ;;  %v4197_v54 = vld [vmem:[%s6614_s4 + $0x1f0] sm:$0xff] }
 0x572   : > { %3089 = vmatprep.subr.mxu0 %v6645_v37  ;;  %3677 = vmatprep.subr.mxu1 %v6645_v37 }
 0x573   : > { %3090 = vmatpush2.msra.mxu0 %v3014_v56  ;;  %3709 = vmatpush2.msra.mxu1 %v3014_v56 }
 0x574   : > { %3091 = vmatprep.subr.mxu0 %v6645_v37  ;;  %3678 = vmatprep.subr.mxu1 %v6645_v37  ;;  %v4139_v37 = vld [vmem:[%s6614_s4 + $0x18] sm:$0xff] }
 0x575   : > { %3092 = vmatpush2.msra.mxu0 %v3013_v8  ;;  %3710 = vmatpush2.msra.mxu1 %v3013_v8 }
 0x576   : > { %3129 = vmatmul.mubr.f32.vlgmr.msra.gmra.mxu1 %v4136_v15  ;;  %3094 = vmatmul.mubr.f32.vlgmr.msra.gmra.mxu0 %v4137_v31 }
 0x577   : > { %3133 = vmatprep.mubr.f32.mxu1 %v4138_v53  ;;  %3098 = vmatprep.mubr.f32.mxu0 %v4139_v37 }
 0x57a   : > { %3134 = vmatmul.mubr.f32.gmra.mxu1 %v4140_v47  ;;  %3099 = vmatmul.mubr.f32.gmra.mxu0 %v4141_v24 }
 0x57b   : > { %3138 = vmatprep.mubr.f32.mxu1 %v4142_v33  ;;  %3103 = vmatprep.mubr.f32.mxu0 %v4143_v60 }
 0x57e   : > { %3139 = vmatmul.mubr.f32.gmra.mxu1 %v4144_v7  ;;  %3104 = vmatmul.mubr.f32.gmra.mxu0 %v4145_v34 }
 0x57f   : > { %3143 = vmatprep.mubr.f32.mxu1 %v4146_v12  ;;  %3108 = vmatprep.mubr.f32.mxu0 %v4147_v6 }
 0x582   : > { %3144 = vmatmul.mubr.f32.gmra.mxu1 %v4148_v43  ;;  %3109 = vmatmul.mubr.f32.gmra.mxu0 %v4149_v46 }
 0x583   : > { %3148 = vmatprep.mubr.f32.mxu1 %v4150_v62  ;;  %3113 = vmatprep.mubr.f32.mxu0 %v4151_v18 }
 0x586   : > { %3149 = vmatmul.mubr.f32.gmra.mxu1 %v4152_v10  ;;  %3114 = vmatmul.mubr.f32.gmra.mxu0 %v4153_v36 }
 0x587   : > { %3153 = vmatprep.mubr.f32.mxu1 %v4154_v29  ;;  %3118 = vmatprep.mubr.f32.mxu0 %v4155_v0 }
 0x58a   : > { %3154 = vmatmul.mubr.f32.gmra.mxu1 %v4156_v50  ;;  %3119 = vmatmul.mubr.f32.gmra.mxu0 %v4157_v11 }
 0x58b   : > { %3158 = vmatprep.mubr.f32.mxu1 %v4158_v4  ;;  %3123 = vmatprep.mubr.f32.mxu0 %v4159_v42 }
 0x58e   : > { %3159 = vmatmul.mubr.f32.gmra.mxu1 %v4160_v52  ;;  %3124 = vmatmul.mubr.f32.gmra.mxu0 %v4161_v14 }
 0x58f   : > { %3163 = vmatprep.mubr.f32.mxu1 %v4162_v57 }
 0x592   : > { %3164 = vmatmul.mubr.f32.gmra.mxu1 %v4163_v32 }
 0x593   : > { %3168 = vmatprep.mubr.f32.mxu1 %v4164_v28 }
 0x596   : > { %3169 = vmatmul.mubr.f32.gmra.mxu1 %v4165_v9 }
 0x597   : > { %3173 = vmatprep.mubr.f32.mxu1 %v4166_v13 }
 0x59a   : > { %3174 = vmatmul.mubr.f32.gmra.mxu1 %v4167_v41 }
 0x59b   : > { %3178 = vmatprep.mubr.f32.mxu1 %v4168_v44 }
 0x59e   : > { %3179 = vmatmul.mubr.f32.gmra.mxu1 %v4169_v27 }
 0x59f   : > { %3183 = vmatprep.mubr.f32.mxu1 %v4170_v16 }
 0x5a2   : > { %3184 = vmatmul.mubr.f32.gmra.mxu1 %v4171_v48 }
 0x5a3   : > { %3188 = vmatprep.mubr.f32.mxu1 %v4172_v51 }
 0x5a6   : > { %3189 = vmatmul.mubr.f32.gmra.mxu1 %v4173_v61 }
 0x5a7   : > { %3193 = vmatprep.mubr.f32.mxu1 %v4174_v23 }
 0x5aa   : > { %3194 = vmatmul.mubr.f32.gmra.mxu1 %v4175_v21 }
 0x5ab   : > { %3198 = vmatprep.mubr.f32.mxu1 %v4176_v26 }
 0x5ae   : > { %3199 = vmatmul.mubr.f32.gmra.mxu1 %v4177_v45 }
 0x5af   : > { %3203 = vmatprep.mubr.f32.mxu1 %v4178_v49 }
 0x5b2   : > { %3204 = vmatmul.mubr.f32.gmra.mxu1 %v4179_v19 }
 0x5b3   : > { %3208 = vmatprep.mubr.f32.mxu1 %v4180_v38 }
 0x5b6   : > { %3209 = vmatmul.mubr.f32.gmra.mxu1 %v4181_v1 }
 0x5b7   : > { %3213 = vmatprep.mubr.f32.mxu1 %v4182_v63 }
 0x5ba   : > { %3214 = vmatmul.mubr.f32.gmra.mxu1 %v4183_v25 }
 0x5bb   : > { %3218 = vmatprep.mubr.f32.mxu1 %v4184_v58 }
 0x5be   : > { %3219 = vmatmul.mubr.f32.gmra.mxu1 %v4185_v39 }
 0x5bf   : > { %3223 = vmatprep.mubr.f32.mxu1 %v4186_v55 }
 0x5c2   : > { %3224 = vmatmul.mubr.f32.gmra.mxu1 %v4187_v17 }
 0x5c3   : > { %3228 = vmatprep.mubr.f32.mxu1 %v4188_v35 }
 0x5c6   : > { %3229 = vmatmul.mubr.f32.gmra.mxu1 %v4189_v5 }
 0x5c7   : > { %3233 = vmatprep.mubr.f32.mxu1 %v4190_v40 }
 0x5ca   : > { %3234 = vmatmul.mubr.f32.gmra.mxu1 %v4191_v20 }
 0x5cb   : > { %3238 = vmatprep.mubr.f32.mxu1 %v4192_v3 }
 0x5ce   : > { %3239 = vmatmul.mubr.f32.gmra.mxu1 %v4193_v2 }
 0x5cf   : > { %3243 = vmatprep.mubr.f32.mxu1 %v4194_v22 }
 0x5d2   : > { %3244 = vmatmul.mubr.f32.gmra.mxu1 %v4195_v30 }
 0x5d3   : > { %3248 = vmatprep.mubr.f32.mxu1 %v4196_v59 }
 0x5d6   : > { %3249 = vmatmul.mubr.f32.gmra.mxu1 %v4197_v54 }
 0x636   : > { %v3130_v56 = vpop.f32.mrf.mxu1  ;;  %v3095_v8 = vpop.f32.mrf.mxu0 }
 0x637   : > { %3261 = vst [vmem:[%s5967_s23 + $0x78] sm:$0xff] %v3130_v56  ;;  %3254 = vst [vmem:[%s5967_s23 + $0x8] sm:$0xff] %v3095_v8 }
 0x638   : > { %v3132_v15 = vpop.f32.mrf.mxu1  ;;  %v3097_v31 = vpop.f32.mrf.mxu0 }
 0x63a   : > { %v3135_v53 = vpop.f32.mrf.mxu1  ;;  %v3100_v37 = vpop.f32.mrf.mxu0 }
 0x63b   : > { %3262 = vst [vmem:[%s5967_s23 + $0x88] sm:$0xff] %v3135_v53  ;;  %3255 = vst [vmem:[%s5967_s23 + $0x18] sm:$0xff] %v3100_v37 }
 0x63c   : > { %v3137_v47 = vpop.f32.mrf.mxu1  ;;  %v3102_v24 = vpop.f32.mrf.mxu0 }
 0x63e   : > { %v3140_v33 = vpop.f32.mrf.mxu1  ;;  %v3105_v60 = vpop.f32.mrf.mxu0 }
 0x63f   : > { %3263 = vst [vmem:[%s5967_s23 + $0x98] sm:$0xff] %v3140_v33  ;;  %3256 = vst [vmem:[%s5967_s23 + $0x28] sm:$0xff] %v3105_v60 }
 0x640   : > { %v3142_v7 = vpop.f32.mrf.mxu1  ;;  %v3107_v34 = vpop.f32.mrf.mxu0 }
 0x642   : > { %v3145_v12 = vpop.f32.mrf.mxu1  ;;  %v3110_v6 = vpop.f32.mrf.mxu0 }
 0x643   : > { %3264 = vst [vmem:[%s5967_s23 + $0xa8] sm:$0xff] %v3145_v12  ;;  %3257 = vst [vmem:[%s5967_s23 + $0x38] sm:$0xff] %v3110_v6 }
 0x644   : > { %v3147_v43 = vpop.f32.mrf.mxu1  ;;  %v3112_v46 = vpop.f32.mrf.mxu0 }
 0x646   : > { %v3150_v62 = vpop.f32.mrf.mxu1  ;;  %v3115_v18 = vpop.f32.mrf.mxu0 }
 0x647   : > { %3265 = vst [vmem:[%s5967_s23 + $0xb8] sm:$0xff] %v3150_v62  ;;  %3258 = vst [vmem:[%s5967_s23 + $0x48] sm:$0xff] %v3115_v18 }
 0x648   : > { %v3152_v10 = vpop.f32.mrf.mxu1  ;;  %v3117_v36 = vpop.f32.mrf.mxu0 }
 0x64a   : > { %v3155_v29 = vpop.f32.mrf.mxu1  ;;  %v3120_v0 = vpop.f32.mrf.mxu0 }
 0x64b   : > { %3266 = vst [vmem:[%s5967_s23 + $0xc8] sm:$0xff] %v3155_v29  ;;  %3259 = vst [vmem:[%s5967_s23 + $0x58] sm:$0xff] %v3120_v0 }
 0x64c   : > { %v3157_v50 = vpop.f32.mrf.mxu1  ;;  %v3122_v11 = vpop.f32.mrf.mxu0 }
 0x64e   : > { %v3160_v4 = vpop.f32.mrf.mxu1  ;;  %v3125_v42 = vpop.f32.mrf.mxu0 }
 0x64f   : > { %3267 = vst [vmem:[%s5967_s23 + $0xd8] sm:$0xff] %v3160_v4  ;;  %3260 = vst [vmem:[%s5967_s23 + $0x68] sm:$0xff] %v3125_v42 }
 0x650   : > { %v3162_v52 = vpop.f32.mrf.mxu1  ;;  %v3127_v14 = vpop.f32.mrf.mxu0 }
 0x652   : > { %v3165_v57 = vpop.f32.mrf.mxu1 }
 0x653   : > { %3268 = vst [vmem:[%s5967_s23 + $0xe8] sm:$0xff] %v3165_v57 }
 0x654   : > { %v3167_v32 = vpop.f32.mrf.mxu1 }
 0x656   : > { %v3170_v28 = vpop.f32.mrf.mxu1 }
 0x657   : > { %3269 = vst [vmem:[%s5967_s23 + $0xf8] sm:$0xff] %v3170_v28 }
 0x658   : > { %v3172_v9 = vpop.f32.mrf.mxu1 }
 0x65a   : > { %v3175_v13 = vpop.f32.mrf.mxu1 }
 0x65b   : > { %3270 = vst [vmem:[%s5967_s23 + $0x108] sm:$0xff] %v3175_v13 }
 0x65c   : > { %v3177_v41 = vpop.f32.mrf.mxu1 }
 0x65e   : > { %v3180_v44 = vpop.f32.mrf.mxu1 }
 0x65f   : > { %3271 = vst [vmem:[%s5967_s23 + $0x118] sm:$0xff] %v3180_v44 }
 0x660   : > { %v3182_v27 = vpop.f32.mrf.mxu1 }
 0x662   : > { %v3185_v16 = vpop.f32.mrf.mxu1 }
 0x663   : > { %3272 = vst [vmem:[%s5967_s23 + $0x128] sm:$0xff] %v3185_v16 }
 0x664   : > { %v3187_v48 = vpop.f32.mrf.mxu1 }
 0x666   : > { %v3190_v51 = vpop.f32.mrf.mxu1 }
 0x667   : > { %3273 = vst [vmem:[%s5967_s23 + $0x138] sm:$0xff] %v3190_v51 }
 0x668   : > { %v3192_v61 = vpop.f32.mrf.mxu1 }
 0x66a   : > { %v3195_v23 = vpop.f32.mrf.mxu1 }
 0x66b   : > { %3274 = vst [vmem:[%s5967_s23 + $0x148] sm:$0xff] %v3195_v23 }
 0x66c   : > { %v3197_v21 = vpop.f32.mrf.mxu1 }
 0x66e   : > { %v3200_v26 = vpop.f32.mrf.mxu1 }
 0x66f   : > { %3275 = vst [vmem:[%s5967_s23 + $0x158] sm:$0xff] %v3200_v26 }
 0x670   : > { %v3202_v45 = vpop.f32.mrf.mxu1 }
 0x672   : > { %v3205_v49 = vpop.f32.mrf.mxu1 }
 0x673   : > { %3276 = vst [vmem:[%s5967_s23 + $0x168] sm:$0xff] %v3205_v49 }
 0x674   : > { %v3207_v19 = vpop.f32.mrf.mxu1 }
 0x676   : > { %v3210_v38 = vpop.f32.mrf.mxu1 }
 0x677   : > { %3277 = vst [vmem:[%s5967_s23 + $0x178] sm:$0xff] %v3210_v38 }
 0x678   : > { %v3212_v1 = vpop.f32.mrf.mxu1 }
 0x67a   : > { %v3215_v63 = vpop.f32.mrf.mxu1 }
 0x67b   : > { %3278 = vst [vmem:[%s5967_s23 + $0x188] sm:$0xff] %v3215_v63 }
 0x67c   : > { %v3217_v25 = vpop.f32.mrf.mxu1 }
 0x67e   : > { %v3220_v58 = vpop.f32.mrf.mxu1 }
 0x67f   : > { %3279 = vst [vmem:[%s5967_s23 + $0x198] sm:$0xff] %v3220_v58 }
 0x680   : > { %v3222_v39 = vpop.f32.mrf.mxu1 }
 0x682   : > { %v3225_v55 = vpop.f32.mrf.mxu1 }
 0x683   : > { %3280 = vst [vmem:[%s5967_s23 + $0x1a8] sm:$0xff] %v3225_v55 }
 0x684   : > { %v3227_v17 = vpop.f32.mrf.mxu1 }
 0x686   : > { %v3230_v35 = vpop.f32.mrf.mxu1 }
 0x687   : > { %3281 = vst [vmem:[%s5967_s23 + $0x1b8] sm:$0xff] %v3230_v35 }
 0x688   : > { %v3232_v5 = vpop.f32.mrf.mxu1 }
 0x68a   : > { %v3235_v40 = vpop.f32.mrf.mxu1 }
 0x68b   : > { %3282 = vst [vmem:[%s5967_s23 + $0x1c8] sm:$0xff] %v3235_v40 }
 0x68c   : > { %v3237_v20 = vpop.f32.mrf.mxu1 }
 0x68e   : > { %v3240_v3 = vpop.f32.mrf.mxu1 }
 0x68f   : > { %3283 = vst [vmem:[%s5967_s23 + $0x1d8] sm:$0xff] %v3240_v3 }
 0x690   : > { %v3242_v2 = vpop.f32.mrf.mxu1 }
 0x692   : > { %v3245_v22 = vpop.f32.mrf.mxu1 }
 0x693   : > { %3284 = vst [vmem:[%s5967_s23 + $0x1e8] sm:$0xff] %v3245_v22 }
 0x694   : > { %v3247_v30 = vpop.f32.mrf.mxu1 }
 0x696   : > { %v3250_v59 = vpop.f32.mrf.mxu1 }
 0x697   : > { %3285 = vst [vmem:[%s5967_s23 + $0x1f8] sm:$0xff] %v3250_v59 }
 0x698   : > { %v3252_v54 = vpop.f32.mrf.mxu1 }
 0x699 PF: > { %s15_s20 = sadd.s32 1, %s4220_s20   ;;  %s6665_s18 = smov %s4216_s19 }
 0x69a   : > { %p12_p5 = scmp.ge.s32.totalorder %s15_s20, 4   ;;  %s6666_s19 = smov %s6668_s21 }
 0x69c   :  { %14 = sbr.rel (!%p12_p5) target bundleno = 2 (0x2), region = 73 }

</bundles_post_ra>
